<compile_context>
chip_gen: v7x
topology: tpu7x:2x2x1
jax: 0.10.0
libtpu: 0.0.40
codegen_flags: <defaults>
</compile_context>

<pallas_src>
import functools

import jax
import jax.numpy as jnp
from jax.experimental import pallas as pl
from jax.experimental.pallas import tpu as pltpu

EPS = 1e-5
LANE = 128


def _round_up(v, m):
    return (v + m - 1) // m * m


def _h_tile(H, W, target):
    """Row tile for the 3x3 conv: divides H, (TH*W) % 8 == 0, TH <= target."""
    if target is None:
        target = max(1, 2048 // max(W, 1))
    target = max(1, min(target, H))
    for t in range(target, 0, -1):
        if H % t == 0 and (t * W) % 8 == 0:
            return t
    return H  # full image per step (block == full dim, always legal)


def _pick_vmem_limit():
    """Per-generation scoped-VMEM limit; None -> leave compiler default."""
    try:
        cap = int(pltpu.get_tpu_info().vmem_capacity_bytes)
        return int(min(max(cap - (16 << 20), 32 << 20), 100 << 20))
    except Exception:
        return None


# --------------------------------------------------------------------------
# Kernels
# --------------------------------------------------------------------------
def _channel_stats(h):
    # Per-channel (sum, sum-of-squares) of this tile -> (2, Cout). Always f32.
    ssum = jnp.sum(h, axis=0, keepdims=True)
    ssq = jnp.sum(h * h, axis=0, keepdims=True)
    return jnp.concatenate([ssum, ssq], axis=0)


def _conv1x1_stats_kernel(x_ref, w_ref, h_ref, st_ref, *, mxu_dtype):
    # h = x @ w (1x1 conv over a row tile) + per-tile channel stats.
    h = jnp.dot(x_ref[...].astype(mxu_dtype), w_ref[...],
                preferred_element_type=jnp.float32)
    h_ref[...] = h.astype(h_ref.dtype)
    st_ref[0] = _channel_stats(h)


def _bn_relu_conv1x1_stats_kernel(x_ref, w_ref, s_ref, b_ref, h_ref, st_ref,
                                  *, mxu_dtype, rows_valid):
    # Folded BN (h*scale + bias) + relu, then 1x1 conv, plus channel stats.
    a = jnp.maximum(x_ref[...].astype(jnp.float32) * s_ref[...] + b_ref[...], 0.0)
    if rows_valid is not None:
        # Zero padded rows (M padded up to a multiple of TM) so they neither
        # pollute the bn3 statistics nor the stored activations.
        tm = x_ref.shape[0]
        rid = jax.lax.broadcasted_iota(jnp.int32, (tm, 1), 0) + pl.program_id(0) * tm
        a = jnp.where(rid < rows_valid, a, 0.0)
    h = jnp.dot(a.astype(mxu_dtype), w_ref[...], preferred_element_type=jnp.float32)
    h_ref[...] = h.astype(h_ref.dtype)
    st_ref[0] = _channel_stats(h)


def _bn_relu_conv3x3_stats_kernel(x_hbm, w_ref, s_ref, b_ref, h_ref, st_ref,
                                  slab, sem, *, H, W, TH, mxu_dtype):
    # One (image, H-row-tile) per grid step.  The input x_hbm is the spatially
    # zero-padded h1 (N, H+2, W+2, Cp) left in HBM; we DMA a (TH+2, W+2, Cp)
    # halo slab, apply folded bn1+relu with a validity mask (padding positions
    # must stay exactly 0 after the affine+relu), then accumulate 9 per-tap
    # MXU dots (K = Cp) -- no im2col patches tensor is ever materialized.
    # TODO(synk): double-buffer the slab DMA across grid steps to hide it.
    n = pl.program_id(0)
    th = pl.program_id(1)
    row0 = th * TH

    cp = pltpu.make_async_copy(x_hbm.at[n, pl.ds(row0, TH + 2)], slab, sem.at[0])
    cp.start()

    # Mask prep overlaps the DMA a little.
    row_g = jax.lax.broadcasted_iota(jnp.int32, (TH + 2, W + 2, 1), 0) + row0
    col = jax.lax.broadcasted_iota(jnp.int32, (TH + 2, W + 2, 1), 1)
    valid = (row_g >= 1) & (row_g <= H) & (col >= 1) & (col <= W)

    cp.wait()

    a = jnp.maximum(slab[...].astype(jnp.float32) * s_ref[...] + b_ref[...], 0.0)
    a = jnp.where(valid, a, 0.0).astype(mxu_dtype)          # (TH+2, W+2, Cp)
    Cp = a.shape[-1]

    acc = jnp.zeros((TH * W, w_ref.shape[-1]), jnp.float32)
    t = 0
    for ky in range(3):
        for kx in range(3):
            tap = a[ky:ky + TH, kx:kx + W, :].reshape(TH * W, Cp)
            acc = acc + jnp.dot(tap, w_ref[t], preferred_element_type=jnp.float32)
            t += 1

    h_ref[0] = acc.astype(h_ref.dtype)
    st_ref[0, 0] = _channel_stats(acc)


def _bn_add_relu_kernel(h_ref, x_ref, s_ref, b_ref, o_ref):
    # bn3 (folded) + residual add + relu.
    o_ref[...] = jnp.maximum(
        h_ref[...].astype(jnp.float32) * s_ref[...] + b_ref[...] + x_ref[...], 0.0)


def _fold_bn_affine(st_partials, count, gamma, beta):
    """Reduce per-tile (sum, sumsq) partials -> folded BN scale/bias, (1, C)."""
    tot = jnp.sum(st_partials, axis=0)                # (2, C)
    mean = tot[0:1] / count
    var = tot[1:2] / count - mean * mean              # biased batch variance
    scale = gamma * jax.lax.rsqrt(var + EPS)
    bias = beta - mean * scale
    return scale, bias


# --------------------------------------------------------------------------
# Wrapper
# --------------------------------------------------------------------------
@functools.partial(jax.jit,
                   static_argnames=("use_bf16_mxu", "row_tile_target", "h_tile_target"))
def bottleneck_pallas(x, p, use_bf16_mxu=False, row_tile_target=512,
                      h_tile_target=None):
    """x: (N, H, W, Cin) float32, NHWC. Returns (N, H, W, Cin) float32."""
    N, H, W, Cin = x.shape
    Cin_w, C = p["w1"].shape
    assert Cin_w == Cin and Cin == 4 * C, \
        "downsample=None, stride=1 requires in_channels == 4*out_channels"
    f32 = jnp.float32
    mxu_dtype = jnp.bfloat16 if use_bf16_mxu else f32
    store_dtype = jnp.bfloat16 if use_bf16_mxu else f32   # HBM intermediates

    Cp = _round_up(C, LANE)         # lane-dense bottleneck width
    Cip = _round_up(Cin, LANE)      # lane-dense in/out width
    M = N * H * W
    HW = H * W

    # Row tiling for the 1x1 / elementwise passes (pad M up to a multiple).
    TM = min(max(8, (row_tile_target // 8) * 8), _round_up(M, 8))
    Mp = _round_up(M, TM)
    G = Mp // TM
    # H tiling (with halo) for the 3x3 conv.
    TH = _h_tile(H, W, h_tile_target)
    NT = H // TH

    vlim = _pick_vmem_limit()
    par1 = pltpu.CompilerParams(dimension_semantics=("parallel",),
                                vmem_limit_bytes=vlim)
    par2 = pltpu.CompilerParams(dimension_semantics=("parallel", "parallel"),
                                vmem_limit_bytes=vlim)

    # ---- lane-dense padding + MXU-dtype weights (casts hoisted out of kernels)
    w1 = jnp.pad(p["w1"].astype(f32), ((0, Cip - Cin), (0, Cp - C))).astype(mxu_dtype)
    w2 = jnp.pad(p["w2"].astype(f32), ((0, 0), (0, 0), (0, Cp - C), (0, Cp - C)))
    w2 = w2.reshape(9, Cp, Cp).astype(mxu_dtype)          # tap-major (ky, kx)
    w3 = jnp.pad(p["w3"].astype(f32), ((0, Cp - C), (0, Cip - Cin))).astype(mxu_dtype)
    g1 = jnp.pad(p["g1"].astype(f32), ((0, 0), (0, Cp - C)))
    b1 = jnp.pad(p["b1"].astype(f32), ((0, 0), (0, Cp - C)))
    g2 = jnp.pad(p["g2"].astype(f32), ((0, 0), (0, Cp - C)))
    b2 = jnp.pad(p["b2"].astype(f32), ((0, 0), (0, Cp - C)))
    g3 = jnp.pad(p["g3"].astype(f32), ((0, 0), (0, Cip - Cin)))
    b3 = jnp.pad(p["b3"].astype(f32), ((0, 0), (0, Cip - Cin)))
    x2 = jnp.pad(x.astype(f32), ((0, 0), (0, 0), (0, 0), (0, Cip - Cin)))
    x2 = x2.reshape(M, Cip)
    if Mp != M:
        x2 = jnp.pad(x2, ((0, Mp - M), (0, 0)))

    # ---- pass 1: conv1 (1x1) + per-tile channel stats ------------------------
    h1, st1 = pl.pallas_call(
        functools.partial(_conv1x1_stats_kernel, mxu_dtype=mxu_dtype),
        grid=(G,),
        in_specs=[
            pl.BlockSpec((TM, Cip), lambda i: (i, 0)),
            pl.BlockSpec((Cip, Cp), lambda i: (0, 0)),
        ],
        out_specs=(
            pl.BlockSpec((TM, Cp), lambda i: (i, 0)),
            pl.BlockSpec((1, 2, Cp), lambda i: (i, 0, 0)),
        ),
        out_shape=(
            jax.ShapeDtypeStruct((Mp, Cp), store_dtype),
            jax.ShapeDtypeStruct((G, 2, Cp), f32),
        ),
        compiler_params=par1,
    )(x2, w1)
    s1, t1 = _fold_bn_affine(st1, M, g1, b1)

    # ---- pass 2: bn1+relu -> conv2 (3x3, halo-tiled over H) + stats -----------
    # TODO(synk): have pass 1 write directly into the spatially padded layout to
    # avoid this extra HBM round-trip for the pad.
    h1p = jnp.pad(h1[:M].reshape(N, H, W, Cp), ((0, 0), (1, 1), (1, 1), (0, 0)))
    h2, st2 = pl.pallas_call(
        functools.partial(_bn_relu_conv3x3_stats_kernel, H=H, W=W, TH=TH,
                          mxu_dtype=mxu_dtype),
        grid=(N, NT),
        in_specs=[
            pl.BlockSpec(memory_space=pl.ANY),                       # h1p stays in HBM
            pl.BlockSpec((9, Cp, Cp), lambda n, t: (0, 0, 0)),
            pl.BlockSpec((1, Cp), lambda n, t: (0, 0)),
            pl.BlockSpec((1, Cp), lambda n, t: (0, 0)),
        ],
        out_specs=(
            pl.BlockSpec((1, TH * W, Cp), lambda n, t: (n, t, 0)),
            pl.BlockSpec((1, 1, 2, Cp), lambda n, t: (n, t, 0, 0)),
        ),
        out_shape=(
            jax.ShapeDtypeStruct((N, HW, Cp), store_dtype),
            jax.ShapeDtypeStruct((N, NT, 2, Cp), f32),
        ),
        scratch_shapes=[
            pltpu.VMEM((TH + 2, W + 2, Cp), store_dtype),            # halo slab
            pltpu.SemaphoreType.DMA((1,)),
        ],
        compiler_params=par2,
    )(h1p, w2, s1, t1)
    s2, t2 = _fold_bn_affine(st2.reshape(N * NT, 2, Cp), M, g2, b2)

    # ---- pass 3: bn2+relu -> conv3 (1x1) + stats ------------------------------
    h2f = h2.reshape(M, Cp)
    if Mp != M:
        h2f = jnp.pad(h2f, ((0, Mp - M), (0, 0)))
    h3, st3 = pl.pallas_call(
        functools.partial(_bn_relu_conv1x1_stats_kernel, mxu_dtype=mxu_dtype,
                          rows_valid=(M if Mp != M else None)),
        grid=(G,),
        in_specs=[
            pl.BlockSpec((TM, Cp), lambda i: (i, 0)),
            pl.BlockSpec((Cp, Cip), lambda i: (0, 0)),
            pl.BlockSpec((1, Cp), lambda i: (0, 0)),
            pl.BlockSpec((1, Cp), lambda i: (0, 0)),
        ],
        out_specs=(
            pl.BlockSpec((TM, Cip), lambda i: (i, 0)),
            pl.BlockSpec((1, 2, Cip), lambda i: (i, 0, 0)),
        ),
        out_shape=(
            jax.ShapeDtypeStruct((Mp, Cip), store_dtype),
            jax.ShapeDtypeStruct((G, 2, Cip), f32),
        ),
        compiler_params=par1,
    )(h2f, w3, s2, t2)
    s3, t3 = _fold_bn_affine(st3, M, g3, b3)

    # ---- pass 4: bn3 + residual add + relu (residual aliased onto output) ----
    out2 = pl.pallas_call(
        _bn_add_relu_kernel,
        grid=(G,),
        in_specs=[
            pl.BlockSpec((TM, Cip), lambda i: (i, 0)),
            pl.BlockSpec((TM, Cip), lambda i: (i, 0)),
            pl.BlockSpec((1, Cip), lambda i: (0, 0)),
            pl.BlockSpec((1, Cip), lambda i: (0, 0)),
        ],
        out_specs=pl.BlockSpec((TM, Cip), lambda i: (i, 0)),
        out_shape=jax.ShapeDtypeStruct((Mp, Cip), f32),
        input_output_aliases={1: 0},
        compiler_params=par1,
    )(h3, x2, s3, t3)

    return out2[:M].reshape(N, H, W, Cip)[..., :Cin]


# --------------------------------------------------------------------------
# Params / reference / test
# --------------------------------------------------------------------------
def init_params(key, in_channels, out_channels):
    C = out_channels
    ks = jax.random.split(key, 12)
    s = 0.1
    return {
        "w1": s * jax.random.normal(ks[0], (in_channels, C), jnp.float32),
        "w2": s * jax.random.normal(ks[1], (3, 3, C, C), jnp.float32),   # HWIO
        "w3": s * jax.random.normal(ks[2], (C, 4 * C), jnp.float32),
        "g1": 1.0 + 0.1 * jax.random.normal(ks[3], (1, C), jnp.float32),
        "b1": 0.1 * jax.random.normal(ks[4], (1, C), jnp.float32),
        "g2": 1.0 + 0.1 * jax.random.normal(ks[5], (1, C), jnp.float32),
        "b2": 0.1 * jax.random.normal(ks[6], (1, C), jnp.float32),
        "g3": 1.0 + 0.1 * jax.random.normal(ks[7], (1, 4 * C), jnp.float32),
        "b3": 0.1 * jax.random.normal(ks[8], (1, 4 * C), jnp.float32),
    }


def bottleneck_ref(x, p):
    # Pure-JAX reference (NHWC, training-mode BN) for validation.
    dn = ("NHWC", "HWIO", "NHWC")
    Cin, C = p["w1"].shape

    def bn(h, g, b):
        mean = jnp.mean(h, axis=(0, 1, 2), keepdims=True)
        var = jnp.mean((h - mean) ** 2, axis=(0, 1, 2), keepdims=True)
        return (h - mean) / jnp.sqrt(var + EPS) * g + b

    h = jax.lax.conv_general_dilated(x, p["w1"].reshape(1, 1, Cin, C),
                                     (1, 1), "VALID", dimension_numbers=dn)
    h = jax.nn.relu(bn(h, p["g1"], p["b1"]))
    h = jax.lax.conv_general_dilated(h, p["w2"], (1, 1), "SAME",
                                     dimension_numbers=dn)
    h = jax.nn.relu(bn(h, p["g2"], p["b2"]))
    h = jax.lax.conv_general_dilated(h, p["w3"].reshape(1, 1, C, 4 * C),
                                     (1, 1), "VALID", dimension_numbers=dn)
    h = bn(h, p["g3"], p["b3"])
    return jax.nn.relu(h + x)


if __name__ == "__main__":
    key = jax.random.PRNGKey(0)
    kx, kp = jax.random.split(key)

    N, H, W = 2, 16, 16
    in_channels, out_channels = 32, 8          # in_channels == 4 * out_channels

    x = jax.random.normal(kx, (N, H, W, in_channels), jnp.float32)
    params = init_params(kp, in_channels, out_channels)
    ref = bottleneck_ref(x, params)

    # (1) defaults (f32, single H tile), (2) multi-tile halo + padded-M mask
    # path, (3) bf16 MXU / bf16 HBM intermediates.
    configs = [
        dict(use_bf16_mxu=False, row_tile_target=512, h_tile_target=None, tol=2e-4),
        dict(use_bf16_mxu=False, row_tile_target=384, h_tile_target=8, tol=2e-4),
        dict(use_bf16_mxu=True, row_tile_target=512, h_tile_target=8, tol=1e-1),
    ]
    for cfg in configs:
        tol = cfg.pop("tol")
        out = jax.block_until_ready(bottleneck_pallas(x, params, **cfg))
        assert out.shape == (N, H, W, in_channels)
        err = float(jnp.max(jnp.abs(out - ref)))
        assert jnp.allclose(out, ref, atol=tol, rtol=tol), \
            f"max abs err {err} for cfg {cfg}"

    print("KERNEL_OK")
</pallas_src>

<mosaic_0001>
module attributes {stable_mosaic.version = 11 : i64} {
  func.func @_conv1x1_stats_kernel(%arg0: i32, %arg1: memref<512x128xf32, #tpu.memory_space<vmem>>, %arg2: memref<128x128xf32, #tpu.memory_space<vmem>>, %arg3: memref<512x128xf32, #tpu.memory_space<vmem>>, %arg4: memref<1x2x128xf32, #tpu.memory_space<vmem>>) attributes {dimension_semantics = [#tpu.dimension_semantics<parallel>], iteration_bounds = array<i64: 1>, scalar_prefetch = 0 : i64, scratch_operands = 0 : i64, tpu.core_type = #tpu.core_type<tc>, window_params = [{transform_indices = @transform_0, window_bounds = array<i64: 512, 128>}, {pipeline_mode = #tpu.pipeline_mode<synchronous>, transform_indices = @transform_1, window_bounds = array<i64: 128, 128>}, {transform_indices = @transform_2, window_bounds = array<i64: 512, 128>}, {transform_indices = @transform_3, window_bounds = array<i64: 1, 2, 128>}]} {
    %c0 = arith.constant 0 : index
    %c0_0 = arith.constant 0 : index
    %0 = vector.load %arg1[%c0, %c0_0] : memref<512x128xf32, #tpu.memory_space<vmem>>, vector<512x128xf32>
    %c0_1 = arith.constant 0 : index
    %c0_2 = arith.constant 0 : index
    %1 = vector.load %arg2[%c0_1, %c0_2] : memref<128x128xf32, #tpu.memory_space<vmem>>, vector<128x128xf32>
    %cst = arith.constant dense<0.000000e+00> : vector<512x128xf32>
    %2 = tpu.matmul %0, %1, %cst {dimension_numbers = #tpu.dot_dimension_numbers<[1], [0], [0], [1], [0, 0, 1, 1], [], []>} : vector<512x128xf32>, vector<128x128xf32>, vector<512x128xf32> -> vector<512x128xf32>
    %c0_3 = arith.constant 0 : index
    %c0_4 = arith.constant 0 : index
    %3 = vector.load %arg3[%c0_3, %c0_4] : memref<512x128xf32, #tpu.memory_space<vmem>>, vector<512x128xf32>
    tpu.vector_store %arg3[%c0_3, %c0_4], %2 {strides = array<i32>} : memref<512x128xf32, #tpu.memory_space<vmem>>, vector<512x128xf32>,
    %cst_5 = arith.constant dense<0.000000e+00> : vector<128xf32>
    %4 = vector.multi_reduction <add>, %2, %cst_5 [0] : vector<512x128xf32> to vector<128xf32>
    %5 = vector.shape_cast %4 : vector<128xf32> to vector<1x128xf32>
    %6 = arith.mulf %2, %2 : vector<512x128xf32>
    %cst_6 = arith.constant dense<0.000000e+00> : vector<128xf32>
    %7 = vector.multi_reduction <add>, %6, %cst_6 [0] : vector<512x128xf32> to vector<128xf32>
    %8 = vector.shape_cast %7 : vector<128xf32> to vector<1x128xf32>
    %9 = tpu.concatenate %5, %8 in 0 : vector<1x128xf32>, vector<1x128xf32> -> vector<2x128xf32>
    %c0_7 = arith.constant 0 : index
    %c0_8 = arith.constant 0 : index
    %c0_9 = arith.constant 0 : index
    %10 = vector.load %arg4[%c0_7, %c0_8, %c0_9] : memref<1x2x128xf32, #tpu.memory_space<vmem>>, vector<1x2x128xf32>
    %11 = vector.shape_cast %10 : vector<1x2x128xf32> to vector<2x128xf32>
    %12 = vector.shape_cast %9 : vector<2x128xf32> to vector<1x2x128xf32>
    tpu.vector_store %arg4[%c0_7, %c0_8, %c0_9], %12 {strides = array<i32>} : memref<1x2x128xf32, #tpu.memory_space<vmem>>, vector<1x2x128xf32>,
    return
  }
  func.func @transform_0(%arg0: i32) -> (i32, i32) {
    %c0_i32 = arith.constant 0 : i32
    %c0_i32_0 = arith.constant 0 : i32
    return %arg0, %c0_i32 : i32, i32
  }
  func.func @transform_1(%arg0: i32) -> (i32, i32) {
    %c0_i32 = arith.constant 0 : i32
    %c0_i32_0 = arith.constant 0 : i32
    %c0_i32_1 = arith.constant 0 : i32
    return %c0_i32, %c0_i32_0 : i32, i32
  }
  func.func @transform_2(%arg0: i32) -> (i32, i32) {
    %c0_i32 = arith.constant 0 : i32
    %c0_i32_0 = arith.constant 0 : i32
    return %arg0, %c0_i32 : i32, i32
  }
  func.func @transform_3(%arg0: i32) -> (i32, i32, i32) {
    %c0_i32 = arith.constant 0 : i32
    %c0_i32_0 = arith.constant 0 : i32
    %c0_i32_1 = arith.constant 0 : i32
    return %arg0, %c0_i32, %c0_i32_0 : i32, i32, i32
  }
}

module attributes {stable_mosaic.version = 11 : i64} {
  func.func @_bn_relu_conv3x3_stats_kernel(%arg0: i32, %arg1: i32, %arg2: memref<2x18x18x128xf32, #tpu.memory_space<any>>, %arg3: memref<9x128x128xf32, #tpu.memory_space<vmem>>, %arg4: memref<1x128xf32, #tpu.memory_space<vmem>>, %arg5: memref<1x128xf32, #tpu.memory_space<vmem>>, %arg6: memref<1x256x128xf32, #tpu.memory_space<vmem>>, %arg7: memref<1x1x2x128xf32, #tpu.memory_space<vmem>>, %arg8: memref<18x18x128xf32, #tpu.memory_space<vmem>>, %arg9: memref<1x!tpu.dma_semaphore, #tpu.memory_space<semaphore_mem>>) attributes {dimension_semantics = [#tpu.dimension_semantics<parallel>, #tpu.dimension_semantics<parallel>], iteration_bounds = array<i64: 2, 1>, scalar_prefetch = 0 : i64, scratch_operands = 2 : i64, tpu.core_type = #tpu.core_type<tc>, window_params = [{}, {pipeline_mode = #tpu.pipeline_mode<synchronous>, transform_indices = @transform_1, window_bounds = array<i64: 9, 128, 128>}, {pipeline_mode = #tpu.pipeline_mode<synchronous>, transform_indices = @transform_2, window_bounds = array<i64: 1, 128>}, {pipeline_mode = #tpu.pipeline_mode<synchronous>, transform_indices = @transform_3, window_bounds = array<i64: 1, 128>}, {transform_indices = @transform_4, window_bounds = array<i64: 1, 256, 128>}, {transform_indices = @transform_5, window_bounds = array<i64: 1, 1, 2, 128>}]} {
    %c16_i32 = arith.constant 16 : i32
    %0 = arith.muli %arg1, %c16_i32 : i32
    %c0_i32 = arith.constant 0 : i32
    %c0_i32_0 = arith.constant 0 : i32
    %c0_i32_1 = arith.constant 0 : i32
    %1 = tpu.memref_slice %arg2[%arg0, %0, %c0_i32_0, %c0_i32_1] : memref<2x18x18x128xf32, #tpu.memory_space<any>> -> memref<1x18x18x128xf32, #tpu.memory_space<any>>
    %2 = tpu.memref_squeeze %1 : memref<1x18x18x128xf32, #tpu.memory_space<any>> -> memref<18x18x128xf32, #tpu.memory_space<any>>
    %3 = tpu.memref_slice %arg9[%c0_i32] : memref<1x!tpu.dma_semaphore, #tpu.memory_space<semaphore_mem>> -> memref<1x!tpu.dma_semaphore, #tpu.memory_space<semaphore_mem>>
    %4 = tpu.memref_squeeze %3 : memref<1x!tpu.dma_semaphore, #tpu.memory_space<semaphore_mem>> -> memref<!tpu.dma_semaphore, #tpu.memory_space<semaphore_mem>>
    tpu.enqueue_dma source(%2 : memref<18x18x128xf32, #tpu.memory_space<any>>) target(%arg8 : memref<18x18x128xf32, #tpu.memory_space<vmem>>) target_semaphore(%4 : memref<!tpu.dma_semaphore, #tpu.memory_space<semaphore_mem>>)
    %5 = tpu.iota {dimensions = array<i32: 0>} : vector<18x18x1xi32>
    %6 = vector.broadcast %0 : i32 to vector<18x18x1xi32>
    %7 = arith.addi %5, %6 : vector<18x18x1xi32>
    %8 = tpu.iota {dimensions = array<i32: 1>} : vector<18x18x1xi32>
    %c1_i32 = arith.constant 1 : i32
    %9 = vector.broadcast %c1_i32 : i32 to vector<18x18x1xi32>
    %10 = arith.cmpi sge, %7, %9 : vector<18x18x1xi32>
    %c16_i32_2 = arith.constant 16 : i32
    %11 = vector.broadcast %c16_i32_2 : i32 to vector<18x18x1xi32>
    %12 = arith.cmpi sle, %7, %11 : vector<18x18x1xi32>
    %13 = arith.andi %10, %12 : vector<18x18x1xi1>
    %c1_i32_3 = arith.constant 1 : i32
    %14 = vector.broadcast %c1_i32_3 : i32 to vector<18x18x1xi32>
    %15 = arith.cmpi sge, %8, %14 : vector<18x18x1xi32>
    %16 = arith.andi %13, %15 : vector<18x18x1xi1>
    %c16_i32_4 = arith.constant 16 : i32
    %17 = vector.broadcast %c16_i32_4 : i32 to vector<18x18x1xi32>
    %18 = arith.cmpi sle, %8, %17 : vector<18x18x1xi32>
    %19 = arith.andi %16, %18 : vector<18x18x1xi1>
    %c0_i32_5 = arith.constant 0 : i32
    %c0_i32_6 = arith.constant 0 : i32
    %c0_i32_7 = arith.constant 0 : i32
    %20 = tpu.memref_slice %arg2[%arg0, %0, %c0_i32_6, %c0_i32_7] : memref<2x18x18x128xf32, #tpu.memory_space<any>> -> memref<1x18x18x128xf32, #tpu.memory_space<any>>
    %21 = tpu.memref_squeeze %20 : memref<1x18x18x128xf32, #tpu.memory_space<any>> -> memref<18x18x128xf32, #tpu.memory_space<any>>
    %22 = tpu.memref_slice %arg9[%c0_i32_5] : memref<1x!tpu.dma_semaphore, #tpu.memory_space<semaphore_mem>> -> memref<1x!tpu.dma_semaphore, #tpu.memory_space<semaphore_mem>>
    %23 = tpu.memref_squeeze %22 : memref<1x!tpu.dma_semaphore, #tpu.memory_space<semaphore_mem>> -> memref<!tpu.dma_semaphore, #tpu.memory_space<semaphore_mem>>
    tpu.wait_dma2 semaphore(%23 : memref<!tpu.dma_semaphore, #tpu.memory_space<semaphore_mem>>) src(%21 : memref<18x18x128xf32, #tpu.memory_space<any>>) dst(%arg8 : memref<18x18x128xf32, #tpu.memory_space<vmem>>)
    %c0 = arith.constant 0 : index
    %c0_8 = arith.constant 0 : index
    %c0_9 = arith.constant 0 : index
    %24 = vector.load %arg8[%c0, %c0_8, %c0_9] : memref<18x18x128xf32, #tpu.memory_space<vmem>>, vector<18x18x128xf32>
    %c0_10 = arith.constant 0 : index
    %c0_11 = arith.constant 0 : index
    %25 = vector.load %arg4[%c0_10, %c0_11] : memref<1x128xf32, #tpu.memory_space<vmem>>, vector<1x128xf32>
    %26 = vector.shape_cast %25 : vector<1x128xf32> to vector<1x1x128xf32>
    %27 = vector.broadcast %26 : vector<1x1x128xf32> to vector<18x18x128xf32>
    %28 = arith.mulf %24, %27 : vector<18x18x128xf32>
    %c0_12 = arith.constant 0 : index
    %c0_13 = arith.constant 0 : index
    %29 = vector.load %arg5[%c0_12, %c0_13] : memref<1x128xf32, #tpu.memory_space<vmem>>, vector<1x128xf32>
    %30 = vector.shape_cast %29 : vector<1x128xf32> to vector<1x1x128xf32>
    %31 = vector.broadcast %30 : vector<1x1x128xf32> to vector<18x18x128xf32>
    %32 = arith.addf %28, %31 : vector<18x18x128xf32>
    %cst = arith.constant 0.000000e+00 : f32
    %33 = vector.broadcast %cst : f32 to vector<18x18x128xf32>
    %34 = arith.maximumf %32, %33 : vector<18x18x128xf32>
    %cst_14 = arith.constant 0.000000e+00 : f32
    %35 = vector.shape_cast %19 : vector<18x18x1xi1> to vector<18x18x1xi1>
    %36 = vector.broadcast %35 : vector<18x18x1xi1> to vector<18x18x128xi1>
    %37 = vector.broadcast %cst_14 : f32 to vector<18x18x128xf32>
    %38 = arith.select %36, %34, %37 : vector<18x18x128xi1>, vector<18x18x128xf32>
    %cst_15 = arith.constant 0.000000e+00 : f32
    %39 = vector.broadcast %cst_15 : f32 to vector<256x128xf32>
    %40 = vector.extract_strided_slice %38 {offsets = [0, 0, 0], sizes = [16, 16, 128], strides = [1, 1, 1]} : vector<18x18x128xf32> to vector<16x16x128xf32>
    %41 = vector.shape_cast %40 : vector<16x16x128xf32> to vector<256x128xf32>
    %c0_16 = arith.constant 0 : index
    %c0_17 = arith.constant 0 : index
    %c0_18 = arith.constant 0 : index
    %42 = vector.load %arg3[%c0_16, %c0_17, %c0_18] : memref<9x128x128xf32, #tpu.memory_space<vmem>>, vector<1x128x128xf32>
    %43 = vector.shape_cast %42 : vector<1x128x128xf32> to vector<128x128xf32>
    %cst_19 = arith.constant dense<0.000000e+00> : vector<256x128xf32>
    %44 = tpu.matmul %41, %43, %cst_19 {dimension_numbers = #tpu.dot_dimension_numbers<[1], [0], [0], [1], [0, 0, 1, 1], [], []>} : vector<256x128xf32>, vector<128x128xf32>, vector<256x128xf32> -> vector<256x128xf32>
    %45 = arith.addf %39, %44 : vector<256x128xf32>
    %46 = vector.extract_strided_slice %38 {offsets = [0, 1, 0], sizes = [16, 16, 128], strides = [1, 1, 1]} : vector<18x18x128xf32> to vector<16x16x128xf32>
    %47 = vector.shape_cast %46 : vector<16x16x128xf32> to vector<256x128xf32>
    %c1 = arith.constant 1 : index
    %c0_20 = arith.constant 0 : index
    %c0_21 = arith.constant 0 : index
    %48 = vector.load %arg3[%c1, %c0_20, %c0_21] : memref<9x128x128xf32, #tpu.memory_space<vmem>>, vector<1x128x128xf32>
    %49 = vector.shape_cast %48 : vector<1x128x128xf32> to vector<128x128xf32>
    %cst_22 = arith.constant dense<0.000000e+00> : vector<256x128xf32>
    %50 = tpu.matmul %47, %49, %cst_22 {dimension_numbers = #tpu.dot_dimension_numbers<[1], [0], [0], [1], [0, 0, 1, 1], [], []>} : vector<256x128xf32>, vector<128x128xf32>, vector<256x128xf32> -> vector<256x128xf32>
    %51 = arith.addf %45, %50 : vector<256x128xf32>
    %52 = vector.extract_strided_slice %38 {offsets = [0, 2, 0], sizes = [16, 16, 128], strides = [1, 1, 1]} : vector<18x18x128xf32> to vector<16x16x128xf32>
    %53 = vector.shape_cast %52 : vector<16x16x128xf32> to vector<256x128xf32>
    %c2 = arith.constant 2 : index
    %c0_23 = arith.constant 0 : index
    %c0_24 = arith.constant 0 : index
    %54 = vector.load %arg3[%c2, %c0_23, %c0_24] : memref<9x128x128xf32, #tpu.memory_space<vmem>>, vector<1x128x128xf32>
    %55 = vector.shape_cast %54 : vector<1x128x128xf32> to vector<128x128xf32>
    %cst_25 = arith.constant dense<0.000000e+00> : vector<256x128xf32>
    %56 = tpu.matmul %53, %55, %cst_25 {dimension_numbers = #tpu.dot_dimension_numbers<[1], [0], [0], [1], [0, 0, 1, 1], [], []>} : vector<256x128xf32>, vector<128x128xf32>, vector<256x128xf32> -> vector<256x128xf32>
    %57 = arith.addf %51, %56 : vector<256x128xf32>
    %58 = vector.extract_strided_slice %38 {offsets = [1, 0, 0], sizes = [16, 16, 128], strides = [1, 1, 1]} : vector<18x18x128xf32> to vector<16x16x128xf32>
    %59 = vector.shape_cast %58 : vector<16x16x128xf32> to vector<256x128xf32>
    %c3 = arith.constant 3 : index
    %c0_26 = arith.constant 0 : index
    %c0_27 = arith.constant 0 : index
    %60 = vector.load %arg3[%c3, %c0_26, %c0_27] : memref<9x128x128xf32, #tpu.memory_space<vmem>>, vector<1x128x128xf32>
    %61 = vector.shape_cast %60 : vector<1x128x128xf32> to vector<128x128xf32>
    %cst_28 = arith.constant dense<0.000000e+00> : vector<256x128xf32>
    %62 = tpu.matmul %59, %61, %cst_28 {dimension_numbers = #tpu.dot_dimension_numbers<[1], [0], [0], [1], [0, 0, 1, 1], [], []>} : vector<256x128xf32>, vector<128x128xf32>, vector<256x128xf32> -> vector<256x128xf32>
    %63 = arith.addf %57, %62 : vector<256x128xf32>
    %64 = vector.extract_strided_slice %38 {offsets = [1, 1, 0], sizes = [16, 16, 128], strides = [1, 1, 1]} : vector<18x18x128xf32> to vector<16x16x128xf32>
    %65 = vector.shape_cast %64 : vector<16x16x128xf32> to vector<256x128xf32>
    %c4 = arith.constant 4 : index
    %c0_29 = arith.constant 0 : index
    %c0_30 = arith.constant 0 : index
    %66 = vector.load %arg3[%c4, %c0_29, %c0_30] : memref<9x128x128xf32, #tpu.memory_space<vmem>>, vector<1x128x128xf32>
    %67 = vector.shape_cast %66 : vector<1x128x128xf32> to vector<128x128xf32>
    %cst_31 = arith.constant dense<0.000000e+00> : vector<256x128xf32>
    %68 = tpu.matmul %65, %67, %cst_31 {dimension_numbers = #tpu.dot_dimension_numbers<[1], [0], [0], [1], [0, 0, 1, 1], [], []>} : vector<256x128xf32>, vector<128x128xf32>, vector<256x128xf32> -> vector<256x128xf32>
    %69 = arith.addf %63, %68 : vector<256x128xf32>
    %70 = vector.extract_strided_slice %38 {offsets = [1, 2, 0], sizes = [16, 16, 128], strides = [1, 1, 1]} : vector<18x18x128xf32> to vector<16x16x128xf32>
    %71 = vector.shape_cast %70 : vector<16x16x128xf32> to vector<256x128xf32>
    %c5 = arith.constant 5 : index
    %c0_32 = arith.constant 0 : index
    %c0_33 = arith.constant 0 : index
    %72 = vector.load %arg3[%c5, %c0_32, %c0_33] : memref<9x128x128xf32, #tpu.memory_space<vmem>>, vector<1x128x128xf32>
    %73 = vector.shape_cast %72 : vector<1x128x128xf32> to vector<128x128xf32>
    %cst_34 = arith.constant dense<0.000000e+00> : vector<256x128xf32>
    %74 = tpu.matmul %71, %73, %cst_34 {dimension_numbers = #tpu.dot_dimension_numbers<[1], [0], [0], [1], [0, 0, 1, 1], [], []>} : vector<256x128xf32>, vector<128x128xf32>, vector<256x128xf32> -> vector<256x128xf32>
    %75 = arith.addf %69, %74 : vector<256x128xf32>
    %76 = vector.extract_strided_slice %38 {offsets = [2, 0, 0], sizes = [16, 16, 128], strides = [1, 1, 1]} : vector<18x18x128xf32> to vector<16x16x128xf32>
    %77 = vector.shape_cast %76 : vector<16x16x128xf32> to vector<256x128xf32>
    %c6 = arith.constant 6 : index
    %c0_35 = arith.constant 0 : index
    %c0_36 = arith.constant 0 : index
    %78 = vector.load %arg3[%c6, %c0_35, %c0_36] : memref<9x128x128xf32, #tpu.memory_space<vmem>>, vector<1x128x128xf32>
    %79 = vector.shape_cast %78 : vector<1x128x128xf32> to vector<128x128xf32>
    %cst_37 = arith.constant dense<0.000000e+00> : vector<256x128xf32>
    %80 = tpu.matmul %77, %79, %cst_37 {dimension_numbers = #tpu.dot_dimension_numbers<[1], [0], [0], [1], [0, 0, 1, 1], [], []>} : vector<256x128xf32>, vector<128x128xf32>, vector<256x128xf32> -> vector<256x128xf32>
    %81 = arith.addf %75, %80 : vector<256x128xf32>
    %82 = vector.extract_strided_slice %38 {offsets = [2, 1, 0], sizes = [16, 16, 128], strides = [1, 1, 1]} : vector<18x18x128xf32> to vector<16x16x128xf32>
    %83 = vector.shape_cast %82 : vector<16x16x128xf32> to vector<256x128xf32>
    %c7 = arith.constant 7 : index
    %c0_38 = arith.constant 0 : index
    %c0_39 = arith.constant 0 : index
    %84 = vector.load %arg3[%c7, %c0_38, %c0_39] : memref<9x128x128xf32, #tpu.memory_space<vmem>>, vector<1x128x128xf32>
    %85 = vector.shape_cast %84 : vector<1x128x128xf32> to vector<128x128xf32>
    %cst_40 = arith.constant dense<0.000000e+00> : vector<256x128xf32>
    %86 = tpu.matmul %83, %85, %cst_40 {dimension_numbers = #tpu.dot_dimension_numbers<[1], [0], [0], [1], [0, 0, 1, 1], [], []>} : vector<256x128xf32>, vector<128x128xf32>, vector<256x128xf32> -> vector<256x128xf32>
    %87 = arith.addf %81, %86 : vector<256x128xf32>
    %88 = vector.extract_strided_slice %38 {offsets = [2, 2, 0], sizes = [16, 16, 128], strides = [1, 1, 1]} : vector<18x18x128xf32> to vector<16x16x128xf32>
    %89 = vector.shape_cast %88 : vector<16x16x128xf32> to vector<256x128xf32>
    %c8 = arith.constant 8 : index
    %c0_41 = arith.constant 0 : index
    %c0_42 = arith.constant 0 : index
    %90 = vector.load %arg3[%c8, %c0_41, %c0_42] : memref<9x128x128xf32, #tpu.memory_space<vmem>>, vector<1x128x128xf32>
    %91 = vector.shape_cast %90 : vector<1x128x128xf32> to vector<128x128xf32>
    %cst_43 = arith.constant dense<0.000000e+00> : vector<256x128xf32>
    %92 = tpu.matmul %89, %91, %cst_43 {dimension_numbers = #tpu.dot_dimension_numbers<[1], [0], [0], [1], [0, 0, 1, 1], [], []>} : vector<256x128xf32>, vector<128x128xf32>, vector<256x128xf32> -> vector<256x128xf32>
    %93 = arith.addf %87, %92 : vector<256x128xf32>
    %c0_44 = arith.constant 0 : index
    %c0_45 = arith.constant 0 : index
    %c0_46 = arith.constant 0 : index
    %94 = vector.load %arg6[%c0_44, %c0_45, %c0_46] : memref<1x256x128xf32, #tpu.memory_space<vmem>>, vector<1x256x128xf32>
    %95 = vector.shape_cast %94 : vector<1x256x128xf32> to vector<256x128xf32>
    %96 = vector.shape_cast %93 : vector<256x128xf32> to vector<1x256x128xf32>
    tpu.vector_store %arg6[%c0_44, %c0_45, %c0_46], %96 {strides = array<i32>} : memref<1x256x128xf32, #tpu.memory_space<vmem>>, vector<1x256x128xf32>,
    %cst_47 = arith.constant dense<0.000000e+00> : vector<128xf32>
    %97 = vector.multi_reduction <add>, %93, %cst_47 [0] : vector<256x128xf32> to vector<128xf32>
    %98 = vector.shape_cast %97 : vector<128xf32> to vector<1x128xf32>
    %99 = arith.mulf %93, %93 : vector<256x128xf32>
    %cst_48 = arith.constant dense<0.000000e+00> : vector<128xf32>
    %100 = vector.multi_reduction <add>, %99, %cst_48 [0] : vector<256x128xf32> to vector<128xf32>
    %101 = vector.shape_cast %100 : vector<128xf32> to vector<1x128xf32>
    %102 = tpu.concatenate %98, %101 in 0 : vector<1x128xf32>, vector<1x128xf32> -> vector<2x128xf32>
    %c0_49 = arith.constant 0 : index
    %c0_50 = arith.constant 0 : index
    %c0_51 = arith.constant 0 : index
    %c0_52 = arith.constant 0 : index
    %103 = vector.load %arg7[%c0_49, %c0_50, %c0_51, %c0_52] : memref<1x1x2x128xf32, #tpu.memory_space<vmem>>, vector<1x1x2x128xf32>
    %104 = vector.shape_cast %103 : vector<1x1x2x128xf32> to vector<2x128xf32>
    %105 = vector.shape_cast %102 : vector<2x128xf32> to vector<1x1x2x128xf32>
    tpu.vector_store %arg7[%c0_49, %c0_50, %c0_51, %c0_52], %105 {strides = array<i32>} : memref<1x1x2x128xf32, #tpu.memory_space<vmem>>, vector<1x1x2x128xf32>,
    return
  }
  func.func @transform_1(%arg0: i32, %arg1: i32) -> (i32, i32, i32) {
    %c0_i32 = arith.constant 0 : i32
    %c0_i32_0 = arith.constant 0 : i32
    %c0_i32_1 = arith.constant 0 : i32
    %c0_i32_2 = arith.constant 0 : i32
    return %c0_i32, %c0_i32_0, %c0_i32_1 : i32, i32, i32
  }
  func.func @transform_2(%arg0: i32, %arg1: i32) -> (i32, i32) {
    %c0_i32 = arith.constant 0 : i32
    %c0_i32_0 = arith.constant 0 : i32
    %c0_i32_1 = arith.constant 0 : i32
    return %c0_i32, %c0_i32_0 : i32, i32
  }
  func.func @transform_3(%arg0: i32, %arg1: i32) -> (i32, i32) {
    %c0_i32 = arith.constant 0 : i32
    %c0_i32_0 = arith.constant 0 : i32
    %c0_i32_1 = arith.constant 0 : i32
    return %c0_i32, %c0_i32_0 : i32, i32
  }
  func.func @transform_4(%arg0: i32, %arg1: i32) -> (i32, i32, i32) {
    %c0_i32 = arith.constant 0 : i32
    %c0_i32_0 = arith.constant 0 : i32
    return %arg0, %arg1, %c0_i32 : i32, i32, i32
  }
  func.func @transform_5(%arg0: i32, %arg1: i32) -> (i32, i32, i32, i32) {
    %c0_i32 = arith.constant 0 : i32
    %c0_i32_0 = arith.constant 0 : i32
    %c0_i32_1 = arith.constant 0 : i32
    return %arg0, %arg1, %c0_i32, %c0_i32_0 : i32, i32, i32, i32
  }
}

module attributes {stable_mosaic.version = 11 : i64} {
  func.func @_bn_add_relu_kernel(%arg0: i32, %arg1: memref<512x128xf32, #tpu.memory_space<vmem>>, %arg2: memref<512x128xf32, #tpu.memory_space<vmem>>, %arg3: memref<1x128xf32, #tpu.memory_space<vmem>>, %arg4: memref<1x128xf32, #tpu.memory_space<vmem>>, %arg5: memref<512x128xf32, #tpu.memory_space<vmem>>) attributes {dimension_semantics = [#tpu.dimension_semantics<parallel>], iteration_bounds = array<i64: 1>, scalar_prefetch = 0 : i64, scratch_operands = 0 : i64, tpu.core_type = #tpu.core_type<tc>, window_params = [{transform_indices = @transform_0, window_bounds = array<i64: 512, 128>}, {transform_indices = @transform_1, window_bounds = array<i64: 512, 128>}, {pipeline_mode = #tpu.pipeline_mode<synchronous>, transform_indices = @transform_2, window_bounds = array<i64: 1, 128>}, {pipeline_mode = #tpu.pipeline_mode<synchronous>, transform_indices = @transform_3, window_bounds = array<i64: 1, 128>}, {transform_indices = @transform_4, window_bounds = array<i64: 512, 128>}]} {
    %c0 = arith.constant 0 : index
    %c0_0 = arith.constant 0 : index
    %0 = vector.load %arg1[%c0, %c0_0] : memref<512x128xf32, #tpu.memory_space<vmem>>, vector<512x128xf32>
    %c0_1 = arith.constant 0 : index
    %c0_2 = arith.constant 0 : index
    %1 = vector.load %arg3[%c0_1, %c0_2] : memref<1x128xf32, #tpu.memory_space<vmem>>, vector<1x128xf32>
    %2 = vector.broadcast %1 : vector<1x128xf32> to vector<512x128xf32>
    %3 = arith.mulf %0, %2 : vector<512x128xf32>
    %c0_3 = arith.constant 0 : index
    %c0_4 = arith.constant 0 : index
    %4 = vector.load %arg4[%c0_3, %c0_4] : memref<1x128xf32, #tpu.memory_space<vmem>>, vector<1x128xf32>
    %5 = vector.broadcast %4 : vector<1x128xf32> to vector<512x128xf32>
    %6 = arith.addf %3, %5 : vector<512x128xf32>
    %c0_5 = arith.constant 0 : index
    %c0_6 = arith.constant 0 : index
    %7 = vector.load %arg2[%c0_5, %c0_6] : memref<512x128xf32, #tpu.memory_space<vmem>>, vector<512x128xf32>
    %8 = arith.addf %6, %7 : vector<512x128xf32>
    %cst = arith.constant 0.000000e+00 : f32
    %9 = vector.broadcast %cst : f32 to vector<512x128xf32>
    %10 = arith.maximumf %8, %9 : vector<512x128xf32>
    %c0_7 = arith.constant 0 : index
    %c0_8 = arith.constant 0 : index
    %11 = vector.load %arg5[%c0_7, %c0_8] : memref<512x128xf32, #tpu.memory_space<vmem>>, vector<512x128xf32>
    tpu.vector_store %arg5[%c0_7, %c0_8], %10 {strides = array<i32>} : memref<512x128xf32, #tpu.memory_space<vmem>>, vector<512x128xf32>,
    return
  }
  func.func @transform_0(%arg0: i32) -> (i32, i32) {
    %c0_i32 = arith.constant 0 : i32
    %c0_i32_0 = arith.constant 0 : i32
    return %arg0, %c0_i32 : i32, i32
  }
  func.func @transform_1(%arg0: i32) -> (i32, i32) {
    %c0_i32 = arith.constant 0 : i32
    %c0_i32_0 = arith.constant 0 : i32
    return %arg0, %c0_i32 : i32, i32
  }
  func.func @transform_2(%arg0: i32) -> (i32, i32) {
    %c0_i32 = arith.constant 0 : i32
    %c0_i32_0 = arith.constant 0 : i32
    %c0_i32_1 = arith.constant 0 : i32
    return %c0_i32, %c0_i32_0 : i32, i32
  }
  func.func @transform_3(%arg0: i32) -> (i32, i32) {
    %c0_i32 = arith.constant 0 : i32
    %c0_i32_0 = arith.constant 0 : i32
    %c0_i32_1 = arith.constant 0 : i32
    return %c0_i32, %c0_i32_0 : i32, i32
  }
  func.func @transform_4(%arg0: i32) -> (i32, i32) {
    %c0_i32 = arith.constant 0 : i32
    %c0_i32_0 = arith.constant 0 : i32
    return %arg0, %c0_i32 : i32, i32
  }
}

module attributes {stable_mosaic.version = 11 : i64} {
  func.func @_bn_relu_conv1x1_stats_kernel(%arg0: i32, %arg1: memref<512x128xf32, #tpu.memory_space<vmem>>, %arg2: memref<128x128xf32, #tpu.memory_space<vmem>>, %arg3: memref<1x128xf32, #tpu.memory_space<vmem>>, %arg4: memref<1x128xf32, #tpu.memory_space<vmem>>, %arg5: memref<512x128xf32, #tpu.memory_space<vmem>>, %arg6: memref<1x2x128xf32, #tpu.memory_space<vmem>>) attributes {dimension_semantics = [#tpu.dimension_semantics<parallel>], iteration_bounds = array<i64: 1>, scalar_prefetch = 0 : i64, scratch_operands = 0 : i64, tpu.core_type = #tpu.core_type<tc>, window_params = [{transform_indices = @transform_0, window_bounds = array<i64: 512, 128>}, {pipeline_mode = #tpu.pipeline_mode<synchronous>, transform_indices = @transform_1, window_bounds = array<i64: 128, 128>}, {pipeline_mode = #tpu.pipeline_mode<synchronous>, transform_indices = @transform_2, window_bounds = array<i64: 1, 128>}, {pipeline_mode = #tpu.pipeline_mode<synchronous>, transform_indices = @transform_3, window_bounds = array<i64: 1, 128>}, {transform_indices = @transform_4, window_bounds = array<i64: 512, 128>}, {transform_indices = @transform_5, window_bounds = array<i64: 1, 2, 128>}]} {
    %c0 = arith.constant 0 : index
    %c0_0 = arith.constant 0 : index
    %0 = vector.load %arg1[%c0, %c0_0] : memref<512x128xf32, #tpu.memory_space<vmem>>, vector<512x128xf32>
    %c0_1 = arith.constant 0 : index
    %c0_2 = arith.constant 0 : index
    %1 = vector.load %arg3[%c0_1, %c0_2] : memref<1x128xf32, #tpu.memory_space<vmem>>, vector<1x128xf32>
    %2 = vector.broadcast %1 : vector<1x128xf32> to vector<512x128xf32>
    %3 = arith.mulf %0, %2 : vector<512x128xf32>
    %c0_3 = arith.constant 0 : index
    %c0_4 = arith.constant 0 : index
    %4 = vector.load %arg4[%c0_3, %c0_4] : memref<1x128xf32, #tpu.memory_space<vmem>>, vector<1x128xf32>
    %5 = vector.broadcast %4 : vector<1x128xf32> to vector<512x128xf32>
    %6 = arith.addf %3, %5 : vector<512x128xf32>
    %cst = arith.constant 0.000000e+00 : f32
    %7 = vector.broadcast %cst : f32 to vector<512x128xf32>
    %8 = arith.maximumf %6, %7 : vector<512x128xf32>
    %c0_5 = arith.constant 0 : index
    %c0_6 = arith.constant 0 : index
    %9 = vector.load %arg2[%c0_5, %c0_6] : memref<128x128xf32, #tpu.memory_space<vmem>>, vector<128x128xf32>
    %cst_7 = arith.constant dense<0.000000e+00> : vector<512x128xf32>
    %10 = tpu.matmul %8, %9, %cst_7 {dimension_numbers = #tpu.dot_dimension_numbers<[1], [0], [0], [1], [0, 0, 1, 1], [], []>} : vector<512x128xf32>, vector<128x128xf32>, vector<512x128xf32> -> vector<512x128xf32>
    %c0_8 = arith.constant 0 : index
    %c0_9 = arith.constant 0 : index
    %11 = vector.load %arg5[%c0_8, %c0_9] : memref<512x128xf32, #tpu.memory_space<vmem>>, vector<512x128xf32>
    tpu.vector_store %arg5[%c0_8, %c0_9], %10 {strides = array<i32>} : memref<512x128xf32, #tpu.memory_space<vmem>>, vector<512x128xf32>,
    %cst_10 = arith.constant dense<0.000000e+00> : vector<128xf32>
    %12 = vector.multi_reduction <add>, %10, %cst_10 [0] : vector<512x128xf32> to vector<128xf32>
    %13 = vector.shape_cast %12 : vector<128xf32> to vector<1x128xf32>
    %14 = arith.mulf %10, %10 : vector<512x128xf32>
    %cst_11 = arith.constant dense<0.000000e+00> : vector<128xf32>
    %15 = vector.multi_reduction <add>, %14, %cst_11 [0] : vector<512x128xf32> to vector<128xf32>
    %16 = vector.shape_cast %15 : vector<128xf32> to vector<1x128xf32>
    %17 = tpu.concatenate %13, %16 in 0 : vector<1x128xf32>, vector<1x128xf32> -> vector<2x128xf32>
    %c0_12 = arith.constant 0 : index
    %c0_13 = arith.constant 0 : index
    %c0_14 = arith.constant 0 : index
    %18 = vector.load %arg6[%c0_12, %c0_13, %c0_14] : memref<1x2x128xf32, #tpu.memory_space<vmem>>, vector<1x2x128xf32>
    %19 = vector.shape_cast %18 : vector<1x2x128xf32> to vector<2x128xf32>
    %20 = vector.shape_cast %17 : vector<2x128xf32> to vector<1x2x128xf32>
    tpu.vector_store %arg6[%c0_12, %c0_13, %c0_14], %20 {strides = array<i32>} : memref<1x2x128xf32, #tpu.memory_space<vmem>>, vector<1x2x128xf32>,
    return
  }
  func.func @transform_0(%arg0: i32) -> (i32, i32) {
    %c0_i32 = arith.constant 0 : i32
    %c0_i32_0 = arith.constant 0 : i32
    return %arg0, %c0_i32 : i32, i32
  }
  func.func @transform_1(%arg0: i32) -> (i32, i32) {
    %c0_i32 = arith.constant 0 : i32
    %c0_i32_0 = arith.constant 0 : i32
    %c0_i32_1 = arith.constant 0 : i32
    return %c0_i32, %c0_i32_0 : i32, i32
  }
  func.func @transform_2(%arg0: i32) -> (i32, i32) {
    %c0_i32 = arith.constant 0 : i32
    %c0_i32_0 = arith.constant 0 : i32
    %c0_i32_1 = arith.constant 0 : i32
    return %c0_i32, %c0_i32_0 : i32, i32
  }
  func.func @transform_3(%arg0: i32) -> (i32, i32) {
    %c0_i32 = arith.constant 0 : i32
    %c0_i32_0 = arith.constant 0 : i32
    %c0_i32_1 = arith.constant 0 : i32
    return %c0_i32, %c0_i32_0 : i32, i32
  }
  func.func @transform_4(%arg0: i32) -> (i32, i32) {
    %c0_i32 = arith.constant 0 : i32
    %c0_i32_0 = arith.constant 0 : i32
    return %arg0, %c0_i32 : i32, i32
  }
  func.func @transform_5(%arg0: i32) -> (i32, i32, i32) {
    %c0_i32 = arith.constant 0 : i32
    %c0_i32_0 = arith.constant 0 : i32
    %c0_i32_1 = arith.constant 0 : i32
    return %arg0, %c0_i32, %c0_i32_0 : i32, i32, i32
  }
}

</mosaic_0001>

<bundles_post_ra>
// kernel: bottleneck_pallas.4
= control target key start
LH: loop header
LB: loop body
LE: loop exit
PB: predicated region body
PF: predicated region fallthrough
CT: control target
= control target key end

     0   :  { %vm744_vm0 = vcmask 1040384   ;;  %s1658_s1 = inlined_call_operand.vmem [shape: f32[128,128], index: 1, kind: input, shape index: {}]   ;;  %s1659_s0 = inlined_call_operand.vmem [shape: f32[512,128], index: 0, kind: input, shape index: {}]   ;;  %s1660_s2 = inlined_call_operand.vmem [shape: f32[512,128], index: 2, kind: output, shape index: {0}]   ;;  %s1661_s3 = inlined_call_operand.vmem [shape: f32[1,2,128], index: 3, kind: output, shape index: {1}]  }
   0x1   :  { %v77_v0 = vld [vmem:[%s1658_s1] sm:$0xff]  ;;  %v78_v1 = vld [vmem:[%s1658_s1 + $0x8] sm:$0xff]  ;;  %v79_v2 = vld [vmem:[%s1658_s1 + $0x10] sm:$0xff] }
   0x2   :  { %v963_v3 = vpack.c.bf16 %v78_v1, %v77_v0  ;;  %v80_v4 = vld [vmem:[%s1658_s1 + $0x18] sm:$0xff]  ;;  %v81_v6 = vld [vmem:[%s1658_s1 + $0x20] sm:$0xff]  ;;  %v82_v7 = vld [vmem:[%s1658_s1 + $0x28] sm:$0xff] }
   0x3   :  { %v967_v5 = vpack.c.bf16 %v80_v4, %v79_v2  ;;  %v971_v8 = vpack.c.bf16 %v82_v7, %v81_v6  ;;  %v13_v9 = vld [vmem:[%s1659_s0] sm:$0xff]  ;;  %v83_v10 = vld [vmem:[%s1658_s1 + $0x30] sm:$0xff]  ;;  %v84_v11 = vld [vmem:[%s1658_s1 + $0x38] sm:$0xff] }
   0x4   :  { %964 = vmatprep.subr.bf16.mxu0 %v963_v3  ;;  %995 = vmatprep.subr.bf16.mxu1 %v963_v3  ;;  %v975_v12 = vpack.c.bf16 %v84_v11, %v83_v10  ;;  %v85_v13 = vld [vmem:[%s1658_s1 + $0x40] sm:$0xff]  ;;  %v86_v14 = vld [vmem:[%s1658_s1 + $0x48] sm:$0xff]  ;;  %v87_v16 = vld [vmem:[%s1658_s1 + $0x50] sm:$0xff] }
   0x5   :  { %966 = vmatpush3.bf16.msra.mxu0 %v963_v3  ;;  %1003 = vmatpush3.bf16.msra.mxu1 %v963_v3  ;;  %v979_v15 = vpack.c.bf16 %v86_v14, %v85_v13  ;;  %v88_v17 = vld [vmem:[%s1658_s1 + $0x58] sm:$0xff]  ;;  %v45_v18 = vld [vmem:[%s1659_s0 + $0x100] sm:$0xff]  ;;  %v90_v21 = vld [vmem:[%s1658_s1 + $0x68] sm:$0xff] }
   0x6   :  { %968 = vmatprep.subr.bf16.mxu0 %v967_v5  ;;  %996 = vmatprep.subr.bf16.mxu1 %v967_v5  ;;  %v983_v19 = vpack.c.bf16 %v88_v17, %v87_v16  ;;  %v89_v20 = vld [vmem:[%s1658_s1 + $0x60] sm:$0xff]  ;;  %v91_v23 = vld [vmem:[%s1658_s1 + $0x70] sm:$0xff]  ;;  %v92_v24 = vld [vmem:[%s1658_s1 + $0x78] sm:$0xff] }
   0x7   :  { %867 = vmatprep.mubr.f32.mxu0 %v13_v9  ;;  %915 = vmatprep.mubr.f32.mxu1 %v45_v18  ;;  %v987_v22 = vpack.c.bf16 %v90_v21, %v89_v20  ;;  %v991_v25 = vpack.c.bf16 %v92_v24, %v91_v23  ;;  %v14_v26 = vld [vmem:[%s1659_s0 + $0x8] sm:$0xff]  ;;  %v15_v28 = vld [vmem:[%s1659_s0 + $0x10] sm:$0xff]  ;;  %v16_v30 = vld [vmem:[%s1659_s0 + $0x18] sm:$0xff] }
   0x8   :  { %v46_v27 = vld [vmem:[%s1659_s0 + $0x108] sm:$0xff]  ;;  %v47_v29 = vld [vmem:[%s1659_s0 + $0x110] sm:$0xff]  ;;  %v48_v31 = vld [vmem:[%s1659_s0 + $0x118] sm:$0xff] }
   0x9   :  { %970 = vmatpush3.bf16.msra.mxu0 %v967_v5  ;;  %1004 = vmatpush3.bf16.msra.mxu1 %v967_v5  ;;  %v17_v32 = vld [vmem:[%s1659_s0 + $0x20] sm:$0xff]  ;;  %v18_v34 = vld [vmem:[%s1659_s0 + $0x28] sm:$0xff]  ;;  %v19_v36 = vld [vmem:[%s1659_s0 + $0x30] sm:$0xff] }
   0xa   :  { %972 = vmatprep.subr.bf16.mxu0 %v971_v8  ;;  %997 = vmatprep.subr.bf16.mxu1 %v971_v8  ;;  %v49_v33 = vld [vmem:[%s1659_s0 + $0x120] sm:$0xff]  ;;  %v50_v35 = vld [vmem:[%s1659_s0 + $0x128] sm:$0xff]  ;;  %v51_v37 = vld [vmem:[%s1659_s0 + $0x130] sm:$0xff] }
   0xb   :  { %v20_v38 = vld [vmem:[%s1659_s0 + $0x38] sm:$0xff]  ;;  %v21_v40 = vld [vmem:[%s1659_s0 + $0x40] sm:$0xff]  ;;  %v22_v42 = vld [vmem:[%s1659_s0 + $0x48] sm:$0xff] }
   0xc   :  { %v52_v39 = vld [vmem:[%s1659_s0 + $0x138] sm:$0xff]  ;;  %v53_v41 = vld [vmem:[%s1659_s0 + $0x140] sm:$0xff]  ;;  %v54_v43 = vld [vmem:[%s1659_s0 + $0x148] sm:$0xff] }
   0xd   :  { %974 = vmatpush3.bf16.msra.mxu0 %v971_v8  ;;  %1005 = vmatpush3.bf16.msra.mxu1 %v971_v8  ;;  %v23_v44 = vld [vmem:[%s1659_s0 + $0x50] sm:$0xff]  ;;  %v24_v46 = vld [vmem:[%s1659_s0 + $0x58] sm:$0xff]  ;;  %v25_v48 = vld [vmem:[%s1659_s0 + $0x60] sm:$0xff] }
   0xe   :  { %976 = vmatprep.subr.bf16.mxu0 %v975_v12  ;;  %998 = vmatprep.subr.bf16.mxu1 %v975_v12  ;;  %v55_v45 = vld [vmem:[%s1659_s0 + $0x150] sm:$0xff]  ;;  %v56_v47 = vld [vmem:[%s1659_s0 + $0x158] sm:$0xff]  ;;  %v57_v49 = vld [vmem:[%s1659_s0 + $0x160] sm:$0xff] }
   0xf   :  { %v26_v50 = vld [vmem:[%s1659_s0 + $0x68] sm:$0xff]  ;;  %v27_v52 = vld [vmem:[%s1659_s0 + $0x70] sm:$0xff]  ;;  %v28_v54 = vld [vmem:[%s1659_s0 + $0x78] sm:$0xff] }
  0x10   :  { %v58_v51 = vld [vmem:[%s1659_s0 + $0x168] sm:$0xff]  ;;  %v59_v53 = vld [vmem:[%s1659_s0 + $0x170] sm:$0xff]  ;;  %v60_v55 = vld [vmem:[%s1659_s0 + $0x178] sm:$0xff] }
  0x11   :  { %978 = vmatpush3.bf16.msra.mxu0 %v975_v12  ;;  %1006 = vmatpush3.bf16.msra.mxu1 %v975_v12  ;;  %v29_v56 = vld [vmem:[%s1659_s0 + $0x80] sm:$0xff]  ;;  %v30_v58 = vld [vmem:[%s1659_s0 + $0x88] sm:$0xff]  ;;  %v31_v60 = vld [vmem:[%s1659_s0 + $0x90] sm:$0xff] }
  0x12   :  { %980 = vmatprep.subr.bf16.mxu0 %v979_v15  ;;  %999 = vmatprep.subr.bf16.mxu1 %v979_v15  ;;  %v61_v57 = vld [vmem:[%s1659_s0 + $0x180] sm:$0xff]  ;;  %v62_v59 = vld [vmem:[%s1659_s0 + $0x188] sm:$0xff]  ;;  %v63_v61 = vld [vmem:[%s1659_s0 + $0x190] sm:$0xff] }
  0x13   :  { %v32_v62 = vld [vmem:[%s1659_s0 + $0x98] sm:$0xff]  ;;  %v33_v0 = vld [vmem:[%s1659_s0 + $0xa0] sm:$0xff]  ;;  %v34_v2 = vld [vmem:[%s1659_s0 + $0xa8] sm:$0xff] }
  0x14   :  { %v64_v63 = vld [vmem:[%s1659_s0 + $0x198] sm:$0xff]  ;;  %v65_v1 = vld [vmem:[%s1659_s0 + $0x1a0] sm:$0xff]  ;;  %v66_v3 = vld [vmem:[%s1659_s0 + $0x1a8] sm:$0xff] }
  0x15   :  { %982 = vmatpush3.bf16.msra.mxu0 %v979_v15  ;;  %1007 = vmatpush3.bf16.msra.mxu1 %v979_v15  ;;  %v35_v4 = vld [vmem:[%s1659_s0 + $0xb0] sm:$0xff]  ;;  %v36_v6 = vld [vmem:[%s1659_s0 + $0xb8] sm:$0xff]  ;;  %v37_v8 = vld [vmem:[%s1659_s0 + $0xc0] sm:$0xff] }
  0x16   :  { %984 = vmatprep.subr.bf16.mxu0 %v983_v19  ;;  %1000 = vmatprep.subr.bf16.mxu1 %v983_v19  ;;  %v67_v5 = vld [vmem:[%s1659_s0 + $0x1b0] sm:$0xff]  ;;  %v68_v7 = vld [vmem:[%s1659_s0 + $0x1b8] sm:$0xff]  ;;  %v69_v9 = vld [vmem:[%s1659_s0 + $0x1c0] sm:$0xff] }
  0x17   :  { %v38_v10 = vld [vmem:[%s1659_s0 + $0xc8] sm:$0xff]  ;;  %v39_v12 = vld [vmem:[%s1659_s0 + $0xd0] sm:$0xff]  ;;  %v40_v14 = vld [vmem:[%s1659_s0 + $0xd8] sm:$0xff] }
  0x18   :  { %v70_v11 = vld [vmem:[%s1659_s0 + $0x1c8] sm:$0xff]  ;;  %v71_v13 = vld [vmem:[%s1659_s0 + $0x1d0] sm:$0xff]  ;;  %v72_v15 = vld [vmem:[%s1659_s0 + $0x1d8] sm:$0xff] }
  0x19   :  { %986 = vmatpush3.bf16.msra.mxu0 %v983_v19  ;;  %1008 = vmatpush3.bf16.msra.mxu1 %v983_v19  ;;  %v41_v16 = vld [vmem:[%s1659_s0 + $0xe0] sm:$0xff]  ;;  %v42_v18 = vld [vmem:[%s1659_s0 + $0xe8] sm:$0xff]  ;;  %v43_v20 = vld [vmem:[%s1659_s0 + $0xf0] sm:$0xff] }
  0x1a   :  { %988 = vmatprep.subr.bf16.mxu0 %v987_v22  ;;  %1001 = vmatprep.subr.bf16.mxu1 %v987_v22  ;;  %v73_v17 = vld [vmem:[%s1659_s0 + $0x1e0] sm:$0xff]  ;;  %v74_v19 = vld [vmem:[%s1659_s0 + $0x1e8] sm:$0xff]  ;;  %v75_v21 = vld [vmem:[%s1659_s0 + $0x1f0] sm:$0xff] }
  0x1b   :  { %v76_v23 = vld [vmem:[%s1659_s0 + $0x1f8] sm:$0xff] }
  0x1d   :  { %990 = vmatpush3.bf16.msra.mxu0 %v987_v22  ;;  %1009 = vmatpush3.bf16.msra.mxu1 %v987_v22  ;;  %v44_v22 = vld [vmem:[%s1659_s0 + $0xf8] sm:$0xff] }
  0x1e   :  { %992 = vmatprep.subr.bf16.mxu0 %v991_v25  ;;  %1002 = vmatprep.subr.bf16.mxu1 %v991_v25 }
  0x21   :  { %994 = vmatpush3.bf16.msra.mxu0 %v991_v25  ;;  %1010 = vmatpush3.bf16.msra.mxu1 %v991_v25 }
  0x24   :  { %868 = vmatmul.mubr.f32.vlgmr.msra.gmra.mrb[0].mxu0 %v14_v26  ;;  %916 = vmatmul.mubr.f32.vlgmr.msra.gmra.mrb[0].mxu1 %v46_v27 }
  0x25   :  { %870 = vmatprep.mubr.f32.mxu0 %v15_v28  ;;  %918 = vmatprep.mubr.f32.mxu1 %v47_v29 }
  0x28   :  { %871 = vmatmul.mubr.f32.gmra.mrb[2].mxu0 %v16_v30  ;;  %919 = vmatmul.mubr.f32.gmra.mrb[2].mxu1 %v48_v31 }
  0x29   :  { %873 = vmatprep.mubr.f32.mxu0 %v17_v32  ;;  %921 = vmatprep.mubr.f32.mxu1 %v49_v33 }
  0x2c   :  { %874 = vmatmul.mubr.f32.gmra.mrb[4].mxu0 %v18_v34  ;;  %922 = vmatmul.mubr.f32.gmra.mrb[4].mxu1 %v50_v35 }
  0x2d   :  { %876 = vmatprep.mubr.f32.mxu0 %v19_v36  ;;  %924 = vmatprep.mubr.f32.mxu1 %v51_v37 }
  0x30   :  { %877 = vmatmul.mubr.f32.gmra.mrb[6].mxu0 %v20_v38  ;;  %925 = vmatmul.mubr.f32.gmra.mrb[6].mxu1 %v52_v39 }
  0x31   :  { %879 = vmatprep.mubr.f32.mxu0 %v21_v40  ;;  %927 = vmatprep.mubr.f32.mxu1 %v53_v41 }
  0x34   :  { %880 = vmatmul.mubr.f32.gmra.mrb[8].mxu0 %v22_v42  ;;  %928 = vmatmul.mubr.f32.gmra.mrb[8].mxu1 %v54_v43 }
  0x35   :  { %882 = vmatprep.mubr.f32.mxu0 %v23_v44  ;;  %930 = vmatprep.mubr.f32.mxu1 %v55_v45 }
  0x38   :  { %883 = vmatmul.mubr.f32.gmra.mrb[10].mxu0 %v24_v46  ;;  %931 = vmatmul.mubr.f32.gmra.mrb[10].mxu1 %v56_v47 }
  0x39   :  { %885 = vmatprep.mubr.f32.mxu0 %v25_v48  ;;  %933 = vmatprep.mubr.f32.mxu1 %v57_v49 }
  0x3c   :  { %886 = vmatmul.mubr.f32.gmra.mrb[12].mxu0 %v26_v50  ;;  %934 = vmatmul.mubr.f32.gmra.mrb[12].mxu1 %v58_v51 }
  0x3d   :  { %888 = vmatprep.mubr.f32.mxu0 %v27_v52  ;;  %936 = vmatprep.mubr.f32.mxu1 %v59_v53 }
  0x40   :  { %889 = vmatmul.mubr.f32.gmra.mrb[14].mxu0 %v28_v54  ;;  %937 = vmatmul.mubr.f32.gmra.mrb[14].mxu1 %v60_v55 }
  0x41   :  { %891 = vmatprep.mubr.f32.mxu0 %v29_v56  ;;  %939 = vmatprep.mubr.f32.mxu1 %v61_v57 }
  0x44   :  { %892 = vmatmul.mubr.f32.gmra.mrb[16].mxu0 %v30_v58  ;;  %940 = vmatmul.mubr.f32.gmra.mrb[16].mxu1 %v62_v59 }
  0x45   :  { %894 = vmatprep.mubr.f32.mxu0 %v31_v60  ;;  %942 = vmatprep.mubr.f32.mxu1 %v63_v61 }
  0x48   :  { %895 = vmatmul.mubr.f32.gmra.mrb[18].mxu0 %v32_v62  ;;  %943 = vmatmul.mubr.f32.gmra.mrb[18].mxu1 %v64_v63 }
  0x49   :  { %897 = vmatprep.mubr.f32.mxu0 %v33_v0  ;;  %945 = vmatprep.mubr.f32.mxu1 %v65_v1 }
  0x4c   :  { %898 = vmatmul.mubr.f32.gmra.mrb[20].mxu0 %v34_v2  ;;  %946 = vmatmul.mubr.f32.gmra.mrb[20].mxu1 %v66_v3 }
  0x4d   :  { %900 = vmatprep.mubr.f32.mxu0 %v35_v4  ;;  %948 = vmatprep.mubr.f32.mxu1 %v67_v5 }
  0x50   :  { %901 = vmatmul.mubr.f32.gmra.mrb[22].mxu0 %v36_v6  ;;  %949 = vmatmul.mubr.f32.gmra.mrb[22].mxu1 %v68_v7 }
  0x51   :  { %903 = vmatprep.mubr.f32.mxu0 %v37_v8  ;;  %951 = vmatprep.mubr.f32.mxu1 %v69_v9 }
  0x54   :  { %904 = vmatmul.mubr.f32.gmra.mrb[24].mxu0 %v38_v10  ;;  %952 = vmatmul.mubr.f32.gmra.mrb[24].mxu1 %v70_v11 }
  0x55   :  { %906 = vmatprep.mubr.f32.mxu0 %v39_v12  ;;  %954 = vmatprep.mubr.f32.mxu1 %v71_v13 }
  0x58   :  { %907 = vmatmul.mubr.f32.gmra.mrb[26].mxu0 %v40_v14  ;;  %955 = vmatmul.mubr.f32.gmra.mrb[26].mxu1 %v72_v15 }
  0x59   :  { %909 = vmatprep.mubr.f32.mxu0 %v41_v16  ;;  %957 = vmatprep.mubr.f32.mxu1 %v73_v17 }
  0x5c   :  { %910 = vmatmul.mubr.f32.gmra.mrb[28].mxu0 %v42_v18  ;;  %958 = vmatmul.mubr.f32.gmra.mrb[28].mxu1 %v74_v19 }
  0x5d   :  { %912 = vmatprep.mubr.f32.mxu0 %v43_v20  ;;  %960 = vmatprep.mubr.f32.mxu1 %v75_v21 }
  0x60   :  { %913 = vmatmul.mubr.f32.gmra.mrb[30].mxu0 %v44_v22  ;;  %961 = vmatmul.mubr.f32.gmra.mrb[30].mxu1 %v76_v23 }
  0xf7   :  { %v869_v24 = vpop.f32.mrb[0].mxu0  ;;  %v1271_v25 = vpop.f32.mrb[0].mxu1 }
  0xf8   :  { %479 = vst [vmem:[%s1660_s2 + $0x8] sm:$0xff] %v869_v24  ;;  %v612_v26 = vmul.f32 %v869_v24, %v869_v24  ;;  %v159_v27 = vpop.f32.mrb[1].mxu0  ;;  %511 = vst [vmem:[%s1660_s2 + $0x108] sm:$0xff] %v1271_v25  ;;  %v1280_v28 = vpop.f32.mrb[1].mxu1 }
  0xf9   :  { %478 = vst [vmem:[%s1660_s2] sm:$0xff] %v159_v27  ;;  %v542_v29 = vadd.f32 %v869_v24, %v159_v27  ;;  %v611_v30 = vmul.f32 %v159_v27, %v159_v27  ;;  %510 = vst [vmem:[%s1660_s2 + $0x100] sm:$0xff] %v1280_v28 }
  0xfb   :  { %v675_v31 = vadd.f32 %v612_v26, %v611_v30  ;;  %v872_v32 = vpop.f32.mrb[2].mxu0  ;;  %v1289_v33 = vpop.f32.mrb[2].mxu1 }
  0xfc   :  { %481 = vst [vmem:[%s1660_s2 + $0x18] sm:$0xff] %v872_v32  ;;  %v169_v34 = vpop.f32.mrb[3].mxu0  ;;  %513 = vst [vmem:[%s1660_s2 + $0x118] sm:$0xff] %v1289_v33  ;;  %v1298_v35 = vpop.f32.mrb[3].mxu1  ;;  %v614_v38 = vmul.f32 %v872_v32, %v872_v32 }
  0xfd   :  { %480 = vst [vmem:[%s1660_s2 + $0x10] sm:$0xff] %v169_v34  ;;  %v543_v36 = vadd.f32 %v542_v29, %v169_v34  ;;  %v613_v37 = vmul.f32 %v169_v34, %v169_v34  ;;  %512 = vst [vmem:[%s1660_s2 + $0x110] sm:$0xff] %v1298_v35 }
  0xff   :  { %v676_v39 = vadd.f32 %v675_v31, %v613_v37  ;;  %v875_v40 = vpop.f32.mrb[4].mxu0  ;;  %v544_v41 = vadd.f32 %v872_v32, %v543_v36  ;;  %v1307_v42 = vpop.f32.mrb[4].mxu1 }
 0x100   :  { %483 = vst [vmem:[%s1660_s2 + $0x28] sm:$0xff] %v875_v40  ;;  %v179_v43 = vpop.f32.mrb[5].mxu0  ;;  %515 = vst [vmem:[%s1660_s2 + $0x128] sm:$0xff] %v1307_v42  ;;  %v1316_v44 = vpop.f32.mrb[5].mxu1  ;;  %v616_v48 = vmul.f32 %v875_v40, %v875_v40 }
 0x101   :  { %482 = vst [vmem:[%s1660_s2 + $0x20] sm:$0xff] %v179_v43  ;;  %v545_v45 = vadd.f32 %v544_v41, %v179_v43  ;;  %v615_v46 = vmul.f32 %v179_v43, %v179_v43  ;;  %v677_v47 = vadd.f32 %v676_v39, %v614_v38  ;;  %514 = vst [vmem:[%s1660_s2 + $0x120] sm:$0xff] %v1316_v44 }
 0x103   :  { %v678_v49 = vadd.f32 %v677_v47, %v615_v46  ;;  %v878_v50 = vpop.f32.mrb[6].mxu0  ;;  %v546_v51 = vadd.f32 %v875_v40, %v545_v45  ;;  %v1325_v52 = vpop.f32.mrb[6].mxu1 }
 0x104   :  { %485 = vst [vmem:[%s1660_s2 + $0x38] sm:$0xff] %v878_v50  ;;  %v189_v53 = vpop.f32.mrb[7].mxu0  ;;  %517 = vst [vmem:[%s1660_s2 + $0x138] sm:$0xff] %v1325_v52  ;;  %v1334_v54 = vpop.f32.mrb[7].mxu1  ;;  %v618_v58 = vmul.f32 %v878_v50, %v878_v50 }
 0x105   :  { %484 = vst [vmem:[%s1660_s2 + $0x30] sm:$0xff] %v189_v53  ;;  %v547_v55 = vadd.f32 %v546_v51, %v189_v53  ;;  %v617_v56 = vmul.f32 %v189_v53, %v189_v53  ;;  %v679_v57 = vadd.f32 %v678_v49, %v616_v48  ;;  %516 = vst [vmem:[%s1660_s2 + $0x130] sm:$0xff] %v1334_v54 }
 0x107   :  { %v680_v59 = vadd.f32 %v679_v57, %v617_v56  ;;  %v881_v60 = vpop.f32.mrb[8].mxu0  ;;  %v548_v61 = vadd.f32 %v878_v50, %v547_v55  ;;  %v1343_v62 = vpop.f32.mrb[8].mxu1 }
 0x108   :  { %487 = vst [vmem:[%s1660_s2 + $0x48] sm:$0xff] %v881_v60  ;;  %v199_v63 = vpop.f32.mrb[9].mxu0  ;;  %519 = vst [vmem:[%s1660_s2 + $0x148] sm:$0xff] %v1343_v62  ;;  %v1352_v0 = vpop.f32.mrb[9].mxu1  ;;  %v620_v4 = vmul.f32 %v881_v60, %v881_v60 }
 0x109   :  { %486 = vst [vmem:[%s1660_s2 + $0x40] sm:$0xff] %v199_v63  ;;  %v549_v1 = vadd.f32 %v548_v61, %v199_v63  ;;  %v619_v2 = vmul.f32 %v199_v63, %v199_v63  ;;  %v681_v3 = vadd.f32 %v680_v59, %v618_v58  ;;  %518 = vst [vmem:[%s1660_s2 + $0x140] sm:$0xff] %v1352_v0 }
 0x10b   :  { %v682_v5 = vadd.f32 %v681_v3, %v619_v2  ;;  %v884_v6 = vpop.f32.mrb[10].mxu0  ;;  %v550_v7 = vadd.f32 %v881_v60, %v549_v1  ;;  %v1361_v8 = vpop.f32.mrb[10].mxu1 }
 0x10c   :  { %489 = vst [vmem:[%s1660_s2 + $0x58] sm:$0xff] %v884_v6  ;;  %v209_v9 = vpop.f32.mrb[11].mxu0  ;;  %521 = vst [vmem:[%s1660_s2 + $0x158] sm:$0xff] %v1361_v8  ;;  %v1370_v10 = vpop.f32.mrb[11].mxu1  ;;  %v622_v14 = vmul.f32 %v884_v6, %v884_v6 }
 0x10d   :  { %488 = vst [vmem:[%s1660_s2 + $0x50] sm:$0xff] %v209_v9  ;;  %v551_v11 = vadd.f32 %v550_v7, %v209_v9  ;;  %v621_v12 = vmul.f32 %v209_v9, %v209_v9  ;;  %v683_v13 = vadd.f32 %v682_v5, %v620_v4  ;;  %520 = vst [vmem:[%s1660_s2 + $0x150] sm:$0xff] %v1370_v10 }
 0x10f   :  { %v684_v15 = vadd.f32 %v683_v13, %v621_v12  ;;  %v887_v16 = vpop.f32.mrb[12].mxu0  ;;  %v552_v17 = vadd.f32 %v884_v6, %v551_v11  ;;  %v1379_v18 = vpop.f32.mrb[12].mxu1 }
 0x110   :  { %491 = vst [vmem:[%s1660_s2 + $0x68] sm:$0xff] %v887_v16  ;;  %v219_v19 = vpop.f32.mrb[13].mxu0  ;;  %523 = vst [vmem:[%s1660_s2 + $0x168] sm:$0xff] %v1379_v18  ;;  %v1388_v20 = vpop.f32.mrb[13].mxu1  ;;  %v624_v24 = vmul.f32 %v887_v16, %v887_v16 }
 0x111   :  { %490 = vst [vmem:[%s1660_s2 + $0x60] sm:$0xff] %v219_v19  ;;  %v553_v21 = vadd.f32 %v552_v17, %v219_v19  ;;  %v623_v22 = vmul.f32 %v219_v19, %v219_v19  ;;  %v685_v23 = vadd.f32 %v684_v15, %v622_v14  ;;  %522 = vst [vmem:[%s1660_s2 + $0x160] sm:$0xff] %v1388_v20 }
 0x113   :  { %v686_v26 = vadd.f32 %v685_v23, %v623_v22  ;;  %v890_v27 = vpop.f32.mrb[14].mxu0  ;;  %v554_v29 = vadd.f32 %v887_v16, %v553_v21  ;;  %v1397_v30 = vpop.f32.mrb[14].mxu1 }
 0x114   :  { %493 = vst [vmem:[%s1660_s2 + $0x78] sm:$0xff] %v890_v27  ;;  %v229_v31 = vpop.f32.mrb[15].mxu0  ;;  %525 = vst [vmem:[%s1660_s2 + $0x178] sm:$0xff] %v1397_v30  ;;  %v1406_v32 = vpop.f32.mrb[15].mxu1  ;;  %v626_v38 = vmul.f32 %v890_v27, %v890_v27 }
 0x115   :  { %492 = vst [vmem:[%s1660_s2 + $0x70] sm:$0xff] %v229_v31  ;;  %v555_v34 = vadd.f32 %v554_v29, %v229_v31  ;;  %v625_v36 = vmul.f32 %v229_v31, %v229_v31  ;;  %v687_v37 = vadd.f32 %v686_v26, %v624_v24  ;;  %524 = vst [vmem:[%s1660_s2 + $0x170] sm:$0xff] %v1406_v32 }
 0x117   :  { %v688_v39 = vadd.f32 %v687_v37, %v625_v36  ;;  %v893_v40 = vpop.f32.mrb[16].mxu0  ;;  %v556_v41 = vadd.f32 %v890_v27, %v555_v34  ;;  %v1415_v43 = vpop.f32.mrb[16].mxu1 }
 0x118   :  { %495 = vst [vmem:[%s1660_s2 + $0x88] sm:$0xff] %v893_v40  ;;  %v239_v45 = vpop.f32.mrb[17].mxu0  ;;  %527 = vst [vmem:[%s1660_s2 + $0x188] sm:$0xff] %v1415_v43  ;;  %v1424_v46 = vpop.f32.mrb[17].mxu1  ;;  %v628_v50 = vmul.f32 %v893_v40, %v893_v40 }
 0x119   :  { %494 = vst [vmem:[%s1660_s2 + $0x80] sm:$0xff] %v239_v45  ;;  %v557_v47 = vadd.f32 %v556_v41, %v239_v45  ;;  %v627_v48 = vmul.f32 %v239_v45, %v239_v45  ;;  %v689_v49 = vadd.f32 %v688_v39, %v626_v38  ;;  %526 = vst [vmem:[%s1660_s2 + $0x180] sm:$0xff] %v1424_v46 }
 0x11b   :  { %v690_v51 = vadd.f32 %v689_v49, %v627_v48  ;;  %v896_v53 = vpop.f32.mrb[18].mxu0  ;;  %v558_v55 = vadd.f32 %v893_v40, %v557_v47  ;;  %v1433_v56 = vpop.f32.mrb[18].mxu1 }
 0x11c   :  { %497 = vst [vmem:[%s1660_s2 + $0x98] sm:$0xff] %v896_v53  ;;  %v249_v57 = vpop.f32.mrb[19].mxu0  ;;  %529 = vst [vmem:[%s1660_s2 + $0x198] sm:$0xff] %v1433_v56  ;;  %v1442_v58 = vpop.f32.mrb[19].mxu1  ;;  %v630_v63 = vmul.f32 %v896_v53, %v896_v53 }
 0x11d   :  { %496 = vst [vmem:[%s1660_s2 + $0x90] sm:$0xff] %v249_v57  ;;  %v559_v59 = vadd.f32 %v558_v55, %v249_v57  ;;  %v629_v60 = vmul.f32 %v249_v57, %v249_v57  ;;  %v691_v61 = vadd.f32 %v690_v51, %v628_v50  ;;  %528 = vst [vmem:[%s1660_s2 + $0x190] sm:$0xff] %v1442_v58 }
 0x11f   :  { %v692_v1 = vadd.f32 %v691_v61, %v629_v60  ;;  %v899_v2 = vpop.f32.mrb[20].mxu0  ;;  %v560_v3 = vadd.f32 %v896_v53, %v559_v59  ;;  %v1451_v4 = vpop.f32.mrb[20].mxu1 }
 0x120   :  { %499 = vst [vmem:[%s1660_s2 + $0xa8] sm:$0xff] %v899_v2  ;;  %v259_v5 = vpop.f32.mrb[21].mxu0  ;;  %531 = vst [vmem:[%s1660_s2 + $0x1a8] sm:$0xff] %v1451_v4  ;;  %v1460_v6 = vpop.f32.mrb[21].mxu1  ;;  %v632_v12 = vmul.f32 %v899_v2, %v899_v2 }
 0x121   :  { %498 = vst [vmem:[%s1660_s2 + $0xa0] sm:$0xff] %v259_v5  ;;  %v561_v7 = vadd.f32 %v560_v3, %v259_v5  ;;  %v631_v9 = vmul.f32 %v259_v5, %v259_v5  ;;  %v693_v11 = vadd.f32 %v692_v1, %v630_v63  ;;  %530 = vst [vmem:[%s1660_s2 + $0x1a0] sm:$0xff] %v1460_v6 }
 0x123   :  { %v694_v13 = vadd.f32 %v693_v11, %v631_v9  ;;  %v902_v14 = vpop.f32.mrb[22].mxu0  ;;  %v562_v15 = vadd.f32 %v899_v2, %v561_v7  ;;  %v1469_v16 = vpop.f32.mrb[22].mxu1 }
 0x124   :  { %501 = vst [vmem:[%s1660_s2 + $0xb8] sm:$0xff] %v902_v14  ;;  %v269_v17 = vpop.f32.mrb[23].mxu0  ;;  %533 = vst [vmem:[%s1660_s2 + $0x1b8] sm:$0xff] %v1469_v16  ;;  %v1478_v19 = vpop.f32.mrb[23].mxu1  ;;  %v634_v24 = vmul.f32 %v902_v14, %v902_v14 }
 0x125   :  { %500 = vst [vmem:[%s1660_s2 + $0xb0] sm:$0xff] %v269_v17  ;;  %v563_v21 = vadd.f32 %v562_v15, %v269_v17  ;;  %v633_v22 = vmul.f32 %v269_v17, %v269_v17  ;;  %v695_v23 = vadd.f32 %v694_v13, %v632_v12  ;;  %532 = vst [vmem:[%s1660_s2 + $0x1b0] sm:$0xff] %v1478_v19 }
 0x127   :  { %v696_v26 = vadd.f32 %v695_v23, %v633_v22  ;;  %v905_v27 = vpop.f32.mrb[24].mxu0  ;;  %v564_v29 = vadd.f32 %v902_v14, %v563_v21  ;;  %v1487_v31 = vpop.f32.mrb[24].mxu1 }
 0x128   :  { %503 = vst [vmem:[%s1660_s2 + $0xc8] sm:$0xff] %v905_v27  ;;  %v279_v34 = vpop.f32.mrb[25].mxu0  ;;  %535 = vst [vmem:[%s1660_s2 + $0x1c8] sm:$0xff] %v1487_v31  ;;  %v1496_v36 = vpop.f32.mrb[25].mxu1  ;;  %v636_v40 = vmul.f32 %v905_v27, %v905_v27 }
 0x129   :  { %502 = vst [vmem:[%s1660_s2 + $0xc0] sm:$0xff] %v279_v34  ;;  %v565_v37 = vadd.f32 %v564_v29, %v279_v34  ;;  %v635_v38 = vmul.f32 %v279_v34, %v279_v34  ;;  %v697_v39 = vadd.f32 %v696_v26, %v634_v24  ;;  %534 = vst [vmem:[%s1660_s2 + $0x1c0] sm:$0xff] %v1496_v36 }
 0x12a   :  { %v643_v29 = vmul.f32 %v1280_v28, %v1280_v28 }
 0x12b   :  { %v698_v41 = vadd.f32 %v697_v39, %v635_v38  ;;  %v908_v45 = vpop.f32.mrb[26].mxu0  ;;  %v566_v47 = vadd.f32 %v905_v27, %v565_v37  ;;  %v1505_v48 = vpop.f32.mrb[26].mxu1  ;;  %v644_v38 = vmul.f32 %v1271_v25, %v1271_v25 }
 0x12c   :  { %505 = vst [vmem:[%s1660_s2 + $0xd8] sm:$0xff] %v908_v45  ;;  %v289_v49 = vpop.f32.mrb[27].mxu0  ;;  %537 = vst [vmem:[%s1660_s2 + $0x1d8] sm:$0xff] %v1505_v48  ;;  %v1514_v50 = vpop.f32.mrb[27].mxu1  ;;  %v638_v57 = vmul.f32 %v908_v45, %v908_v45 }
 0x12d   :  { %504 = vst [vmem:[%s1660_s2 + $0xd0] sm:$0xff] %v289_v49  ;;  %v567_v51 = vadd.f32 %v566_v47, %v289_v49  ;;  %v637_v53 = vmul.f32 %v289_v49, %v289_v49  ;;  %v699_v55 = vadd.f32 %v698_v41, %v636_v40  ;;  %536 = vst [vmem:[%s1660_s2 + $0x1d0] sm:$0xff] %v1514_v50 }
 0x12e   :  { %v645_v41 = vmul.f32 %v1298_v35, %v1298_v35  ;;  %v646_v49 = vmul.f32 %v1289_v33, %v1289_v33 }
 0x12f   :  { %v700_v59 = vadd.f32 %v699_v55, %v637_v53  ;;  %v911_v60 = vpop.f32.mrb[28].mxu0  ;;  %v568_v61 = vadd.f32 %v908_v45, %v567_v51  ;;  %v1523_v63 = vpop.f32.mrb[28].mxu1 }
 0x130   :  { %507 = vst [vmem:[%s1660_s2 + $0xe8] sm:$0xff] %v911_v60  ;;  %v299_v1 = vpop.f32.mrb[29].mxu0  ;;  %539 = vst [vmem:[%s1660_s2 + $0x1e8] sm:$0xff] %v1523_v63  ;;  %v1532_v2 = vpop.f32.mrb[29].mxu1  ;;  %v640_v9 = vmul.f32 %v911_v60, %v911_v60 }
 0x131   :  { %506 = vst [vmem:[%s1660_s2 + $0xe0] sm:$0xff] %v299_v1  ;;  %v569_v3 = vadd.f32 %v568_v61, %v299_v1  ;;  %v639_v5 = vmul.f32 %v299_v1, %v299_v1  ;;  %v701_v7 = vadd.f32 %v700_v59, %v638_v57  ;;  %538 = vst [vmem:[%s1660_s2 + $0x1e0] sm:$0xff] %v1532_v2 }
 0x133   :  { %v702_v11 = vadd.f32 %v701_v7, %v639_v5  ;;  %v914_v12 = vpop.f32.mrb[30].mxu0  ;;  %v570_v13 = vadd.f32 %v911_v60, %v569_v3  ;;  %v1541_v14 = vpop.f32.mrb[30].mxu1 }
 0x134   :  { %509 = vst [vmem:[%s1660_s2 + $0xf8] sm:$0xff] %v914_v12  ;;  %v309_v15 = vpop.f32.mrb[31].mxu0  ;;  %541 = vst [vmem:[%s1660_s2 + $0x1f8] sm:$0xff] %v1541_v14  ;;  %v1550_v17 = vpop.f32.mrb[31].mxu1  ;;  %v642_v24 = vmul.f32 %v914_v12, %v914_v12 }
 0x135   :  { %508 = vst [vmem:[%s1660_s2 + $0xf0] sm:$0xff] %v309_v15  ;;  %v571_v21 = vadd.f32 %v570_v13, %v309_v15  ;;  %v641_v22 = vmul.f32 %v309_v15, %v309_v15  ;;  %v703_v23 = vadd.f32 %v702_v11, %v640_v9  ;;  %540 = vst [vmem:[%s1660_s2 + $0x1f0] sm:$0xff] %v1550_v17 }
 0x137   :  { %v572_v26 = vadd.f32 %v914_v12, %v571_v21  ;;  %v704_v27 = vadd.f32 %v703_v23, %v641_v22 }
 0x139   :  { %v705_v34 = vadd.f32 %v704_v27, %v642_v24  ;;  %v573_v37 = vadd.f32 %v572_v26, %v1280_v28  ;;  %v647_v28 = vmul.f32 %v1316_v44, %v1316_v44 }
 0x13b   :  { %v706_v39 = vadd.f32 %v705_v34, %v643_v29  ;;  %v574_v40 = vadd.f32 %v1271_v25, %v573_v37  ;;  %v648_v25 = vmul.f32 %v1307_v42, %v1307_v42 }
 0x13d   :  { %v575_v45 = vadd.f32 %v574_v40, %v1298_v35  ;;  %v707_v47 = vadd.f32 %v706_v39, %v644_v38  ;;  %v649_v35 = vmul.f32 %v1334_v54, %v1334_v54 }
 0x13f   :  { %v708_v51 = vadd.f32 %v707_v47, %v645_v41  ;;  %v576_v53 = vadd.f32 %v1289_v33, %v575_v45  ;;  %v650_v33 = vmul.f32 %v1325_v52, %v1325_v52 }
 0x141   :  { %v577_v55 = vadd.f32 %v576_v53, %v1316_v44  ;;  %v709_v57 = vadd.f32 %v708_v51, %v646_v49  ;;  %v651_v44 = vmul.f32 %v1352_v0, %v1352_v0 }
 0x143   :  { %v710_v59 = vadd.f32 %v709_v57, %v647_v28  ;;  %v578_v60 = vadd.f32 %v1307_v42, %v577_v55  ;;  %v652_v42 = vmul.f32 %v1343_v62, %v1343_v62 }
 0x145   :  { %v579_v61 = vadd.f32 %v578_v60, %v1334_v54  ;;  %v711_v1 = vadd.f32 %v710_v59, %v648_v25  ;;  %v653_v54 = vmul.f32 %v1370_v10, %v1370_v10 }
 0x147   :  { %v712_v3 = vadd.f32 %v711_v1, %v649_v35  ;;  %v580_v5 = vadd.f32 %v1325_v52, %v579_v61  ;;  %v654_v52 = vmul.f32 %v1361_v8, %v1361_v8 }
 0x149   :  { %v581_v7 = vadd.f32 %v580_v5, %v1352_v0  ;;  %v713_v9 = vadd.f32 %v712_v3, %v650_v33  ;;  %v655_v0 = vmul.f32 %v1388_v20, %v1388_v20 }
 0x14b   :  { %v714_v11 = vadd.f32 %v713_v9, %v651_v44  ;;  %v582_v12 = vadd.f32 %v1343_v62, %v581_v7  ;;  %v656_v62 = vmul.f32 %v1379_v18, %v1379_v18 }
 0x14d   :  { %v583_v13 = vadd.f32 %v582_v12, %v1370_v10  ;;  %v715_v15 = vadd.f32 %v714_v11, %v652_v42  ;;  %v657_v10 = vmul.f32 %v1406_v32, %v1406_v32 }
 0x14f   :  { %v716_v21 = vadd.f32 %v715_v15, %v653_v54  ;;  %v584_v22 = vadd.f32 %v1361_v8, %v583_v13  ;;  %v658_v8 = vmul.f32 %v1397_v30, %v1397_v30 }
 0x151   :  { %v585_v23 = vadd.f32 %v584_v22, %v1388_v20  ;;  %v717_v24 = vadd.f32 %v716_v21, %v654_v52  ;;  %v659_v20 = vmul.f32 %v1424_v46, %v1424_v46 }
 0x153   :  { %v718_v26 = vadd.f32 %v717_v24, %v655_v0  ;;  %v586_v27 = vadd.f32 %v1379_v18, %v585_v23  ;;  %v660_v18 = vmul.f32 %v1415_v43, %v1415_v43 }
 0x155   :  { %v587_v29 = vadd.f32 %v586_v27, %v1406_v32  ;;  %v719_v34 = vadd.f32 %v718_v26, %v656_v62  ;;  %v661_v32 = vmul.f32 %v1442_v58, %v1442_v58 }
 0x157   :  { %v720_v37 = vadd.f32 %v719_v34, %v657_v10  ;;  %v588_v38 = vadd.f32 %v1397_v30, %v587_v29  ;;  %v662_v30 = vmul.f32 %v1433_v56, %v1433_v56 }
 0x159   :  { %v589_v39 = vadd.f32 %v588_v38, %v1424_v46  ;;  %v721_v40 = vadd.f32 %v720_v37, %v658_v8  ;;  %v663_v46 = vmul.f32 %v1460_v6, %v1460_v6 }
 0x15b   :  { %v722_v41 = vadd.f32 %v721_v40, %v659_v20  ;;  %v590_v45 = vadd.f32 %v1415_v43, %v589_v39  ;;  %v664_v43 = vmul.f32 %v1451_v4, %v1451_v4 }
 0x15d   :  { %v591_v47 = vadd.f32 %v590_v45, %v1442_v58  ;;  %v723_v49 = vadd.f32 %v722_v41, %v660_v18  ;;  %v665_v58 = vmul.f32 %v1478_v19, %v1478_v19 }
 0x15f   :  { %v724_v51 = vadd.f32 %v723_v49, %v661_v32  ;;  %v592_v53 = vadd.f32 %v1433_v56, %v591_v47  ;;  %v666_v56 = vmul.f32 %v1469_v16, %v1469_v16 }
 0x161   :  { %v593_v28 = vadd.f32 %v592_v53, %v1460_v6  ;;  %v725_v55 = vadd.f32 %v724_v51, %v662_v30  ;;  %v667_v6 = vmul.f32 %v1496_v36, %v1496_v36 }
 0x163   :  { %v726_v57 = vadd.f32 %v725_v55, %v663_v46  ;;  %v594_v25 = vadd.f32 %v1451_v4, %v593_v28  ;;  %v668_v4 = vmul.f32 %v1487_v31, %v1487_v31 }
 0x165   :  { %v595_v59 = vadd.f32 %v594_v25, %v1478_v19  ;;  %v727_v60 = vadd.f32 %v726_v57, %v664_v43  ;;  %v669_v19 = vmul.f32 %v1514_v50, %v1514_v50 }
 0x167   :  { %v728_v35 = vadd.f32 %v727_v60, %v665_v58  ;;  %v596_v61 = vadd.f32 %v1469_v16, %v595_v59  ;;  %v670_v16 = vmul.f32 %v1505_v48, %v1505_v48 }
 0x169   :  { %v597_v1 = vadd.f32 %v596_v61, %v1496_v36  ;;  %v729_v33 = vadd.f32 %v728_v35, %v666_v56  ;;  %v671_v36 = vmul.f32 %v1532_v2, %v1532_v2 }
 0x16b   :  { %v730_v3 = vadd.f32 %v729_v33, %v667_v6  ;;  %v598_v5 = vadd.f32 %v1487_v31, %v597_v1  ;;  %v672_v31 = vmul.f32 %v1523_v63, %v1523_v63 }
 0x16d   :  { %v599_v44 = vadd.f32 %v598_v5, %v1514_v50  ;;  %v731_v7 = vadd.f32 %v730_v3, %v668_v4  ;;  %v673_v50 = vmul.f32 %v1550_v17, %v1550_v17 }
 0x16f   :  { %v732_v9 = vadd.f32 %v731_v7, %v669_v19  ;;  %v600_v42 = vadd.f32 %v1505_v48, %v599_v44  ;;  %v674_v48 = vmul.f32 %v1541_v14, %v1541_v14 }
 0x171   :  { %v601_v11 = vadd.f32 %v600_v42, %v1532_v2  ;;  %v733_v12 = vadd.f32 %v732_v9, %v670_v16 }
 0x173   :  { %v734_v54 = vadd.f32 %v733_v12, %v671_v36  ;;  %v602_v13 = vadd.f32 %v1523_v63, %v601_v11 }
 0x175   :  { %v603_v15 = vadd.f32 %v602_v13, %v1550_v17  ;;  %v735_v52 = vadd.f32 %v734_v54, %v672_v31 }
 0x177   :  { %v604_v21 = vadd.f32 %v1541_v14, %v603_v15  ;;  %v736_v22 = vadd.f32 %v735_v52, %v673_v50 }
 0x179   :  { %v605_v2 = vrot.slane %v604_v21, 4  ;;  %v737_v0 = vadd.f32 %v736_v22, %v674_v48 }
 0x17b   :  { %v606_v23 = vadd.f32 %v605_v2, %v604_v21  ;;  %v738_v24 = vrot.slane %v737_v0, 4 }
 0x17d   :  { %v607_v62 = vrot.slane %v606_v23, 2  ;;  %v739_v26 = vadd.f32 %v738_v24, %v737_v0 }
 0x17f   :  { %v608_v27 = vadd.f32 %v607_v62, %v606_v23  ;;  %v740_v63 = vrot.slane %v739_v26, 2 }
 0x181   :  { %v609_v10 = vrot.slane %v608_v27, 1  ;;  %v741_v29 = vadd.f32 %v740_v63, %v739_v26 }
 0x183   :  { %v742_v34 = vrot.slane %v741_v29, 1  ;;  %v610_v17 = vadd.f32 %v609_v10, %v608_v27 }
 0x185   :  { %v743_v8 = vadd.f32 %v742_v34, %v741_v29 }
 0x187   :  { %v745_v37 = vsel %vm744_vm0, %v610_v17, %v743_v8 }
 0x188   :  { %746 = vst [vmem:[%s1661_s3] sm:$0x3] %v745_v37 }

// kernel: bottleneck_pallas.7
= control target key start
LH: loop header
LB: loop body
LE: loop exit
PB: predicated region body
PF: predicated region fallthrough
CT: control target
= control target key end

     0   :  { %s1224_s0 = inlined_call_operand.vmem [shape: f32[512,128], index: 0, kind: input, shape index: {}]   ;;  %s1225_s1 = inlined_call_operand.vmem [shape: f32[512,128], index: 1, kind: input, shape index: {}, may-alias: {1,4}]   ;;  %s1226_s2 = inlined_call_operand.vmem [shape: f32[1,128], index: 2, kind: input, shape index: {}]   ;;  %s1227_s3 = inlined_call_operand.vmem [shape: f32[1,128], index: 3, kind: input, shape index: {}]   ;;  %s1228_s4 = inlined_call_operand.vmem [shape: f32[512,128], index: 4, kind: output, shape index: {}, may-alias: {1,4}]  }
   0x1   :  { %v17_v0 = vld [vmem:[%s1224_s0] sm:$0xff]  ;;  %v18_v4 = vld [vmem:[%s1224_s0 + $0x8] sm:$0xff]  ;;  %v19_v7 = vld [vmem:[%s1224_s0 + $0x10] sm:$0xff] }
   0x2   :  { %v516_v1 = vld [vmem:[%s1226_s2] ss:$0 sm:$0xff]  ;;  %v20_v8 = vld [vmem:[%s1224_s0 + $0x18] sm:$0xff]  ;;  %v224_v10 = vld [vmem:[%s1225_s1 + $0x8] sm:$0xff] }
   0x3   :  { %v521_v2 = vld [vmem:[%s1227_s3] ss:$0 sm:$0xff]  ;;  %v88_v3 = vmul.f32 %v516_v1, %v17_v0  ;;  %v89_v6 = vmul.f32 %v516_v1, %v18_v4  ;;  %v90_v11 = vmul.f32 %v516_v1, %v19_v7  ;;  %v225_v12 = vld [vmem:[%s1225_s1 + $0x10] sm:$0xff]  ;;  %v91_v13 = vmul.f32 %v516_v1, %v20_v8  ;;  %v226_v16 = vld [vmem:[%s1225_s1 + $0x18] sm:$0xff] }
   0x4   :  { %v223_v5 = vld [vmem:[%s1225_s1] sm:$0xff]  ;;  %v22_v18 = vld [vmem:[%s1224_s0 + $0x28] sm:$0xff]  ;;  %v23_v19 = vld [vmem:[%s1224_s0 + $0x30] sm:$0xff] }
   0x5   :  { %v159_v9 = vadd.f32 %v521_v2, %v88_v3  ;;  %v21_v14 = vld [vmem:[%s1224_s0 + $0x20] sm:$0xff]  ;;  %v160_v15 = vadd.f32 %v521_v2, %v89_v6  ;;  %v161_v21 = vadd.f32 %v521_v2, %v90_v11  ;;  %v162_v22 = vadd.f32 %v521_v2, %v91_v13  ;;  %v24_v25 = vld [vmem:[%s1224_s0 + $0x38] sm:$0xff]  ;;  %v228_v28 = vld [vmem:[%s1225_s1 + $0x28] sm:$0xff] }
   0x6   :  { %v92_v17 = vmul.f32 %v516_v1, %v21_v14  ;;  %v227_v23 = vld [vmem:[%s1225_s1 + $0x20] sm:$0xff]  ;;  %v93_v24 = vmul.f32 %v516_v1, %v22_v18  ;;  %v94_v29 = vmul.f32 %v516_v1, %v23_v19  ;;  %v95_v30 = vmul.f32 %v516_v1, %v24_v25  ;;  %v229_v36 = vld [vmem:[%s1225_s1 + $0x30] sm:$0xff]  ;;  %v230_v37 = vld [vmem:[%s1225_s1 + $0x38] sm:$0xff] }
   0x7   :  { %v287_v20 = vadd.f32 %v223_v5, %v159_v9  ;;  %v288_v26 = vadd.f32 %v224_v10, %v160_v15  ;;  %v25_v31 = vld [vmem:[%s1224_s0 + $0x40] sm:$0xff]  ;;  %v289_v33 = vadd.f32 %v225_v12, %v161_v21  ;;  %v290_v34 = vadd.f32 %v226_v16, %v162_v22  ;;  %v26_v38 = vld [vmem:[%s1224_s0 + $0x48] sm:$0xff]  ;;  %v27_v43 = vld [vmem:[%s1224_s0 + $0x50] sm:$0xff] }
   0x8   :  { %v163_v27 = vadd.f32 %v521_v2, %v92_v17  ;;  %v164_v35 = vadd.f32 %v521_v2, %v93_v24  ;;  %v165_v41 = vadd.f32 %v521_v2, %v94_v29  ;;  %v166_v42 = vadd.f32 %v521_v2, %v95_v30  ;;  %v28_v44 = vld [vmem:[%s1224_s0 + $0x58] sm:$0xff]  ;;  %v29_v49 = vld [vmem:[%s1224_s0 + $0x60] sm:$0xff]  ;;  %v30_v55 = vld [vmem:[%s1224_s0 + $0x68] sm:$0xff] }
   0x9   :  { %v351_v32 = vmax.f32 %v287_v20, 0.0  ;;  %v352_v39 = vmax.f32 %v288_v26, 0.0  ;;  %v353_v45 = vmax.f32 %v289_v33, 0.0  ;;  %v354_v46 = vmax.f32 %v290_v34, 0.0  ;;  %v31_v61 = vld [vmem:[%s1224_s0 + $0x70] sm:$0xff]  ;;  %v32_v62 = vld [vmem:[%s1224_s0 + $0x78] sm:$0xff] }
   0xa   :  { %v291_v40 = vadd.f32 %v227_v23, %v163_v27  ;;  %v292_v47 = vadd.f32 %v228_v28, %v164_v35  ;;  %v96_v48 = vmul.f32 %v516_v1, %v25_v31  ;;  %v293_v51 = vadd.f32 %v229_v36, %v165_v41  ;;  %v33_v17 = vld [vmem:[%s1224_s0 + $0x80] sm:$0xff]  ;;  %v34_v24 = vld [vmem:[%s1224_s0 + $0x88] sm:$0xff]  ;;  %v35_v29 = vld [vmem:[%s1224_s0 + $0x90] sm:$0xff] }
   0xb   :  { %415 = vst [vmem:[%s1228_s4] sm:$0xff] %v351_v32  ;;  %416 = vst [vmem:[%s1228_s4 + $0x8] sm:$0xff] %v352_v39  ;;  %v294_v52 = vadd.f32 %v230_v37, %v166_v42  ;;  %v97_v54 = vmul.f32 %v516_v1, %v26_v38  ;;  %v98_v59 = vmul.f32 %v516_v1, %v27_v43  ;;  %v36_v30 = vld [vmem:[%s1224_s0 + $0x98] sm:$0xff]  ;;  %v37_v35 = vld [vmem:[%s1224_s0 + $0xa0] sm:$0xff] }
   0xc   :  { %v355_v50 = vmax.f32 %v291_v40, 0.0  ;;  %v356_v56 = vmax.f32 %v292_v47, 0.0  ;;  %v167_v57 = vadd.f32 %v521_v2, %v96_v48  ;;  %v99_v60 = vmul.f32 %v516_v1, %v28_v44  ;;  %v38_v41 = vld [vmem:[%s1224_s0 + $0xa8] sm:$0xff]  ;;  %v39_v47 = vld [vmem:[%s1224_s0 + $0xb0] sm:$0xff]  ;;  %v40_v48 = vld [vmem:[%s1224_s0 + $0xb8] sm:$0xff] }
   0xd   :  { %v357_v63 = vmax.f32 %v293_v51, 0.0  ;;  %v358_v0 = vmax.f32 %v294_v52, 0.0  ;;  %v168_v3 = vadd.f32 %v521_v2, %v97_v54  ;;  %v100_v6 = vmul.f32 %v516_v1, %v29_v49 }
   0xe   :  { %v169_v8 = vadd.f32 %v521_v2, %v98_v59  ;;  %v170_v9 = vadd.f32 %v521_v2, %v99_v60  ;;  %v101_v11 = vmul.f32 %v516_v1, %v30_v55  ;;  %v102_v15 = vmul.f32 %v516_v1, %v31_v61 }
   0xf   :  { %v171_v13 = vadd.f32 %v521_v2, %v100_v6  ;;  %v103_v16 = vmul.f32 %v516_v1, %v32_v62  ;;  %v104_v34 = vmul.f32 %v516_v1, %v33_v17  ;;  %v105_v40 = vmul.f32 %v516_v1, %v34_v24 }
  0x10   :  { %v172_v21 = vadd.f32 %v521_v2, %v101_v11  ;;  %v173_v27 = vadd.f32 %v521_v2, %v102_v15  ;;  %v108_v54 = vmul.f32 %v516_v1, %v37_v35  ;;  %v109_v59 = vmul.f32 %v516_v1, %v38_v41  ;;  %v43_v15 = vld [vmem:[%s1224_s0 + $0xd0] sm:$0xff] }
  0x11   :  { %v174_v28 = vadd.f32 %v521_v2, %v103_v16  ;;  %v175_v43 = vadd.f32 %v521_v2, %v104_v34  ;;  %v176_v51 = vadd.f32 %v521_v2, %v105_v40  ;;  %v44_v16 = vld [vmem:[%s1224_s0 + $0xd8] sm:$0xff] }
  0x12   :  { %v231_v53 = vld [vmem:[%s1225_s1 + $0x40] sm:$0xff]  ;;  %v179_v61 = vadd.f32 %v521_v2, %v108_v54  ;;  %v48_v34 = vld [vmem:[%s1224_s0 + $0xf8] sm:$0xff] }
  0x13   :  { %417 = vst [vmem:[%s1228_s4 + $0x10] sm:$0xff] %v353_v45  ;;  %418 = vst [vmem:[%s1228_s4 + $0x18] sm:$0xff] %v354_v46  ;;  %v295_v7 = vadd.f32 %v231_v53, %v167_v57  ;;  %v106_v45 = vmul.f32 %v516_v1, %v35_v29  ;;  %v107_v46 = vmul.f32 %v516_v1, %v36_v30 }
  0x15   :  { %v359_v18 = vmax.f32 %v295_v7, 0.0  ;;  %v178_v57 = vadd.f32 %v521_v2, %v107_v46  ;;  %v180_v7 = vadd.f32 %v521_v2, %v109_v59 }
  0x1a   :  { %v232_v58 = vld [vmem:[%s1225_s1 + $0x48] sm:$0xff] }
  0x1b   :  { %419 = vst [vmem:[%s1228_s4 + $0x20] sm:$0xff] %v355_v50  ;;  %v296_v12 = vadd.f32 %v232_v58, %v168_v3  ;;  %v41_v3 = vld [vmem:[%s1224_s0 + $0xc0] sm:$0xff] }
  0x1d   :  { %v360_v25 = vmax.f32 %v296_v12, 0.0 }
  0x22   :  { %v233_v4 = vld [vmem:[%s1225_s1 + $0x50] sm:$0xff]  ;;  %v234_v5 = vld [vmem:[%s1225_s1 + $0x58] sm:$0xff] }
  0x23   :  { %420 = vst [vmem:[%s1228_s4 + $0x28] sm:$0xff] %v356_v56  ;;  %v297_v19 = vadd.f32 %v233_v4, %v169_v8  ;;  %v298_v20 = vadd.f32 %v234_v5, %v170_v9  ;;  %v177_v56 = vadd.f32 %v521_v2, %v106_v45 }
  0x25   :  { %v361_v31 = vmax.f32 %v297_v19, 0.0  ;;  %v362_v32 = vmax.f32 %v298_v20, 0.0  ;;  %v112_v20 = vmul.f32 %v516_v1, %v41_v3 }
  0x27   :  { %v183_v29 = vadd.f32 %v521_v2, %v112_v20  ;;  %v56_v20 = vld [vmem:[%s1224_s0 + $0x138] sm:$0xff] }
  0x2a   :  { %v235_v10 = vld [vmem:[%s1225_s1 + $0x60] sm:$0xff] }
  0x2b   :  { %421 = vst [vmem:[%s1228_s4 + $0x30] sm:$0xff] %v357_v63  ;;  %422 = vst [vmem:[%s1228_s4 + $0x38] sm:$0xff] %v358_v0  ;;  %v299_v26 = vadd.f32 %v235_v10, %v171_v13  ;;  %v110_v63 = vmul.f32 %v516_v1, %v39_v47  ;;  %v111_v0 = vmul.f32 %v516_v1, %v40_v48  ;;  %v42_v10 = vld [vmem:[%s1224_s0 + $0xc8] sm:$0xff] }
  0x2d   :  { %v363_v36 = vmax.f32 %v299_v26, 0.0  ;;  %v181_v13 = vadd.f32 %v521_v2, %v110_v63  ;;  %v113_v26 = vmul.f32 %v516_v1, %v42_v10  ;;  %v51_v63 = vld [vmem:[%s1224_s0 + $0x110] sm:$0xff] }
  0x32   :  { %v236_v14 = vld [vmem:[%s1225_s1 + $0x68] sm:$0xff]  ;;  %v237_v22 = vld [vmem:[%s1225_s1 + $0x70] sm:$0xff]  ;;  %v238_v23 = vld [vmem:[%s1225_s1 + $0x78] sm:$0xff] }
  0x33   :  { %423 = vst [vmem:[%s1228_s4 + $0x40] sm:$0xff] %v359_v18  ;;  %v300_v33 = vadd.f32 %v236_v14, %v172_v21  ;;  %424 = vst [vmem:[%s1228_s4 + $0x48] sm:$0xff] %v360_v25  ;;  %v301_v37 = vadd.f32 %v237_v22, %v173_v27  ;;  %v302_v38 = vadd.f32 %v238_v23, %v174_v28  ;;  %v45_v21 = vld [vmem:[%s1224_s0 + $0xe0] sm:$0xff]  ;;  %v46_v27 = vld [vmem:[%s1224_s0 + $0xe8] sm:$0xff] }
  0x34   :  { %v182_v14 = vadd.f32 %v521_v2, %v111_v0  ;;  %v116_v40 = vmul.f32 %v516_v1, %v45_v21  ;;  %v117_v45 = vmul.f32 %v516_v1, %v46_v27  ;;  %v52_v0 = vld [vmem:[%s1224_s0 + $0x118] sm:$0xff] }
  0x35   :  { %v364_v42 = vmax.f32 %v300_v33, 0.0  ;;  %v365_v49 = vmax.f32 %v301_v37, 0.0  ;;  %v366_v50 = vmax.f32 %v302_v38, 0.0  ;;  %v47_v33 = vld [vmem:[%s1224_s0 + $0xf0] sm:$0xff]  ;;  %v184_v37 = vadd.f32 %v521_v2, %v113_v26 }
  0x36   :  { %v187_v47 = vadd.f32 %v521_v2, %v116_v40 }
  0x3a   :  { %v239_v39 = vld [vmem:[%s1225_s1 + $0x80] sm:$0xff] }
  0x3b   :  { %425 = vst [vmem:[%s1228_s4 + $0x50] sm:$0xff] %v361_v31  ;;  %426 = vst [vmem:[%s1228_s4 + $0x58] sm:$0xff] %v362_v32  ;;  %v303_v55 = vadd.f32 %v239_v39, %v175_v43  ;;  %v114_v31 = vmul.f32 %v516_v1, %v43_v15  ;;  %v115_v32 = vmul.f32 %v516_v1, %v44_v16 }
  0x3d   :  { %v367_v4 = vmax.f32 %v303_v55, 0.0  ;;  %v186_v43 = vadd.f32 %v521_v2, %v115_v32  ;;  %v188_v55 = vadd.f32 %v521_v2, %v117_v45 }
  0x42   :  { %v240_v44 = vld [vmem:[%s1225_s1 + $0x88] sm:$0xff] }
  0x43   :  { %427 = vst [vmem:[%s1228_s4 + $0x60] sm:$0xff] %v363_v36  ;;  %v304_v60 = vadd.f32 %v240_v44, %v176_v51  ;;  %v49_v51 = vld [vmem:[%s1224_s0 + $0x100] sm:$0xff] }
  0x45   :  { %v368_v11 = vmax.f32 %v304_v60, 0.0 }
  0x4a   :  { %v241_v52 = vld [vmem:[%s1225_s1 + $0x90] sm:$0xff]  ;;  %v242_v53 = vld [vmem:[%s1225_s1 + $0x98] sm:$0xff] }
  0x4b   :  { %428 = vst [vmem:[%s1228_s4 + $0x68] sm:$0xff] %v364_v42  ;;  %v305_v5 = vadd.f32 %v241_v52, %v177_v56  ;;  %v306_v6 = vadd.f32 %v242_v53, %v178_v57  ;;  %v185_v42 = vadd.f32 %v521_v2, %v114_v31 }
  0x4d   :  { %v369_v17 = vmax.f32 %v305_v5, 0.0  ;;  %v370_v18 = vmax.f32 %v306_v6, 0.0  ;;  %v120_v6 = vmul.f32 %v516_v1, %v49_v51 }
  0x4f   :  { %v191_v15 = vadd.f32 %v521_v2, %v120_v6  ;;  %v64_v6 = vld [vmem:[%s1224_s0 + $0x178] sm:$0xff] }
  0x52   :  { %v243_v58 = vld [vmem:[%s1225_s1 + $0xa0] sm:$0xff] }
  0x53   :  { %429 = vst [vmem:[%s1228_s4 + $0x70] sm:$0xff] %v365_v49  ;;  %430 = vst [vmem:[%s1228_s4 + $0x78] sm:$0xff] %v366_v50  ;;  %v307_v12 = vadd.f32 %v243_v58, %v179_v61  ;;  %v118_v49 = vmul.f32 %v516_v1, %v47_v33  ;;  %v119_v50 = vmul.f32 %v516_v1, %v48_v34  ;;  %v50_v58 = vld [vmem:[%s1224_s0 + $0x108] sm:$0xff] }
  0x55   :  { %v371_v22 = vmax.f32 %v307_v12, 0.0  ;;  %v189_v61 = vadd.f32 %v521_v2, %v118_v49  ;;  %v121_v12 = vmul.f32 %v516_v1, %v50_v58  ;;  %v59_v49 = vld [vmem:[%s1224_s0 + $0x150] sm:$0xff] }
  0x5a   :  { %v244_v62 = vld [vmem:[%s1225_s1 + $0xa8] sm:$0xff]  ;;  %v245_v8 = vld [vmem:[%s1225_s1 + $0xb0] sm:$0xff]  ;;  %v246_v9 = vld [vmem:[%s1225_s1 + $0xb8] sm:$0xff] }
  0x5b   :  { %431 = vst [vmem:[%s1228_s4 + $0x80] sm:$0xff] %v367_v4  ;;  %v308_v19 = vadd.f32 %v244_v62, %v180_v7  ;;  %432 = vst [vmem:[%s1228_s4 + $0x88] sm:$0xff] %v368_v11  ;;  %v309_v23 = vadd.f32 %v245_v8, %v181_v13  ;;  %v310_v24 = vadd.f32 %v246_v9, %v182_v14  ;;  %v53_v7 = vld [vmem:[%s1224_s0 + $0x120] sm:$0xff]  ;;  %v54_v13 = vld [vmem:[%s1224_s0 + $0x128] sm:$0xff] }
  0x5c   :  { %v190_v62 = vadd.f32 %v521_v2, %v119_v50  ;;  %v124_v26 = vmul.f32 %v516_v1, %v53_v7  ;;  %v125_v31 = vmul.f32 %v516_v1, %v54_v13  ;;  %v60_v50 = vld [vmem:[%s1224_s0 + $0x158] sm:$0xff] }
  0x5d   :  { %v372_v28 = vmax.f32 %v308_v19, 0.0  ;;  %v373_v35 = vmax.f32 %v309_v23, 0.0  ;;  %v374_v36 = vmax.f32 %v310_v24, 0.0  ;;  %v55_v19 = vld [vmem:[%s1224_s0 + $0x130] sm:$0xff]  ;;  %v192_v23 = vadd.f32 %v521_v2, %v121_v12 }
  0x5e   :  { %v195_v33 = vadd.f32 %v521_v2, %v124_v26 }
  0x62   :  { %v247_v25 = vld [vmem:[%s1225_s1 + $0xc0] sm:$0xff] }
  0x63   :  { %433 = vst [vmem:[%s1228_s4 + $0x90] sm:$0xff] %v369_v17  ;;  %434 = vst [vmem:[%s1228_s4 + $0x98] sm:$0xff] %v370_v18  ;;  %v311_v41 = vadd.f32 %v247_v25, %v183_v29  ;;  %v122_v17 = vmul.f32 %v516_v1, %v51_v63  ;;  %v123_v18 = vmul.f32 %v516_v1, %v52_v0 }
  0x65   :  { %v375_v52 = vmax.f32 %v311_v41, 0.0  ;;  %v194_v29 = vadd.f32 %v521_v2, %v123_v18  ;;  %v196_v41 = vadd.f32 %v521_v2, %v125_v31 }
  0x6a   :  { %v248_v30 = vld [vmem:[%s1225_s1 + $0xc8] sm:$0xff] }
  0x6b   :  { %435 = vst [vmem:[%s1228_s4 + $0xa0] sm:$0xff] %v371_v22  ;;  %v312_v46 = vadd.f32 %v248_v30, %v184_v37  ;;  %v57_v37 = vld [vmem:[%s1224_s0 + $0x140] sm:$0xff] }
  0x6d   :  { %v376_v59 = vmax.f32 %v312_v46, 0.0 }
  0x72   :  { %v249_v38 = vld [vmem:[%s1225_s1 + $0xd0] sm:$0xff]  ;;  %v250_v39 = vld [vmem:[%s1225_s1 + $0xd8] sm:$0xff] }
  0x73   :  { %436 = vst [vmem:[%s1228_s4 + $0xa8] sm:$0xff] %v372_v28  ;;  %v313_v53 = vadd.f32 %v249_v38, %v185_v42  ;;  %v314_v54 = vadd.f32 %v250_v39, %v186_v43  ;;  %v193_v28 = vadd.f32 %v521_v2, %v122_v17 }
  0x75   :  { %v377_v3 = vmax.f32 %v313_v53, 0.0  ;;  %v378_v4 = vmax.f32 %v314_v54, 0.0  ;;  %v128_v54 = vmul.f32 %v516_v1, %v57_v37 }
  0x77   :  { %v199_v63 = vadd.f32 %v521_v2, %v128_v54  ;;  %v72_v54 = vld [vmem:[%s1224_s0 + $0x1b8] sm:$0xff] }
  0x7a   :  { %v251_v44 = vld [vmem:[%s1225_s1 + $0xe0] sm:$0xff] }
  0x7b   :  { %437 = vst [vmem:[%s1228_s4 + $0xb0] sm:$0xff] %v373_v35  ;;  %438 = vst [vmem:[%s1228_s4 + $0xb8] sm:$0xff] %v374_v36  ;;  %v315_v60 = vadd.f32 %v251_v44, %v187_v47  ;;  %v126_v35 = vmul.f32 %v516_v1, %v55_v19  ;;  %v127_v36 = vmul.f32 %v516_v1, %v56_v20  ;;  %v58_v44 = vld [vmem:[%s1224_s0 + $0x148] sm:$0xff] }
  0x7d   :  { %v379_v8 = vmax.f32 %v315_v60, 0.0  ;;  %v197_v47 = vadd.f32 %v521_v2, %v126_v35  ;;  %v129_v60 = vmul.f32 %v516_v1, %v58_v44  ;;  %v67_v35 = vld [vmem:[%s1224_s0 + $0x190] sm:$0xff] }
  0x82   :  { %v252_v48 = vld [vmem:[%s1225_s1 + $0xe8] sm:$0xff]  ;;  %v253_v56 = vld [vmem:[%s1225_s1 + $0xf0] sm:$0xff]  ;;  %v254_v57 = vld [vmem:[%s1225_s1 + $0xf8] sm:$0xff] }
  0x83   :  { %439 = vst [vmem:[%s1228_s4 + $0xc0] sm:$0xff] %v375_v52  ;;  %v316_v5 = vadd.f32 %v252_v48, %v188_v55  ;;  %440 = vst [vmem:[%s1228_s4 + $0xc8] sm:$0xff] %v376_v59  ;;  %v317_v9 = vadd.f32 %v253_v56, %v189_v61  ;;  %v318_v10 = vadd.f32 %v254_v57, %v190_v62  ;;  %v61_v55 = vld [vmem:[%s1224_s0 + $0x160] sm:$0xff]  ;;  %v62_v61 = vld [vmem:[%s1224_s0 + $0x168] sm:$0xff] }
  0x84   :  { %v198_v48 = vadd.f32 %v521_v2, %v127_v36  ;;  %v132_v12 = vmul.f32 %v516_v1, %v61_v55  ;;  %v133_v17 = vmul.f32 %v516_v1, %v62_v61  ;;  %v68_v36 = vld [vmem:[%s1224_s0 + $0x198] sm:$0xff] }
  0x85   :  { %v380_v14 = vmax.f32 %v316_v5, 0.0  ;;  %v381_v21 = vmax.f32 %v317_v9, 0.0  ;;  %v382_v22 = vmax.f32 %v318_v10, 0.0  ;;  %v63_v5 = vld [vmem:[%s1224_s0 + $0x170] sm:$0xff]  ;;  %v200_v9 = vadd.f32 %v521_v2, %v129_v60 }
  0x86   :  { %v203_v19 = vadd.f32 %v521_v2, %v132_v12 }
  0x8a   :  { %v255_v11 = vld [vmem:[%s1225_s1 + $0x100] sm:$0xff] }
  0x8b   :  { %441 = vst [vmem:[%s1228_s4 + $0xd0] sm:$0xff] %v377_v3  ;;  %442 = vst [vmem:[%s1228_s4 + $0xd8] sm:$0xff] %v378_v4  ;;  %v319_v27 = vadd.f32 %v255_v11, %v191_v15  ;;  %v130_v3 = vmul.f32 %v516_v1, %v59_v49  ;;  %v131_v4 = vmul.f32 %v516_v1, %v60_v50 }
  0x8d   :  { %v383_v38 = vmax.f32 %v319_v27, 0.0  ;;  %v202_v15 = vadd.f32 %v521_v2, %v131_v4  ;;  %v204_v27 = vadd.f32 %v521_v2, %v133_v17 }
  0x92   :  { %v256_v16 = vld [vmem:[%s1225_s1 + $0x108] sm:$0xff] }
  0x93   :  { %443 = vst [vmem:[%s1228_s4 + $0xe0] sm:$0xff] %v379_v8  ;;  %v320_v32 = vadd.f32 %v256_v16, %v192_v23  ;;  %v65_v23 = vld [vmem:[%s1224_s0 + $0x180] sm:$0xff] }
  0x95   :  { %v384_v45 = vmax.f32 %v320_v32, 0.0 }
  0x9a   :  { %v257_v24 = vld [vmem:[%s1225_s1 + $0x110] sm:$0xff]  ;;  %v258_v25 = vld [vmem:[%s1225_s1 + $0x118] sm:$0xff] }
  0x9b   :  { %444 = vst [vmem:[%s1228_s4 + $0xe8] sm:$0xff] %v380_v14  ;;  %v321_v39 = vadd.f32 %v257_v24, %v193_v28  ;;  %v322_v40 = vadd.f32 %v258_v25, %v194_v29  ;;  %v201_v14 = vadd.f32 %v521_v2, %v130_v3 }
  0x9d   :  { %v385_v51 = vmax.f32 %v321_v39, 0.0  ;;  %v386_v52 = vmax.f32 %v322_v40, 0.0  ;;  %v136_v40 = vmul.f32 %v516_v1, %v65_v23 }
  0x9f   :  { %v207_v49 = vadd.f32 %v521_v2, %v136_v40  ;;  %v80_v40 = vld [vmem:[%s1224_s0 + $0x1f8] sm:$0xff] }
  0xa2   :  { %v259_v30 = vld [vmem:[%s1225_s1 + $0x120] sm:$0xff] }
  0xa3   :  { %445 = vst [vmem:[%s1228_s4 + $0xf0] sm:$0xff] %v381_v21  ;;  %446 = vst [vmem:[%s1228_s4 + $0xf8] sm:$0xff] %v382_v22  ;;  %v323_v46 = vadd.f32 %v259_v30, %v195_v33  ;;  %v134_v21 = vmul.f32 %v516_v1, %v63_v5  ;;  %v135_v22 = vmul.f32 %v516_v1, %v64_v6  ;;  %v66_v30 = vld [vmem:[%s1224_s0 + $0x188] sm:$0xff] }
  0xa5   :  { %v387_v56 = vmax.f32 %v323_v46, 0.0  ;;  %v205_v33 = vadd.f32 %v521_v2, %v134_v21  ;;  %v137_v46 = vmul.f32 %v516_v1, %v66_v30  ;;  %v75_v21 = vld [vmem:[%s1224_s0 + $0x1d0] sm:$0xff] }
  0xaa   :  { %v260_v34 = vld [vmem:[%s1225_s1 + $0x128] sm:$0xff]  ;;  %v261_v42 = vld [vmem:[%s1225_s1 + $0x130] sm:$0xff]  ;;  %v262_v43 = vld [vmem:[%s1225_s1 + $0x138] sm:$0xff] }
  0xab   :  { %447 = vst [vmem:[%s1228_s4 + $0x100] sm:$0xff] %v383_v38  ;;  %v324_v53 = vadd.f32 %v260_v34, %v196_v41  ;;  %448 = vst [vmem:[%s1228_s4 + $0x108] sm:$0xff] %v384_v45  ;;  %v325_v57 = vadd.f32 %v261_v42, %v197_v47  ;;  %v326_v58 = vadd.f32 %v262_v43, %v198_v48  ;;  %v69_v41 = vld [vmem:[%s1224_s0 + $0x1a0] sm:$0xff]  ;;  %v70_v47 = vld [vmem:[%s1224_s0 + $0x1a8] sm:$0xff] }
  0xac   :  { %v206_v34 = vadd.f32 %v521_v2, %v135_v22  ;;  %v140_v60 = vmul.f32 %v516_v1, %v69_v41  ;;  %v141_v3 = vmul.f32 %v516_v1, %v70_v47  ;;  %v76_v22 = vld [vmem:[%s1224_s0 + $0x1d8] sm:$0xff] }
  0xad   :  { %v388_v62 = vmax.f32 %v324_v53, 0.0  ;;  %v389_v7 = vmax.f32 %v325_v57, 0.0  ;;  %v390_v8 = vmax.f32 %v326_v58, 0.0  ;;  %v71_v53 = vld [vmem:[%s1224_s0 + $0x1b0] sm:$0xff]  ;;  %v208_v57 = vadd.f32 %v521_v2, %v137_v46 }
  0xae   :  { %v211_v5 = vadd.f32 %v521_v2, %v140_v60 }
  0xb2   :  { %v263_v59 = vld [vmem:[%s1225_s1 + $0x140] sm:$0xff] }
  0xb3   :  { %449 = vst [vmem:[%s1228_s4 + $0x110] sm:$0xff] %v385_v51  ;;  %450 = vst [vmem:[%s1228_s4 + $0x118] sm:$0xff] %v386_v52  ;;  %v327_v13 = vadd.f32 %v263_v59, %v199_v63  ;;  %v138_v51 = vmul.f32 %v516_v1, %v67_v35  ;;  %v139_v52 = vmul.f32 %v516_v1, %v68_v36 }
  0xb5   :  { %v391_v24 = vmax.f32 %v327_v13, 0.0  ;;  %v210_v63 = vadd.f32 %v521_v2, %v139_v52  ;;  %v212_v13 = vadd.f32 %v521_v2, %v141_v3 }
  0xba   :  { %v264_v0 = vld [vmem:[%s1225_s1 + $0x148] sm:$0xff] }
  0xbb   :  { %451 = vst [vmem:[%s1228_s4 + $0x120] sm:$0xff] %v387_v56  ;;  %v328_v18 = vadd.f32 %v264_v0, %v200_v9  ;;  %v73_v9 = vld [vmem:[%s1224_s0 + $0x1c0] sm:$0xff] }
  0xbd   :  { %v392_v31 = vmax.f32 %v328_v18, 0.0 }
  0xc2   :  { %v265_v10 = vld [vmem:[%s1225_s1 + $0x150] sm:$0xff]  ;;  %v266_v11 = vld [vmem:[%s1225_s1 + $0x158] sm:$0xff] }
  0xc3   :  { %452 = vst [vmem:[%s1228_s4 + $0x128] sm:$0xff] %v388_v62  ;;  %v329_v25 = vadd.f32 %v265_v10, %v201_v14  ;;  %v330_v26 = vadd.f32 %v266_v11, %v202_v15  ;;  %v209_v62 = vadd.f32 %v521_v2, %v138_v51 }
  0xc5   :  { %v393_v37 = vmax.f32 %v329_v25, 0.0  ;;  %v394_v38 = vmax.f32 %v330_v26, 0.0  ;;  %v144_v26 = vmul.f32 %v516_v1, %v73_v9 }
  0xc7   :  { %v215_v35 = vadd.f32 %v521_v2, %v144_v26 }
  0xca   :  { %v267_v16 = vld [vmem:[%s1225_s1 + $0x160] sm:$0xff] }
  0xcb   :  { %453 = vst [vmem:[%s1228_s4 + $0x130] sm:$0xff] %v389_v7  ;;  %454 = vst [vmem:[%s1228_s4 + $0x138] sm:$0xff] %v390_v8  ;;  %v331_v32 = vadd.f32 %v267_v16, %v203_v19  ;;  %v142_v7 = vmul.f32 %v516_v1, %v71_v53  ;;  %v143_v8 = vmul.f32 %v516_v1, %v72_v54  ;;  %v74_v16 = vld [vmem:[%s1224_s0 + $0x1c8] sm:$0xff] }
  0xcd   :  { %v395_v42 = vmax.f32 %v331_v32, 0.0  ;;  %v213_v19 = vadd.f32 %v521_v2, %v142_v7  ;;  %v145_v32 = vmul.f32 %v516_v1, %v74_v16 }
  0xd2   :  { %v268_v20 = vld [vmem:[%s1225_s1 + $0x168] sm:$0xff]  ;;  %v269_v28 = vld [vmem:[%s1225_s1 + $0x170] sm:$0xff]  ;;  %v270_v29 = vld [vmem:[%s1225_s1 + $0x178] sm:$0xff] }
  0xd3   :  { %455 = vst [vmem:[%s1228_s4 + $0x140] sm:$0xff] %v391_v24  ;;  %v332_v39 = vadd.f32 %v268_v20, %v204_v27  ;;  %456 = vst [vmem:[%s1228_s4 + $0x148] sm:$0xff] %v392_v31  ;;  %v333_v43 = vadd.f32 %v269_v28, %v205_v33  ;;  %v334_v44 = vadd.f32 %v270_v29, %v206_v34  ;;  %v77_v27 = vld [vmem:[%s1224_s0 + $0x1e0] sm:$0xff]  ;;  %v78_v33 = vld [vmem:[%s1224_s0 + $0x1e8] sm:$0xff] }
  0xd4   :  { %v214_v20 = vadd.f32 %v521_v2, %v143_v8  ;;  %v148_v46 = vmul.f32 %v516_v1, %v77_v27  ;;  %v149_v51 = vmul.f32 %v516_v1, %v78_v33 }
  0xd5   :  { %v396_v48 = vmax.f32 %v332_v39, 0.0  ;;  %v397_v55 = vmax.f32 %v333_v43, 0.0  ;;  %v398_v56 = vmax.f32 %v334_v44, 0.0  ;;  %v79_v39 = vld [vmem:[%s1224_s0 + $0x1f0] sm:$0xff]  ;;  %v216_v43 = vadd.f32 %v521_v2, %v145_v32 }
  0xd6   :  { %v219_v53 = vadd.f32 %v521_v2, %v148_v46  ;;  %v220_v60 = vadd.f32 %v521_v2, %v149_v51 }
  0xda   :  { %v271_v45 = vld [vmem:[%s1225_s1 + $0x180] sm:$0xff] }
  0xdb   :  { %457 = vst [vmem:[%s1228_s4 + $0x150] sm:$0xff] %v393_v37  ;;  %458 = vst [vmem:[%s1228_s4 + $0x158] sm:$0xff] %v394_v38  ;;  %v335_v61 = vadd.f32 %v271_v45, %v207_v49  ;;  %v146_v37 = vmul.f32 %v516_v1, %v75_v21  ;;  %v147_v38 = vmul.f32 %v516_v1, %v76_v22 }
  0xdd   :  { %v399_v10 = vmax.f32 %v335_v61, 0.0  ;;  %v218_v49 = vadd.f32 %v521_v2, %v147_v38 }
  0xe2   :  { %v272_v50 = vld [vmem:[%s1225_s1 + $0x188] sm:$0xff] }
  0xe3   :  { %459 = vst [vmem:[%s1228_s4 + $0x160] sm:$0xff] %v395_v42  ;;  %v336_v4 = vadd.f32 %v272_v50, %v208_v57 }
  0xe5   :  { %v400_v17 = vmax.f32 %v336_v4, 0.0 }
  0xea   :  { %v273_v58 = vld [vmem:[%s1225_s1 + $0x190] sm:$0xff]  ;;  %v274_v59 = vld [vmem:[%s1225_s1 + $0x198] sm:$0xff] }
  0xeb   :  { %460 = vst [vmem:[%s1228_s4 + $0x168] sm:$0xff] %v396_v48  ;;  %v337_v11 = vadd.f32 %v273_v58, %v209_v62  ;;  %v338_v12 = vadd.f32 %v274_v59, %v210_v63  ;;  %v217_v48 = vadd.f32 %v521_v2, %v146_v37 }
  0xed   :  { %v401_v23 = vmax.f32 %v337_v11, 0.0  ;;  %v402_v24 = vmax.f32 %v338_v12, 0.0 }
  0xf2   :  { %v275_v0 = vld [vmem:[%s1225_s1 + $0x1a0] sm:$0xff] }
  0xf3   :  { %461 = vst [vmem:[%s1228_s4 + $0x170] sm:$0xff] %v397_v55  ;;  %462 = vst [vmem:[%s1228_s4 + $0x178] sm:$0xff] %v398_v56  ;;  %v339_v18 = vadd.f32 %v275_v0, %v211_v5  ;;  %v150_v55 = vmul.f32 %v516_v1, %v79_v39  ;;  %v151_v56 = vmul.f32 %v516_v1, %v80_v40 }
  0xf5   :  { %v403_v28 = vmax.f32 %v339_v18, 0.0  ;;  %v221_v3 = vadd.f32 %v521_v2, %v150_v55  ;;  %v222_v4 = vadd.f32 %v521_v2, %v151_v56 }
  0xfa   :  { %v276_v6 = vld [vmem:[%s1225_s1 + $0x1a8] sm:$0xff]  ;;  %v277_v14 = vld [vmem:[%s1225_s1 + $0x1b0] sm:$0xff]  ;;  %v278_v15 = vld [vmem:[%s1225_s1 + $0x1b8] sm:$0xff] }
  0xfb   :  { %463 = vst [vmem:[%s1228_s4 + $0x180] sm:$0xff] %v399_v10  ;;  %v340_v25 = vadd.f32 %v276_v6, %v212_v13  ;;  %464 = vst [vmem:[%s1228_s4 + $0x188] sm:$0xff] %v400_v17  ;;  %v341_v29 = vadd.f32 %v277_v14, %v213_v19  ;;  %v342_v30 = vadd.f32 %v278_v15, %v214_v20 }
  0xfd   :  { %v404_v34 = vmax.f32 %v340_v25, 0.0  ;;  %v405_v41 = vmax.f32 %v341_v29, 0.0  ;;  %v406_v42 = vmax.f32 %v342_v30, 0.0 }
 0x102   :  { %v279_v31 = vld [vmem:[%s1225_s1 + $0x1c0] sm:$0xff] }
 0x103   :  { %465 = vst [vmem:[%s1228_s4 + $0x190] sm:$0xff] %v401_v23  ;;  %466 = vst [vmem:[%s1228_s4 + $0x198] sm:$0xff] %v402_v24  ;;  %v343_v47 = vadd.f32 %v279_v31, %v215_v35 }
 0x105   :  { %v407_v57 = vmax.f32 %v343_v47, 0.0 }
 0x10a   :  { %v280_v36 = vld [vmem:[%s1225_s1 + $0x1c8] sm:$0xff] }
 0x10b   :  { %467 = vst [vmem:[%s1228_s4 + $0x1a0] sm:$0xff] %v403_v28  ;;  %v344_v52 = vadd.f32 %v280_v36, %v216_v43 }
 0x10d   :  { %v408_v63 = vmax.f32 %v344_v52, 0.0 }
 0x112   :  { %v281_v44 = vld [vmem:[%s1225_s1 + $0x1d0] sm:$0xff]  ;;  %v282_v45 = vld [vmem:[%s1225_s1 + $0x1d8] sm:$0xff] }
 0x113   :  { %468 = vst [vmem:[%s1228_s4 + $0x1a8] sm:$0xff] %v404_v34  ;;  %v345_v58 = vadd.f32 %v281_v44, %v217_v48  ;;  %v346_v59 = vadd.f32 %v282_v45, %v218_v49 }
 0x115   :  { %v409_v1 = vmax.f32 %v345_v58, 0.0  ;;  %v410_v5 = vmax.f32 %v346_v59, 0.0 }
 0x11a   :  { %v283_v50 = vld [vmem:[%s1225_s1 + $0x1e0] sm:$0xff] }
 0x11b   :  { %469 = vst [vmem:[%s1228_s4 + $0x1b0] sm:$0xff] %v405_v41  ;;  %470 = vst [vmem:[%s1228_s4 + $0x1b8] sm:$0xff] %v406_v42  ;;  %v347_v0 = vadd.f32 %v283_v50, %v219_v53 }
 0x11d   :  { %v411_v7 = vmax.f32 %v347_v0, 0.0 }
 0x122   :  { %v284_v54 = vld [vmem:[%s1225_s1 + $0x1e8] sm:$0xff]  ;;  %v285_v61 = vld [vmem:[%s1225_s1 + $0x1f0] sm:$0xff]  ;;  %v286_v62 = vld [vmem:[%s1225_s1 + $0x1f8] sm:$0xff] }
 0x123   :  { %471 = vst [vmem:[%s1228_s4 + $0x1c0] sm:$0xff] %v407_v57  ;;  %v348_v6 = vadd.f32 %v284_v54, %v220_v60  ;;  %472 = vst [vmem:[%s1228_s4 + $0x1c8] sm:$0xff] %v408_v63  ;;  %v349_v8 = vadd.f32 %v285_v61, %v221_v3  ;;  %v350_v9 = vadd.f32 %v286_v62, %v222_v4 }
 0x124   :  { %473 = vst [vmem:[%s1228_s4 + $0x1d0] sm:$0xff] %v409_v1  ;;  %474 = vst [vmem:[%s1228_s4 + $0x1d8] sm:$0xff] %v410_v5 }
 0x125   :  { %v412_v2 = vmax.f32 %v348_v6, 0.0  ;;  %475 = vst [vmem:[%s1228_s4 + $0x1e0] sm:$0xff] %v411_v7  ;;  %v413_v10 = vmax.f32 %v349_v8, 0.0  ;;  %v414_v11 = vmax.f32 %v350_v9, 0.0 }
 0x127   :  { %476 = vst [vmem:[%s1228_s4 + $0x1e8] sm:$0xff] %v412_v2  ;;  %477 = vst [vmem:[%s1228_s4 + $0x1f0] sm:$0xff] %v413_v10 }
 0x128   :  { %478 = vst [vmem:[%s1228_s4 + $0x1f8] sm:$0xff] %v414_v11 }

// kernel: bottleneck_pallas.6
= control target key start
LH: loop header
LB: loop body
LE: loop exit
PB: predicated region body
PF: predicated region fallthrough
CT: control target
= control target key end

     0   :  { %vm956_vm0 = vcmask 1040384   ;;  %s2134_s1 = inlined_call_operand.vmem [shape: f32[128,128], index: 1, kind: input, shape index: {}]   ;;  %s2135_s0 = inlined_call_operand.vmem [shape: f32[512,128], index: 0, kind: input, shape index: {}]   ;;  %s2136_s2 = inlined_call_operand.vmem [shape: f32[1,128], index: 2, kind: input, shape index: {}]   ;;  %s2137_s3 = inlined_call_operand.vmem [shape: f32[1,128], index: 3, kind: input, shape index: {}]   ;;  %s2138_s4 = inlined_call_operand.vmem [shape: f32[512,128], index: 4, kind: output, shape index: {0}]   ;;  %s2139_s5 = inlined_call_operand.vmem [shape: f32[1,2,128], index: 5, kind: output, shape index: {1}]  }
   0x1   :  { %v289_v0 = vld [vmem:[%s2134_s1] sm:$0xff]  ;;  %v290_v1 = vld [vmem:[%s2134_s1 + $0x8] sm:$0xff]  ;;  %v291_v2 = vld [vmem:[%s2134_s1 + $0x10] sm:$0xff] }
   0x2   :  { %v1177_v3 = vpack.c.bf16 %v290_v1, %v289_v0  ;;  %v292_v4 = vld [vmem:[%s2134_s1 + $0x18] sm:$0xff]  ;;  %v293_v6 = vld [vmem:[%s2134_s1 + $0x20] sm:$0xff]  ;;  %v294_v7 = vld [vmem:[%s2134_s1 + $0x28] sm:$0xff] }
   0x3   :  { %v1181_v5 = vpack.c.bf16 %v292_v4, %v291_v2  ;;  %v1185_v8 = vpack.c.bf16 %v294_v7, %v293_v6  ;;  %v19_v9 = vld [vmem:[%s2135_s0] sm:$0xff]  ;;  %v295_v11 = vld [vmem:[%s2134_s1 + $0x30] sm:$0xff]  ;;  %v296_v12 = vld [vmem:[%s2134_s1 + $0x38] sm:$0xff] }
   0x4   :  { %1178 = vmatprep.subr.bf16.mxu0 %v1177_v3  ;;  %1209 = vmatprep.subr.bf16.mxu1 %v1177_v3  ;;  %v1279_v10 = vld [vmem:[%s2136_s2] ss:$0 sm:$0xff]  ;;  %v1189_v16 = vpack.c.bf16 %v296_v12, %v295_v11  ;;  %v298_v18 = vld [vmem:[%s2134_s1 + $0x48] sm:$0xff]  ;;  %v299_v21 = vld [vmem:[%s2134_s1 + $0x50] sm:$0xff] }
   0x5   :  { %1180 = vmatpush3.bf16.msra.mxu0 %v1177_v3  ;;  %1217 = vmatpush3.bf16.msra.mxu1 %v1177_v3  ;;  %v90_v13 = vmul.f32 %v1279_v10, %v19_v9  ;;  %v1291_v14 = vld [vmem:[%s2137_s3] ss:$0 sm:$0xff]  ;;  %v300_v22 = vld [vmem:[%s2134_s1 + $0x58] sm:$0xff]  ;;  %v302_v25 = vld [vmem:[%s2134_s1 + $0x68] sm:$0xff] }
   0x6   :  { %1182 = vmatprep.subr.bf16.mxu0 %v1181_v5  ;;  %1210 = vmatprep.subr.bf16.mxu1 %v1181_v5  ;;  %v297_v17 = vld [vmem:[%s2134_s1 + $0x40] sm:$0xff]  ;;  %v1197_v23 = vpack.c.bf16 %v300_v22, %v299_v21  ;;  %v20_v26 = vld [vmem:[%s2135_s0 + $0x8] sm:$0xff]  ;;  %v21_v27 = vld [vmem:[%s2135_s0 + $0x10] sm:$0xff] }
   0x7   :  { %v161_v15 = vadd.f32 %v1291_v14, %v90_v13  ;;  %v1193_v20 = vpack.c.bf16 %v298_v18, %v297_v17  ;;  %v301_v24 = vld [vmem:[%s2134_s1 + $0x60] sm:$0xff]  ;;  %v41_v28 = vld [vmem:[%s2135_s0 + $0xb0] sm:$0xff]  ;;  %v42_v29 = vld [vmem:[%s2135_s0 + $0xb8] sm:$0xff]  ;;  %v91_v32 = vmul.f32 %v1279_v10, %v20_v26  ;;  %v92_v35 = vmul.f32 %v1279_v10, %v21_v27 }
   0x8   :  { %v303_v30 = vld [vmem:[%s2134_s1 + $0x70] sm:$0xff]  ;;  %v304_v31 = vld [vmem:[%s2134_s1 + $0x78] sm:$0xff]  ;;  %v1201_v34 = vpack.c.bf16 %v302_v25, %v301_v24  ;;  %v23_v36 = vld [vmem:[%s2135_s0 + $0x20] sm:$0xff]  ;;  %v112_v38 = vmul.f32 %v1279_v10, %v41_v28  ;;  %v113_v39 = vmul.f32 %v1279_v10, %v42_v29 }
   0x9   :  { %1184 = vmatpush3.bf16.msra.mxu0 %v1181_v5  ;;  %v225_v19 = vmax.f32 %v161_v15, 0.0  ;;  %1218 = vmatpush3.bf16.msra.mxu1 %v1181_v5  ;;  %v22_v33 = vld [vmem:[%s2135_s0 + $0x18] sm:$0xff]  ;;  %v24_v37 = vld [vmem:[%s2135_s0 + $0x28] sm:$0xff]  ;;  %v43_v40 = vld [vmem:[%s2135_s0 + $0xc0] sm:$0xff]  ;;  %v1355_v44 = vpack.c.bf16 %v304_v31, %v303_v30  ;;  %v1374_v51 = vadd.f32 %v1291_v14, %v91_v32  ;;  %v94_v52 = vmul.f32 %v1279_v10, %v23_v36 }
   0xa   :  { %1186 = vmatprep.subr.bf16.mxu0 %v1185_v8  ;;  %1211 = vmatprep.subr.bf16.mxu1 %v1185_v8  ;;  %v25_v41 = vld [vmem:[%s2135_s0 + $0x30] sm:$0xff]  ;;  %v44_v42 = vld [vmem:[%s2135_s0 + $0xc8] sm:$0xff]  ;;  %v93_v45 = vmul.f32 %v1279_v10, %v22_v33  ;;  %v1359_v46 = vadd.f32 %v1291_v14, %v112_v38  ;;  %v1362_v47 = vadd.f32 %v1291_v14, %v113_v39  ;;  %v46_v48 = vld [vmem:[%s2135_s0 + $0xd8] sm:$0xff] }
   0xb   :  { %1081 = vmatprep.mubr.f32.mxu0 %v225_v19  ;;  %v45_v43 = vld [vmem:[%s2135_s0 + $0xd0] sm:$0xff]  ;;  %v47_v49 = vld [vmem:[%s2135_s0 + $0xe0] sm:$0xff]  ;;  %v48_v50 = vld [vmem:[%s2135_s0 + $0xe8] sm:$0xff]  ;;  %v95_v53 = vmul.f32 %v1279_v10, %v24_v37  ;;  %v114_v54 = vmul.f32 %v1279_v10, %v43_v40  ;;  %v1386_v57 = vadd.f32 %v1291_v14, %v92_v35  ;;  %v96_v58 = vmul.f32 %v1279_v10, %v25_v41 }
   0xc   :  { %v49_v55 = vld [vmem:[%s2135_s0 + $0xf0] sm:$0xff]  ;;  %v50_v56 = vld [vmem:[%s2135_s0 + $0xf8] sm:$0xff]  ;;  %v115_v59 = vmul.f32 %v1279_v10, %v44_v42  ;;  %v116_v60 = vmul.f32 %v1279_v10, %v45_v43  ;;  %v117_v63 = vmul.f32 %v1279_v10, %v46_v48  ;;  %v118_v0 = vmul.f32 %v1279_v10, %v47_v49  ;;  %v51_v6 = vld [vmem:[%s2135_s0 + $0x100] sm:$0xff] }
   0xd   :  { %1188 = vmatpush3.bf16.msra.mxu0 %v1185_v8  ;;  %1219 = vmatpush3.bf16.msra.mxu1 %v1185_v8  ;;  %v26_v61 = vld [vmem:[%s2135_s0 + $0x38] sm:$0xff]  ;;  %v1395_v62 = vadd.f32 %v1291_v14, %v114_v54  ;;  %v119_v1 = vmul.f32 %v1279_v10, %v48_v50  ;;  %v120_v4 = vmul.f32 %v1279_v10, %v49_v55  ;;  %v52_v12 = vld [vmem:[%s2135_s0 + $0x108] sm:$0xff]  ;;  %v53_v13 = vld [vmem:[%s2135_s0 + $0x110] sm:$0xff]  ;;  %v227_v26 = vmax.f32 %v1386_v57, 0.0 }
   0xe   :  { %1190 = vmatprep.subr.bf16.mxu0 %v1189_v16  ;;  %1212 = vmatprep.subr.bf16.mxu1 %v1189_v16  ;;  %v1401_v2 = vadd.f32 %v1291_v14, %v115_v59  ;;  %v1404_v3 = vadd.f32 %v1291_v14, %v116_v60  ;;  %v121_v5 = vmul.f32 %v1279_v10, %v50_v56  ;;  %v54_v18 = vld [vmem:[%s2135_s0 + $0x118] sm:$0xff]  ;;  %v55_v19 = vld [vmem:[%s2135_s0 + $0x120] sm:$0xff]  ;;  %v56_v25 = vld [vmem:[%s2135_s0 + $0x128] sm:$0xff] }
   0xf   :  { %v1412_v7 = vadd.f32 %v1291_v14, %v93_v45  ;;  %v1415_v8 = vadd.f32 %v1291_v14, %v117_v63  ;;  %v1418_v9 = vadd.f32 %v1291_v14, %v118_v0  ;;  %v1421_v11 = vadd.f32 %v1291_v14, %v119_v1  ;;  %v57_v30 = vld [vmem:[%s2135_s0 + $0x130] sm:$0xff]  ;;  %v28_v32 = vld [vmem:[%s2135_s0 + $0x48] sm:$0xff]  ;;  %v58_v41 = vld [vmem:[%s2135_s0 + $0x138] sm:$0xff] }
  0x10   :  { %v97_v15 = vmul.f32 %v1279_v10, %v26_v61  ;;  %v1435_v17 = vadd.f32 %v1291_v14, %v121_v5  ;;  %v1445_v21 = vadd.f32 %v1291_v14, %v94_v52  ;;  %v1448_v22 = vadd.f32 %v1291_v14, %v95_v53  ;;  %v29_v33 = vld [vmem:[%s2135_s0 + $0x50] sm:$0xff]  ;;  %v30_v42 = vld [vmem:[%s2135_s0 + $0x58] sm:$0xff]  ;;  %v31_v52 = vld [vmem:[%s2135_s0 + $0x60] sm:$0xff] }
  0x11   :  { %1192 = vmatpush3.bf16.msra.mxu0 %v1189_v16  ;;  %1220 = vmatpush3.bf16.msra.mxu1 %v1189_v16  ;;  %v1432_v16 = vadd.f32 %v1291_v14, %v120_v4  ;;  %v122_v24 = vmul.f32 %v1279_v10, %v51_v6  ;;  %v1459_v27 = vadd.f32 %v1291_v14, %v96_v58  ;;  %v228_v31 = vmax.f32 %v1412_v7, 0.0  ;;  %v32_v58 = vld [vmem:[%s2135_s0 + $0x68] sm:$0xff]  ;;  %v33_v59 = vld [vmem:[%s2135_s0 + $0x70] sm:$0xff]  ;;  %v34_v0 = vld [vmem:[%s2135_s0 + $0x78] sm:$0xff] }
  0x12   :  { %1194 = vmatprep.subr.bf16.mxu0 %v1193_v20  ;;  %1213 = vmatprep.subr.bf16.mxu1 %v1193_v20  ;;  %v123_v28 = vmul.f32 %v1279_v10, %v52_v12  ;;  %v124_v29 = vmul.f32 %v1279_v10, %v53_v13  ;;  %v125_v35 = vmul.f32 %v1279_v10, %v54_v18  ;;  %v229_v55 = vmax.f32 %v1445_v21, 0.0  ;;  %v60_v13 = vld [vmem:[%s2135_s0 + $0x148] sm:$0xff] }
  0x13   :  { %v126_v36 = vmul.f32 %v1279_v10, %v55_v19  ;;  %v127_v40 = vmul.f32 %v1279_v10, %v56_v25  ;;  %v128_v49 = vmul.f32 %v1279_v10, %v57_v30  ;;  %v99_v50 = vmul.f32 %v1279_v10, %v28_v32  ;;  %v72_v32 = vld [vmem:[%s2135_s0 + $0x1a8] sm:$0xff] }
  0x14   :  { %v194_v38 = vadd.f32 %v1291_v14, %v123_v28  ;;  %v195_v39 = vadd.f32 %v1291_v14, %v124_v29  ;;  %v196_v45 = vadd.f32 %v1291_v14, %v125_v35  ;;  %v230_v56 = vmax.f32 %v1448_v22, 0.0 }
  0x15   :  { %1196 = vmatpush3.bf16.msra.mxu0 %v1193_v20  ;;  %1221 = vmatpush3.bf16.msra.mxu1 %v1193_v20  ;;  %v226_v20 = vmax.f32 %v1374_v51, 0.0  ;;  %v197_v48 = vadd.f32 %v1291_v14, %v126_v36  ;;  %v100_v51 = vmul.f32 %v1279_v10, %v29_v33  ;;  %v1503_v57 = vadd.f32 %v1291_v14, %v97_v15  ;;  %v61_v15 = vld [vmem:[%s2135_s0 + $0x150] sm:$0xff] }
  0x16   :  { %1198 = vmatprep.subr.bf16.mxu0 %v1197_v23  ;;  %1214 = vmatprep.subr.bf16.mxu1 %v1197_v23  ;;  %v258_v53 = vmax.f32 %v194_v38, 0.0  ;;  %v259_v54 = vmax.f32 %v195_v39, 0.0  ;;  %v129_v60 = vmul.f32 %v1279_v10, %v58_v41  ;;  %v101_v63 = vmul.f32 %v1279_v10, %v30_v42  ;;  %v74_v38 = vld [vmem:[%s2135_s0 + $0x1b8] sm:$0xff] }
  0x17   :  { %v260_v1 = vmax.f32 %v196_v45, 0.0  ;;  %v198_v4 = vadd.f32 %v1291_v14, %v127_v40  ;;  %v102_v5 = vmul.f32 %v1279_v10, %v31_v52  ;;  %v261_v6 = vmax.f32 %v197_v48, 0.0 }
  0x18   :  { %v199_v7 = vadd.f32 %v1291_v14, %v128_v49  ;;  %v1530_v18 = vadd.f32 %v1291_v14, %v99_v50  ;;  %v1533_v19 = vadd.f32 %v1291_v14, %v100_v51  ;;  %v104_v21 = vmul.f32 %v1279_v10, %v33_v59  ;;  %v64_v50 = vld [vmem:[%s2135_s0 + $0x168] sm:$0xff] }
  0x19   :  { %1200 = vmatpush3.bf16.msra.mxu0 %v1197_v23  ;;  %1222 = vmatpush3.bf16.msra.mxu1 %v1197_v23  ;;  %v27_v23 = vld [vmem:[%s2135_s0 + $0x40] sm:$0xff]  ;;  %v231_v22 = vmax.f32 %v1459_v27, 0.0  ;;  %v200_v25 = vadd.f32 %v1291_v14, %v129_v60  ;;  %v262_v28 = vmax.f32 %v198_v4, 0.0  ;;  %v131_v29 = vmul.f32 %v1279_v10, %v60_v13 }
  0x1a   :  { %1202 = vmatprep.subr.bf16.mxu0 %v1201_v34  ;;  %1215 = vmatprep.subr.bf16.mxu1 %v1201_v34  ;;  %v98_v37 = vmul.f32 %v1279_v10, %v27_v23  ;;  %v232_v23 = vmax.f32 %v1503_v57, 0.0  ;;  %v132_v30 = vmul.f32 %v1279_v10, %v61_v15  ;;  %v63_v27 = vld [vmem:[%s2135_s0 + $0x160] sm:$0xff]  ;;  %v1556_v33 = vadd.f32 %v1291_v14, %v101_v63  ;;  %v77_v63 = vld [vmem:[%s2135_s0 + $0x1d0] sm:$0xff] }
  0x1b   :  { %v263_v35 = vmax.f32 %v199_v7, 0.0  ;;  %v234_v39 = vmax.f32 %v1530_v18, 0.0  ;;  %v235_v40 = vmax.f32 %v1533_v19, 0.0  ;;  %v1574_v42 = vadd.f32 %v1291_v14, %v104_v21  ;;  %v79_v7 = vld [vmem:[%s2135_s0 + $0x1e0] sm:$0xff]  ;;  %v82_v21 = vld [vmem:[%s2135_s0 + $0x1f8] sm:$0xff] }
  0x1c   :  { %v1513_v61 = vadd.f32 %v1291_v14, %v98_v37  ;;  %v73_v37 = vld [vmem:[%s2135_s0 + $0x1b0] sm:$0xff]  ;;  %v264_v45 = vmax.f32 %v200_v25, 0.0  ;;  %v134_v49 = vmul.f32 %v1279_v10, %v63_v27  ;;  %v143_v51 = vmul.f32 %v1279_v10, %v72_v32  ;;  %v66_v25 = vld [vmem:[%s2135_s0 + $0x178] sm:$0xff]  ;;  %v67_v32 = vld [vmem:[%s2135_s0 + $0x180] sm:$0xff] }
  0x1d   :  { %1204 = vmatpush3.bf16.msra.mxu0 %v1201_v34  ;;  %1223 = vmatpush3.bf16.msra.mxu1 %v1201_v34  ;;  %v193_v34 = vadd.f32 %v1291_v14, %v122_v24  ;;  %v1540_v24 = vmul.f32 %v1279_v10, %v34_v0  ;;  %v202_v52 = vadd.f32 %v1291_v14, %v131_v29  ;;  %v236_v57 = vmax.f32 %v1556_v33, 0.0 }
  0x1e   :  { %1206 = vmatprep.subr.bf16.mxu0 %v1355_v44  ;;  %1216 = vmatprep.subr.bf16.mxu1 %v1355_v44  ;;  %v1598_v60 = vadd.f32 %v1291_v14, %v143_v51  ;;  %v205_v15 = vadd.f32 %v1291_v14, %v134_v49 }
  0x1f   :  { %v257_v43 = vmax.f32 %v193_v34, 0.0  ;;  %v1559_v34 = vadd.f32 %v1291_v14, %v102_v5 }
  0x21   :  { %1208 = vmatpush3.bf16.msra.mxu0 %v1355_v44  ;;  %1224 = vmatpush3.bf16.msra.mxu1 %v1355_v44  ;;  %v59_v44 = vld [vmem:[%s2135_s0 + $0x140] sm:$0xff] }
  0x22   :  { %1129 = vmatprep.mubr.f32.mxu1 %v257_v43  ;;  %v130_v12 = vmul.f32 %v1279_v10, %v59_v44  ;;  %v35_v43 = vld [vmem:[%s2135_s0 + $0x80] sm:$0xff]  ;;  %v144_v44 = vmul.f32 %v1279_v10, %v73_v37  ;;  %v36_v37 = vld [vmem:[%s2135_s0 + $0x88] sm:$0xff] }
  0x23   :  { %v106_v0 = vmul.f32 %v1279_v10, %v35_v43 }
  0x24   :  { %1082 = vmatmul.mubr.f32.vlgmr.msra.gmra.mrb[0].mxu0 %v226_v20  ;;  %1130 = vmatmul.mubr.f32.vlgmr.msra.gmra.mrb[0].mxu1 %v258_v53  ;;  %v103_v20 = vmul.f32 %v1279_v10, %v32_v58  ;;  %v201_v36 = vadd.f32 %v1291_v14, %v130_v12  ;;  %v203_v53 = vadd.f32 %v1291_v14, %v132_v30  ;;  %v237_v58 = vmax.f32 %v1559_v34, 0.0  ;;  %v80_v12 = vld [vmem:[%s2135_s0 + $0x1e8] sm:$0xff] }
  0x25   :  { %1084 = vmatprep.mubr.f32.mxu0 %v227_v26  ;;  %1132 = vmatprep.mubr.f32.mxu1 %v259_v54  ;;  %v233_v26 = vmax.f32 %v1513_v61, 0.0  ;;  %v65_v54 = vld [vmem:[%s2135_s0 + $0x170] sm:$0xff]  ;;  %v76_v61 = vld [vmem:[%s2135_s0 + $0x1c8] sm:$0xff]  ;;  %v1609_v4 = vadd.f32 %v1291_v14, %v144_v44  ;;  %v151_v27 = vmul.f32 %v1279_v10, %v80_v12 }
  0x26   :  { %v1571_v41 = vadd.f32 %v1291_v14, %v103_v20  ;;  %v265_v59 = vmax.f32 %v201_v36, 0.0  ;;  %v136_v18 = vmul.f32 %v1279_v10, %v65_v54  ;;  %v81_v20 = vld [vmem:[%s2135_s0 + $0x1f0] sm:$0xff]  ;;  %v153_v36 = vmul.f32 %v1279_v10, %v82_v21  ;;  %v68_v44 = vld [vmem:[%s2135_s0 + $0x188] sm:$0xff] }
  0x27   :  { %v138_v54 = vmul.f32 %v1279_v10, %v67_v32 }
  0x28   :  { %1085 = vmatmul.mubr.f32.gmra.mrb[2].mxu0 %v228_v31  ;;  %1133 = vmatmul.mubr.f32.gmra.mrb[2].mxu1 %v260_v1  ;;  %v62_v31 = vld [vmem:[%s2135_s0 + $0x158] sm:$0xff]  ;;  %v135_v1 = vmul.f32 %v1279_v10, %v64_v50  ;;  %v1676_v51 = vadd.f32 %v1291_v14, %v153_v36 }
  0x29   :  { %1087 = vmatprep.mubr.f32.mxu0 %v229_v55  ;;  %1135 = vmatprep.mubr.f32.mxu1 %v261_v6  ;;  %v133_v48 = vmul.f32 %v1279_v10, %v62_v31  ;;  %v145_v55 = vmul.f32 %v1279_v10, %v74_v38  ;;  %v78_v6 = vld [vmem:[%s2135_s0 + $0x1d8] sm:$0xff]  ;;  %v150_v31 = vmul.f32 %v1279_v10, %v79_v7 }
  0x2a   :  { %v149_v30 = vmul.f32 %v1279_v10, %v78_v6  ;;  %v137_v38 = vmul.f32 %v1279_v10, %v66_v25  ;;  %v206_v49 = vadd.f32 %v1291_v14, %v135_v1  ;;  %v177_v1 = vadd.f32 %v1291_v14, %v106_v0  ;;  %v40_v25 = vld [vmem:[%s2135_s0 + $0xa8] sm:$0xff] }
  0x2b   :  { %v1612_v5 = vadd.f32 %v1291_v14, %v145_v55  ;;  %v204_v13 = vadd.f32 %v1291_v14, %v133_v48  ;;  %v1663_v43 = vadd.f32 %v1291_v14, %v150_v31  ;;  %v37_v48 = vld [vmem:[%s2135_s0 + $0x90] sm:$0xff]  ;;  %v238_v55 = vmax.f32 %v1571_v41, 0.0  ;;  %v38_v41 = vld [vmem:[%s2135_s0 + $0x98] sm:$0xff] }
  0x2c   :  { %1088 = vmatmul.mubr.f32.gmra.mrb[4].mxu0 %v230_v56  ;;  %1136 = vmatmul.mubr.f32.gmra.mrb[4].mxu1 %v262_v28  ;;  %v75_v56 = vld [vmem:[%s2135_s0 + $0x1c0] sm:$0xff]  ;;  %v148_v28 = vmul.f32 %v1279_v10, %v77_v63  ;;  %v239_v63 = vmax.f32 %v1574_v42, 0.0  ;;  %v108_v6 = vmul.f32 %v1279_v10, %v37_v48  ;;  %v208_v7 = vadd.f32 %v1291_v14, %v137_v38 }
  0x2d   :  { %1090 = vmatprep.mubr.f32.mxu0 %v231_v22  ;;  %1138 = vmatprep.mubr.f32.mxu1 %v263_v35  ;;  %v146_v19 = vmul.f32 %v1279_v10, %v75_v56  ;;  %v266_v22 = vmax.f32 %v202_v52, 0.0  ;;  %v152_v35 = vmul.f32 %v1279_v10, %v81_v20  ;;  %v269_v52 = vmax.f32 %v205_v15, 0.0  ;;  %v71_v20 = vld [vmem:[%s2135_s0 + $0x1a0] sm:$0xff] }
  0x2e   :  { %v1651_v34 = vadd.f32 %v1291_v14, %v148_v28  ;;  %v176_v56 = vadd.f32 %v1291_v14, %v1540_v24  ;;  %v39_v24 = vld [vmem:[%s2135_s0 + $0xa0] sm:$0xff]  ;;  %v209_v0 = vadd.f32 %v1291_v14, %v138_v54  ;;  %v241_v21 = vmax.f32 %v177_v1, 0.0 }
  0x2f   :  { %v1639_v29 = vadd.f32 %v1291_v14, %v146_v19  ;;  %v1673_v50 = vadd.f32 %v1291_v14, %v152_v35  ;;  %v109_v19 = vmul.f32 %v1279_v10, %v38_v41  ;;  %v142_v32 = vmul.f32 %v1279_v10, %v71_v20 }
  0x30   :  { %1091 = vmatmul.mubr.f32.gmra.mrb[6].mxu0 %v232_v23  ;;  %1139 = vmatmul.mubr.f32.gmra.mrb[6].mxu1 %v264_v45  ;;  %v267_v23 = vmax.f32 %v203_v53, 0.0  ;;  %v1666_v45 = vadd.f32 %v1291_v14, %v151_v27  ;;  %v207_v53 = vadd.f32 %v1291_v14, %v136_v18  ;;  %v240_v15 = vmax.f32 %v176_v56, 0.0 }
  0x31   :  { %1093 = vmatprep.mubr.f32.mxu0 %v233_v26  ;;  %v147_v26 = vmul.f32 %v1279_v10, %v76_v61  ;;  %1141 = vmatprep.mubr.f32.mxu1 %v265_v59  ;;  %v107_v59 = vmul.f32 %v1279_v10, %v36_v37  ;;  %v69_v61 = vld [vmem:[%s2135_s0 + $0x190] sm:$0xff]  ;;  %v273_v31 = vmax.f32 %v209_v0, 0.0  ;;  %v180_v36 = vadd.f32 %v1291_v14, %v109_v19 }
  0x32   :  { %v271_v42 = vmax.f32 %v207_v53, 0.0  ;;  %v140_v12 = vmul.f32 %v1279_v10, %v69_v61  ;;  %v111_v37 = vmul.f32 %v1279_v10, %v40_v25  ;;  %v213_v53 = vadd.f32 %v1291_v14, %v142_v32 }
  0x33   :  { %v1648_v33 = vadd.f32 %v1291_v14, %v147_v26  ;;  %v178_v18 = vadd.f32 %v1291_v14, %v107_v59  ;;  %v272_v26 = vmax.f32 %v208_v7, 0.0  ;;  %v244_v54 = vmax.f32 %v180_v36, 0.0 }
  0x34   :  { %1094 = vmatmul.mubr.f32.gmra.mrb[8].mxu0 %v234_v39  ;;  %v1660_v39 = vadd.f32 %v1291_v14, %v149_v30  ;;  %1142 = vmatmul.mubr.f32.gmra.mrb[8].mxu1 %v266_v22  ;;  %v179_v22 = vadd.f32 %v1291_v14, %v108_v6  ;;  %v211_v27 = vadd.f32 %v1291_v14, %v140_v12  ;;  %v277_v56 = vmax.f32 %v213_v53, 0.0 }
  0x35   :  { %1096 = vmatprep.mubr.f32.mxu0 %v235_v40  ;;  %v268_v40 = vmax.f32 %v204_v13, 0.0  ;;  %1144 = vmatprep.mubr.f32.mxu1 %v267_v23  ;;  %v70_v13 = vld [vmem:[%s2135_s0 + $0x198] sm:$0xff]  ;;  %v110_v23 = vmul.f32 %v1279_v10, %v39_v24  ;;  %v242_v35 = vmax.f32 %v178_v18, 0.0  ;;  %v247_v61 = vmax.f32 %v1359_v46, 0.0 }
  0x36   :  { %v141_v30 = vmul.f32 %v1279_v10, %v70_v13  ;;  %v243_v38 = vmax.f32 %v179_v22, 0.0  ;;  %v279_v1 = vmax.f32 %v1609_v4, 0.0  ;;  %v249_v6 = vmax.f32 %v1395_v62, 0.0 }
  0x37   :  { %v181_v48 = vadd.f32 %v1291_v14, %v110_v23  ;;  %v280_v41 = vmax.f32 %v1612_v5, 0.0  ;;  %v281_v24 = vmax.f32 %v1639_v29, 0.0  ;;  %v250_v46 = vmax.f32 %v1401_v2, 0.0 }
  0x38   :  { %1097 = vmatmul.mubr.f32.gmra.mrb[10].mxu0 %v236_v57  ;;  %1145 = vmatmul.mubr.f32.gmra.mrb[10].mxu1 %v268_v40  ;;  %v270_v57 = vmax.f32 %v206_v49, 0.0  ;;  %v212_v49 = vadd.f32 %v1291_v14, %v141_v30  ;;  %v282_v4 = vmax.f32 %v1648_v33, 0.0  ;;  %v252_v62 = vmax.f32 %v1415_v8, 0.0 }
  0x39   :  { %1099 = vmatprep.mubr.f32.mxu0 %v237_v58  ;;  %v139_v58 = vmul.f32 %v1279_v10, %v68_v44  ;;  %1147 = vmatprep.mubr.f32.mxu1 %v269_v52  ;;  %v275_v52 = vmax.f32 %v211_v27, 0.0  ;;  %v182_v44 = vadd.f32 %v1291_v14, %v111_v37  ;;  %v253_v5 = vmax.f32 %v1418_v9, 0.0 }
  0x3a   :  { %v276_v10 = vmax.f32 %v212_v49, 0.0  ;;  %v284_v29 = vmax.f32 %v1660_v39, 0.0  ;;  %v285_v2 = vmax.f32 %v1663_v43, 0.0  ;;  %v255_v33 = vmax.f32 %v1432_v16, 0.0 }
  0x3b   :  { %v210_v28 = vadd.f32 %v1291_v14, %v139_v58  ;;  %v246_v59 = vmax.f32 %v182_v44, 0.0  ;;  %v248_v14 = vmax.f32 %v1362_v47, 0.0  ;;  %v283_v47 = vmax.f32 %v1651_v34, 0.0 }
  0x3c   :  { %1100 = vmatmul.mubr.f32.gmra.mrb[12].mxu0 %v238_v55  ;;  %1148 = vmatmul.mubr.f32.gmra.mrb[12].mxu1 %v270_v57  ;;  %v245_v55 = vmax.f32 %v181_v48, 0.0  ;;  %v286_v34 = vmax.f32 %v1666_v45, 0.0  ;;  %v287_v8 = vmax.f32 %v1673_v50, 0.0  ;;  %v256_v9 = vmax.f32 %v1435_v17, 0.0 }
  0x3d   :  { %1102 = vmatprep.mubr.f32.mxu0 %v239_v63  ;;  %1150 = vmatprep.mubr.f32.mxu1 %v271_v42  ;;  %v274_v40 = vmax.f32 %v210_v28, 0.0  ;;  %v278_v63 = vmax.f32 %v1598_v60, 0.0  ;;  %v251_v60 = vmax.f32 %v1404_v3, 0.0  ;;  %v254_v3 = vmax.f32 %v1421_v11, 0.0 }
  0x3e   :  { %v288_v39 = vmax.f32 %v1676_v51, 0.0 }
  0x40   :  { %1103 = vmatmul.mubr.f32.gmra.mrb[14].mxu0 %v240_v15  ;;  %1151 = vmatmul.mubr.f32.gmra.mrb[14].mxu1 %v272_v26 }
  0x41   :  { %1105 = vmatprep.mubr.f32.mxu0 %v241_v21  ;;  %1153 = vmatprep.mubr.f32.mxu1 %v273_v31 }
  0x44   :  { %1106 = vmatmul.mubr.f32.gmra.mrb[16].mxu0 %v242_v35  ;;  %1154 = vmatmul.mubr.f32.gmra.mrb[16].mxu1 %v274_v40 }
  0x45   :  { %1108 = vmatprep.mubr.f32.mxu0 %v243_v38  ;;  %1156 = vmatprep.mubr.f32.mxu1 %v275_v52 }
  0x48   :  { %1109 = vmatmul.mubr.f32.gmra.mrb[18].mxu0 %v244_v54  ;;  %1157 = vmatmul.mubr.f32.gmra.mrb[18].mxu1 %v276_v10 }
  0x49   :  { %1111 = vmatprep.mubr.f32.mxu0 %v245_v55  ;;  %1159 = vmatprep.mubr.f32.mxu1 %v277_v56 }
  0x4c   :  { %1112 = vmatmul.mubr.f32.gmra.mrb[20].mxu0 %v246_v59  ;;  %1160 = vmatmul.mubr.f32.gmra.mrb[20].mxu1 %v278_v63 }
  0x4d   :  { %1114 = vmatprep.mubr.f32.mxu0 %v247_v61  ;;  %1162 = vmatprep.mubr.f32.mxu1 %v279_v1 }
  0x50   :  { %1115 = vmatmul.mubr.f32.gmra.mrb[22].mxu0 %v248_v14  ;;  %1163 = vmatmul.mubr.f32.gmra.mrb[22].mxu1 %v280_v41 }
  0x51   :  { %1117 = vmatprep.mubr.f32.mxu0 %v249_v6  ;;  %1165 = vmatprep.mubr.f32.mxu1 %v281_v24 }
  0x54   :  { %1118 = vmatmul.mubr.f32.gmra.mrb[24].mxu0 %v250_v46  ;;  %1166 = vmatmul.mubr.f32.gmra.mrb[24].mxu1 %v282_v4 }
  0x55   :  { %1120 = vmatprep.mubr.f32.mxu0 %v251_v60  ;;  %1168 = vmatprep.mubr.f32.mxu1 %v283_v47 }
  0x58   :  { %1121 = vmatmul.mubr.f32.gmra.mrb[26].mxu0 %v252_v62  ;;  %1169 = vmatmul.mubr.f32.gmra.mrb[26].mxu1 %v284_v29 }
  0x59   :  { %1123 = vmatprep.mubr.f32.mxu0 %v253_v5  ;;  %1171 = vmatprep.mubr.f32.mxu1 %v285_v2 }
  0x5c   :  { %1124 = vmatmul.mubr.f32.gmra.mrb[28].mxu0 %v254_v3  ;;  %1172 = vmatmul.mubr.f32.gmra.mrb[28].mxu1 %v286_v34 }
  0x5d   :  { %1126 = vmatprep.mubr.f32.mxu0 %v255_v33  ;;  %1174 = vmatprep.mubr.f32.mxu1 %v287_v8 }
  0x60   :  { %1127 = vmatmul.mubr.f32.gmra.mrb[30].mxu0 %v256_v9  ;;  %1175 = vmatmul.mubr.f32.gmra.mrb[30].mxu1 %v288_v39 }
  0xf7   :  { %v1083_v11 = vpop.f32.mrb[0].mxu0  ;;  %v1753_v50 = vpop.f32.mrb[0].mxu1 }
  0xf8   :  { %691 = vst [vmem:[%s2138_s4 + $0x8] sm:$0xff] %v1083_v11  ;;  %v824_v16 = vmul.f32 %v1083_v11, %v1083_v11  ;;  %v371_v43 = vpop.f32.mrb[1].mxu0  ;;  %723 = vst [vmem:[%s2138_s4 + $0x108] sm:$0xff] %v1753_v50  ;;  %v1759_v51 = vpop.f32.mrb[1].mxu1 }
  0xf9   :  { %690 = vst [vmem:[%s2138_s4] sm:$0xff] %v371_v43  ;;  %v754_v45 = vadd.f32 %v1083_v11, %v371_v43  ;;  %v823_v17 = vmul.f32 %v371_v43, %v371_v43  ;;  %722 = vst [vmem:[%s2138_s4 + $0x100] sm:$0xff] %v1759_v51 }
  0xfb   :  { %v887_v57 = vadd.f32 %v824_v16, %v823_v17  ;;  %v1086_v7 = vpop.f32.mrb[2].mxu0  ;;  %v1771_v12 = vpop.f32.mrb[2].mxu1 }
  0xfc   :  { %693 = vst [vmem:[%s2138_s4 + $0x18] sm:$0xff] %v1086_v7  ;;  %v381_v58 = vpop.f32.mrb[3].mxu0  ;;  %725 = vst [vmem:[%s2138_s4 + $0x118] sm:$0xff] %v1771_v12  ;;  %v1777_v13 = vpop.f32.mrb[3].mxu1  ;;  %v826_v15 = vmul.f32 %v1086_v7, %v1086_v7 }
  0xfd   :  { %692 = vst [vmem:[%s2138_s4 + $0x10] sm:$0xff] %v381_v58  ;;  %v755_v42 = vadd.f32 %v754_v45, %v381_v58  ;;  %v825_v0 = vmul.f32 %v381_v58, %v381_v58  ;;  %724 = vst [vmem:[%s2138_s4 + $0x110] sm:$0xff] %v1777_v13 }
  0xff   :  { %v888_v18 = vadd.f32 %v887_v57, %v825_v0  ;;  %v1089_v19 = vpop.f32.mrb[4].mxu0  ;;  %v756_v20 = vadd.f32 %v1086_v7, %v755_v42  ;;  %v1789_v26 = vpop.f32.mrb[4].mxu1 }
 0x100   :  { %695 = vst [vmem:[%s2138_s4 + $0x28] sm:$0xff] %v1089_v19  ;;  %v391_v21 = vpop.f32.mrb[5].mxu0  ;;  %727 = vst [vmem:[%s2138_s4 + $0x128] sm:$0xff] %v1789_v26  ;;  %v1795_v28 = vpop.f32.mrb[5].mxu1  ;;  %v828_v30 = vmul.f32 %v1089_v19, %v1089_v19 }
 0x101   :  { %694 = vst [vmem:[%s2138_s4 + $0x20] sm:$0xff] %v391_v21  ;;  %v757_v22 = vadd.f32 %v756_v20, %v391_v21  ;;  %v827_v23 = vmul.f32 %v391_v21, %v391_v21  ;;  %v889_v25 = vadd.f32 %v888_v18, %v826_v15  ;;  %726 = vst [vmem:[%s2138_s4 + $0x120] sm:$0xff] %v1795_v28 }
 0x103   :  { %v890_v31 = vadd.f32 %v889_v25, %v827_v23  ;;  %v1092_v27 = vpop.f32.mrb[6].mxu0  ;;  %v758_v32 = vadd.f32 %v1089_v19, %v757_v22  ;;  %v1807_v48 = vpop.f32.mrb[6].mxu1 }
 0x104   :  { %697 = vst [vmem:[%s2138_s4 + $0x38] sm:$0xff] %v1092_v27  ;;  %v401_v35 = vpop.f32.mrb[7].mxu0  ;;  %729 = vst [vmem:[%s2138_s4 + $0x138] sm:$0xff] %v1807_v48  ;;  %v1813_v40 = vpop.f32.mrb[7].mxu1  ;;  %v830_v49 = vmul.f32 %v1092_v27, %v1092_v27 }
 0x105   :  { %696 = vst [vmem:[%s2138_s4 + $0x30] sm:$0xff] %v401_v35  ;;  %v759_v36 = vadd.f32 %v758_v32, %v401_v35  ;;  %v829_v37 = vmul.f32 %v401_v35, %v401_v35  ;;  %v891_v38 = vadd.f32 %v890_v31, %v828_v30  ;;  %728 = vst [vmem:[%s2138_s4 + $0x130] sm:$0xff] %v1813_v40 }
 0x107   :  { %v892_v52 = vadd.f32 %v891_v38, %v829_v37  ;;  %v1095_v53 = vpop.f32.mrb[8].mxu0  ;;  %v760_v54 = vadd.f32 %v1092_v27, %v759_v36  ;;  %v1825_v59 = vpop.f32.mrb[8].mxu1 }
 0x108   :  { %699 = vst [vmem:[%s2138_s4 + $0x48] sm:$0xff] %v1095_v53  ;;  %v411_v44 = vpop.f32.mrb[9].mxu0  ;;  %731 = vst [vmem:[%s2138_s4 + $0x148] sm:$0xff] %v1825_v59  ;;  %v1831_v61 = vpop.f32.mrb[9].mxu1  ;;  %v832_v63 = vmul.f32 %v1095_v53, %v1095_v53 }
 0x109   :  { %698 = vst [vmem:[%s2138_s4 + $0x40] sm:$0xff] %v411_v44  ;;  %v761_v55 = vadd.f32 %v760_v54, %v411_v44  ;;  %v831_v10 = vmul.f32 %v411_v44, %v411_v44  ;;  %v893_v56 = vadd.f32 %v892_v52, %v830_v49  ;;  %730 = vst [vmem:[%s2138_s4 + $0x140] sm:$0xff] %v1831_v61 }
 0x10b   :  { %v894_v1 = vadd.f32 %v893_v56, %v831_v10  ;;  %v1098_v14 = vpop.f32.mrb[10].mxu0  ;;  %v762_v6 = vadd.f32 %v1095_v53, %v761_v55  ;;  %v1843_v4 = vpop.f32.mrb[10].mxu1 }
 0x10c   :  { %701 = vst [vmem:[%s2138_s4 + $0x58] sm:$0xff] %v1098_v14  ;;  %v421_v41 = vpop.f32.mrb[11].mxu0  ;;  %733 = vst [vmem:[%s2138_s4 + $0x158] sm:$0xff] %v1843_v4  ;;  %v1849_v47 = vpop.f32.mrb[11].mxu1  ;;  %v834_v62 = vmul.f32 %v1098_v14, %v1098_v14 }
 0x10d   :  { %700 = vst [vmem:[%s2138_s4 + $0x50] sm:$0xff] %v421_v41  ;;  %v763_v24 = vadd.f32 %v762_v6, %v421_v41  ;;  %v833_v46 = vmul.f32 %v421_v41, %v421_v41  ;;  %v895_v60 = vadd.f32 %v894_v1, %v832_v63  ;;  %732 = vst [vmem:[%s2138_s4 + $0x150] sm:$0xff] %v1849_v47 }
 0x10f   :  { %v896_v5 = vadd.f32 %v895_v60, %v833_v46  ;;  %v1101_v29 = vpop.f32.mrb[12].mxu0  ;;  %v764_v2 = vadd.f32 %v1098_v14, %v763_v24  ;;  %v1861_v9 = vpop.f32.mrb[12].mxu1 }
 0x110   :  { %703 = vst [vmem:[%s2138_s4 + $0x68] sm:$0xff] %v1101_v29  ;;  %v431_v3 = vpop.f32.mrb[13].mxu0  ;;  %735 = vst [vmem:[%s2138_s4 + $0x168] sm:$0xff] %v1861_v9  ;;  %v1867_v39 = vpop.f32.mrb[13].mxu1  ;;  %v836_v11 = vmul.f32 %v1101_v29, %v1101_v29 }
 0x111   :  { %702 = vst [vmem:[%s2138_s4 + $0x60] sm:$0xff] %v431_v3  ;;  %v765_v33 = vadd.f32 %v764_v2, %v431_v3  ;;  %v835_v34 = vmul.f32 %v431_v3, %v431_v3  ;;  %v897_v8 = vadd.f32 %v896_v5, %v834_v62  ;;  %734 = vst [vmem:[%s2138_s4 + $0x160] sm:$0xff] %v1867_v39 }
 0x113   :  { %v898_v16 = vadd.f32 %v897_v8, %v835_v34  ;;  %v1104_v43 = vpop.f32.mrb[14].mxu0  ;;  %v766_v45 = vadd.f32 %v1101_v29, %v765_v33  ;;  %v1879_v42 = vpop.f32.mrb[14].mxu1 }
 0x114   :  { %705 = vst [vmem:[%s2138_s4 + $0x78] sm:$0xff] %v1104_v43  ;;  %v441_v17 = vpop.f32.mrb[15].mxu0  ;;  %737 = vst [vmem:[%s2138_s4 + $0x178] sm:$0xff] %v1879_v42  ;;  %v1885_v0 = vpop.f32.mrb[15].mxu1  ;;  %v838_v15 = vmul.f32 %v1104_v43, %v1104_v43 }
 0x115   :  { %704 = vst [vmem:[%s2138_s4 + $0x70] sm:$0xff] %v441_v17  ;;  %v767_v57 = vadd.f32 %v766_v45, %v441_v17  ;;  %v837_v7 = vmul.f32 %v441_v17, %v441_v17  ;;  %v899_v58 = vadd.f32 %v898_v16, %v836_v11  ;;  %736 = vst [vmem:[%s2138_s4 + $0x170] sm:$0xff] %v1885_v0 }
 0x117   :  { %v900_v18 = vadd.f32 %v899_v58, %v837_v7  ;;  %v1107_v19 = vpop.f32.mrb[16].mxu0  ;;  %v768_v20 = vadd.f32 %v1104_v43, %v767_v57  ;;  %v1897_v30 = vpop.f32.mrb[16].mxu1 }
 0x118   :  { %707 = vst [vmem:[%s2138_s4 + $0x88] sm:$0xff] %v1107_v19  ;;  %v451_v21 = vpop.f32.mrb[17].mxu0  ;;  %739 = vst [vmem:[%s2138_s4 + $0x188] sm:$0xff] %v1897_v30  ;;  %v1903_v31 = vpop.f32.mrb[17].mxu1  ;;  %v840_v27 = vmul.f32 %v1107_v19, %v1107_v19 }
 0x119   :  { %706 = vst [vmem:[%s2138_s4 + $0x80] sm:$0xff] %v451_v21  ;;  %v769_v22 = vadd.f32 %v768_v20, %v451_v21  ;;  %v839_v23 = vmul.f32 %v451_v21, %v451_v21  ;;  %v901_v25 = vadd.f32 %v900_v18, %v838_v15  ;;  %738 = vst [vmem:[%s2138_s4 + $0x180] sm:$0xff] %v1903_v31 }
 0x11b   :  { %v902_v32 = vadd.f32 %v901_v25, %v839_v23  ;;  %v1110_v35 = vpop.f32.mrb[18].mxu0  ;;  %v770_v36 = vadd.f32 %v1107_v19, %v769_v22  ;;  %v1915_v53 = vpop.f32.mrb[18].mxu1 }
 0x11c   :  { %709 = vst [vmem:[%s2138_s4 + $0x98] sm:$0xff] %v1110_v35  ;;  %v461_v37 = vpop.f32.mrb[19].mxu0  ;;  %741 = vst [vmem:[%s2138_s4 + $0x198] sm:$0xff] %v1915_v53  ;;  %v1921_v54 = vpop.f32.mrb[19].mxu1  ;;  %v842_v44 = vmul.f32 %v1110_v35, %v1110_v35 }
 0x11d   :  { %708 = vst [vmem:[%s2138_s4 + $0x90] sm:$0xff] %v461_v37  ;;  %v771_v38 = vadd.f32 %v770_v36, %v461_v37  ;;  %v841_v49 = vmul.f32 %v461_v37, %v461_v37  ;;  %v903_v52 = vadd.f32 %v902_v32, %v840_v27  ;;  %740 = vst [vmem:[%s2138_s4 + $0x190] sm:$0xff] %v1921_v54 }
 0x11f   :  { %v904_v55 = vadd.f32 %v903_v52, %v841_v49  ;;  %v1113_v10 = vpop.f32.mrb[20].mxu0  ;;  %v772_v56 = vadd.f32 %v1110_v35, %v771_v38  ;;  %v1933_v41 = vpop.f32.mrb[20].mxu1 }
 0x120   :  { %711 = vst [vmem:[%s2138_s4 + $0xa8] sm:$0xff] %v1113_v10  ;;  %v471_v63 = vpop.f32.mrb[21].mxu0  ;;  %743 = vst [vmem:[%s2138_s4 + $0x1a8] sm:$0xff] %v1933_v41  ;;  %v1939_v24 = vpop.f32.mrb[21].mxu1  ;;  %v844_v46 = vmul.f32 %v1113_v10, %v1113_v10 }
 0x121   :  { %710 = vst [vmem:[%s2138_s4 + $0xa0] sm:$0xff] %v471_v63  ;;  %v773_v1 = vadd.f32 %v772_v56, %v471_v63  ;;  %v843_v14 = vmul.f32 %v471_v63, %v471_v63  ;;  %v905_v6 = vadd.f32 %v904_v55, %v842_v44  ;;  %742 = vst [vmem:[%s2138_s4 + $0x1a0] sm:$0xff] %v1939_v24 }
 0x123   :  { %v906_v60 = vadd.f32 %v905_v6, %v843_v14  ;;  %v1116_v62 = vpop.f32.mrb[22].mxu0  ;;  %v774_v5 = vadd.f32 %v1113_v10, %v773_v1  ;;  %v1951_v34 = vpop.f32.mrb[22].mxu1 }
 0x124   :  { %713 = vst [vmem:[%s2138_s4 + $0xb8] sm:$0xff] %v1116_v62  ;;  %v481_v29 = vpop.f32.mrb[23].mxu0  ;;  %745 = vst [vmem:[%s2138_s4 + $0x1b8] sm:$0xff] %v1951_v34  ;;  %v1957_v8 = vpop.f32.mrb[23].mxu1  ;;  %v846_v11 = vmul.f32 %v1116_v62, %v1116_v62 }
 0x125   :  { %712 = vst [vmem:[%s2138_s4 + $0xb0] sm:$0xff] %v481_v29  ;;  %v775_v2 = vadd.f32 %v774_v5, %v481_v29  ;;  %v845_v3 = vmul.f32 %v481_v29, %v481_v29  ;;  %v907_v33 = vadd.f32 %v906_v60, %v844_v46  ;;  %744 = vst [vmem:[%s2138_s4 + $0x1b0] sm:$0xff] %v1957_v8 }
 0x127   :  { %v908_v16 = vadd.f32 %v907_v33, %v845_v3  ;;  %v1119_v43 = vpop.f32.mrb[24].mxu0  ;;  %v776_v45 = vadd.f32 %v1116_v62, %v775_v2  ;;  %v1969_v15 = vpop.f32.mrb[24].mxu1 }
 0x128   :  { %715 = vst [vmem:[%s2138_s4 + $0xc8] sm:$0xff] %v1119_v43  ;;  %v491_v17 = vpop.f32.mrb[25].mxu0  ;;  %747 = vst [vmem:[%s2138_s4 + $0x1c8] sm:$0xff] %v1969_v15  ;;  %v1975_v18 = vpop.f32.mrb[25].mxu1  ;;  %v848_v19 = vmul.f32 %v1119_v43, %v1119_v43 }
 0x129   :  { %714 = vst [vmem:[%s2138_s4 + $0xc0] sm:$0xff] %v491_v17  ;;  %v777_v57 = vadd.f32 %v776_v45, %v491_v17  ;;  %v847_v7 = vmul.f32 %v491_v17, %v491_v17  ;;  %v909_v58 = vadd.f32 %v908_v16, %v846_v11  ;;  %746 = vst [vmem:[%s2138_s4 + $0x1c0] sm:$0xff] %v1975_v18 }
 0x12a   :  { %v855_v45 = vmul.f32 %v1759_v51, %v1759_v51 }
 0x12b   :  { %v910_v20 = vadd.f32 %v909_v58, %v847_v7  ;;  %v1122_v21 = vpop.f32.mrb[26].mxu0  ;;  %v778_v22 = vadd.f32 %v1119_v43, %v777_v57  ;;  %v1987_v35 = vpop.f32.mrb[26].mxu1  ;;  %v856_v7 = vmul.f32 %v1753_v50, %v1753_v50 }
 0x12c   :  { %717 = vst [vmem:[%s2138_s4 + $0xd8] sm:$0xff] %v1122_v21  ;;  %v501_v23 = vpop.f32.mrb[27].mxu0  ;;  %749 = vst [vmem:[%s2138_s4 + $0x1d8] sm:$0xff] %v1987_v35  ;;  %v1993_v36 = vpop.f32.mrb[27].mxu1  ;;  %v850_v37 = vmul.f32 %v1122_v21, %v1122_v21 }
 0x12d   :  { %716 = vst [vmem:[%s2138_s4 + $0xd0] sm:$0xff] %v501_v23  ;;  %v779_v25 = vadd.f32 %v778_v22, %v501_v23  ;;  %v849_v27 = vmul.f32 %v501_v23, %v501_v23  ;;  %v911_v32 = vadd.f32 %v910_v20, %v848_v19  ;;  %748 = vst [vmem:[%s2138_s4 + $0x1d0] sm:$0xff] %v1993_v36 }
 0x12e   :  { %v857_v20 = vmul.f32 %v1777_v13, %v1777_v13  ;;  %v858_v23 = vmul.f32 %v1771_v12, %v1771_v12 }
 0x12f   :  { %v912_v38 = vadd.f32 %v911_v32, %v849_v27  ;;  %v1125_v49 = vpop.f32.mrb[28].mxu0  ;;  %v780_v52 = vadd.f32 %v1122_v21, %v779_v25  ;;  %v2005_v63 = vpop.f32.mrb[28].mxu1 }
 0x130   :  { %719 = vst [vmem:[%s2138_s4 + $0xe8] sm:$0xff] %v1125_v49  ;;  %v511_v44 = vpop.f32.mrb[29].mxu0  ;;  %751 = vst [vmem:[%s2138_s4 + $0x1e8] sm:$0xff] %v2005_v63  ;;  %v2011_v1 = vpop.f32.mrb[29].mxu1  ;;  %v852_v14 = vmul.f32 %v1125_v49, %v1125_v49 }
 0x131   :  { %718 = vst [vmem:[%s2138_s4 + $0xe0] sm:$0xff] %v511_v44  ;;  %v781_v55 = vadd.f32 %v780_v52, %v511_v44  ;;  %v851_v10 = vmul.f32 %v511_v44, %v511_v44  ;;  %v913_v56 = vadd.f32 %v912_v38, %v850_v37  ;;  %750 = vst [vmem:[%s2138_s4 + $0x1e0] sm:$0xff] %v2011_v1 }
 0x133   :  { %v914_v6 = vadd.f32 %v913_v56, %v851_v10  ;;  %v1128_v46 = vpop.f32.mrb[30].mxu0  ;;  %v782_v60 = vadd.f32 %v1125_v49, %v781_v55  ;;  %v2023_v3 = vpop.f32.mrb[30].mxu1 }
 0x134   :  { %721 = vst [vmem:[%s2138_s4 + $0xf8] sm:$0xff] %v1128_v46  ;;  %v521_v62 = vpop.f32.mrb[31].mxu0  ;;  %753 = vst [vmem:[%s2138_s4 + $0x1f8] sm:$0xff] %v2023_v3  ;;  %v2029_v33 = vpop.f32.mrb[31].mxu1  ;;  %v854_v11 = vmul.f32 %v1128_v46, %v1128_v46 }
 0x135   :  { %720 = vst [vmem:[%s2138_s4 + $0xf0] sm:$0xff] %v521_v62  ;;  %v783_v5 = vadd.f32 %v782_v60, %v521_v62  ;;  %v853_v29 = vmul.f32 %v521_v62, %v521_v62  ;;  %v915_v2 = vadd.f32 %v914_v6, %v852_v14  ;;  %752 = vst [vmem:[%s2138_s4 + $0x1f0] sm:$0xff] %v2029_v33 }
 0x137   :  { %v784_v16 = vadd.f32 %v1128_v46, %v783_v5  ;;  %v916_v43 = vadd.f32 %v915_v2, %v853_v29 }
 0x139   :  { %v917_v17 = vadd.f32 %v916_v43, %v854_v11  ;;  %v785_v57 = vadd.f32 %v784_v16, %v1759_v51  ;;  %v859_v51 = vmul.f32 %v1795_v28, %v1795_v28 }
 0x13b   :  { %v918_v58 = vadd.f32 %v917_v17, %v855_v45  ;;  %v786_v19 = vadd.f32 %v1753_v50, %v785_v57  ;;  %v860_v50 = vmul.f32 %v1789_v26, %v1789_v26 }
 0x13d   :  { %v787_v21 = vadd.f32 %v786_v19, %v1777_v13  ;;  %v919_v22 = vadd.f32 %v918_v58, %v856_v7  ;;  %v861_v13 = vmul.f32 %v1813_v40, %v1813_v40 }
 0x13f   :  { %v920_v25 = vadd.f32 %v919_v22, %v857_v20  ;;  %v788_v27 = vadd.f32 %v1771_v12, %v787_v21  ;;  %v862_v12 = vmul.f32 %v1807_v48, %v1807_v48 }
 0x141   :  { %v789_v32 = vadd.f32 %v788_v27, %v1795_v28  ;;  %v921_v37 = vadd.f32 %v920_v25, %v858_v23  ;;  %v863_v28 = vmul.f32 %v1831_v61, %v1831_v61 }
 0x143   :  { %v922_v38 = vadd.f32 %v921_v37, %v859_v51  ;;  %v790_v49 = vadd.f32 %v1789_v26, %v789_v32  ;;  %v864_v26 = vmul.f32 %v1825_v59, %v1825_v59 }
 0x145   :  { %v791_v52 = vadd.f32 %v790_v49, %v1813_v40  ;;  %v923_v44 = vadd.f32 %v922_v38, %v860_v50  ;;  %v865_v40 = vmul.f32 %v1849_v47, %v1849_v47 }
 0x147   :  { %v924_v55 = vadd.f32 %v923_v44, %v861_v13  ;;  %v792_v10 = vadd.f32 %v1807_v48, %v791_v52  ;;  %v866_v48 = vmul.f32 %v1843_v4, %v1843_v4 }
 0x149   :  { %v793_v56 = vadd.f32 %v792_v10, %v1831_v61  ;;  %v925_v14 = vadd.f32 %v924_v55, %v862_v12  ;;  %v867_v61 = vmul.f32 %v1867_v39, %v1867_v39 }
 0x14b   :  { %v926_v6 = vadd.f32 %v925_v14, %v863_v28  ;;  %v794_v46 = vadd.f32 %v1825_v59, %v793_v56  ;;  %v868_v59 = vmul.f32 %v1861_v9, %v1861_v9 }
 0x14d   :  { %v795_v60 = vadd.f32 %v794_v46, %v1849_v47  ;;  %v927_v62 = vadd.f32 %v926_v6, %v864_v26  ;;  %v869_v47 = vmul.f32 %v1885_v0, %v1885_v0 }
 0x14f   :  { %v928_v5 = vadd.f32 %v927_v62, %v865_v40  ;;  %v796_v29 = vadd.f32 %v1843_v4, %v795_v60  ;;  %v870_v4 = vmul.f32 %v1879_v42, %v1879_v42 }
 0x151   :  { %v797_v2 = vadd.f32 %v796_v29, %v1867_v39  ;;  %v929_v11 = vadd.f32 %v928_v5, %v866_v48  ;;  %v871_v39 = vmul.f32 %v1903_v31, %v1903_v31 }
 0x153   :  { %v930_v16 = vadd.f32 %v929_v11, %v867_v61  ;;  %v798_v43 = vadd.f32 %v1861_v9, %v797_v2  ;;  %v872_v9 = vmul.f32 %v1897_v30, %v1897_v30 }
 0x155   :  { %v799_v45 = vadd.f32 %v798_v43, %v1885_v0  ;;  %v931_v17 = vadd.f32 %v930_v16, %v868_v59  ;;  %v873_v0 = vmul.f32 %v1921_v54, %v1921_v54 }
 0x157   :  { %v932_v57 = vadd.f32 %v931_v17, %v869_v47  ;;  %v800_v7 = vadd.f32 %v1879_v42, %v799_v45  ;;  %v874_v42 = vmul.f32 %v1915_v53, %v1915_v53 }
 0x159   :  { %v801_v58 = vadd.f32 %v800_v7, %v1903_v31  ;;  %v933_v19 = vadd.f32 %v932_v57, %v870_v4  ;;  %v875_v31 = vmul.f32 %v1939_v24, %v1939_v24 }
 0x15b   :  { %v934_v20 = vadd.f32 %v933_v19, %v871_v39  ;;  %v802_v21 = vadd.f32 %v1897_v30, %v801_v58  ;;  %v876_v30 = vmul.f32 %v1933_v41, %v1933_v41 }
 0x15d   :  { %v803_v22 = vadd.f32 %v802_v21, %v1921_v54  ;;  %v935_v23 = vadd.f32 %v934_v20, %v872_v9  ;;  %v877_v54 = vmul.f32 %v1957_v8, %v1957_v8 }
 0x15f   :  { %v936_v25 = vadd.f32 %v935_v23, %v873_v0  ;;  %v804_v27 = vadd.f32 %v1915_v53, %v803_v22  ;;  %v878_v53 = vmul.f32 %v1951_v34, %v1951_v34 }
 0x161   :  { %v805_v51 = vadd.f32 %v804_v27, %v1939_v24  ;;  %v937_v32 = vadd.f32 %v936_v25, %v874_v42  ;;  %v879_v24 = vmul.f32 %v1975_v18, %v1975_v18 }
 0x163   :  { %v938_v37 = vadd.f32 %v937_v32, %v875_v31  ;;  %v806_v50 = vadd.f32 %v1933_v41, %v805_v51  ;;  %v880_v41 = vmul.f32 %v1969_v15, %v1969_v15 }
 0x165   :  { %v807_v38 = vadd.f32 %v806_v50, %v1957_v8  ;;  %v939_v49 = vadd.f32 %v938_v37, %v876_v30  ;;  %v881_v8 = vmul.f32 %v1993_v36, %v1993_v36 }
 0x167   :  { %v940_v13 = vadd.f32 %v939_v49, %v877_v54  ;;  %v808_v52 = vadd.f32 %v1951_v34, %v807_v38  ;;  %v882_v34 = vmul.f32 %v1987_v35, %v1987_v35 }
 0x169   :  { %v809_v44 = vadd.f32 %v808_v52, %v1975_v18  ;;  %v941_v12 = vadd.f32 %v940_v13, %v878_v53  ;;  %v883_v18 = vmul.f32 %v2011_v1, %v2011_v1 }
 0x16b   :  { %v942_v55 = vadd.f32 %v941_v12, %v879_v24  ;;  %v810_v10 = vadd.f32 %v1969_v15, %v809_v44  ;;  %v884_v15 = vmul.f32 %v2005_v63, %v2005_v63 }
 0x16d   :  { %v811_v28 = vadd.f32 %v810_v10, %v1993_v36  ;;  %v943_v56 = vadd.f32 %v942_v55, %v880_v41  ;;  %v885_v36 = vmul.f32 %v2029_v33, %v2029_v33 }
 0x16f   :  { %v944_v14 = vadd.f32 %v943_v56, %v881_v8  ;;  %v812_v26 = vadd.f32 %v1987_v35, %v811_v28  ;;  %v886_v35 = vmul.f32 %v2023_v3, %v2023_v3 }
 0x171   :  { %v813_v6 = vadd.f32 %v812_v26, %v2011_v1  ;;  %v945_v46 = vadd.f32 %v944_v14, %v882_v34 }
 0x173   :  { %v946_v40 = vadd.f32 %v945_v46, %v883_v18  ;;  %v814_v60 = vadd.f32 %v2005_v63, %v813_v6 }
 0x175   :  { %v815_v62 = vadd.f32 %v814_v60, %v2029_v33  ;;  %v947_v48 = vadd.f32 %v946_v40, %v884_v15 }
 0x177   :  { %v816_v5 = vadd.f32 %v2023_v3, %v815_v62  ;;  %v948_v29 = vadd.f32 %v947_v48, %v885_v36 }
 0x179   :  { %v817_v1 = vrot.slane %v816_v5, 4  ;;  %v949_v61 = vadd.f32 %v948_v29, %v886_v35 }
 0x17b   :  { %v818_v2 = vadd.f32 %v817_v1, %v816_v5  ;;  %v950_v11 = vrot.slane %v949_v61, 4 }
 0x17d   :  { %v819_v59 = vrot.slane %v818_v2, 2  ;;  %v951_v16 = vadd.f32 %v950_v11, %v949_v61 }
 0x17f   :  { %v820_v43 = vadd.f32 %v819_v59, %v818_v2  ;;  %v952_v63 = vrot.slane %v951_v16, 2 }
 0x181   :  { %v821_v47 = vrot.slane %v820_v43, 1  ;;  %v953_v45 = vadd.f32 %v952_v63, %v951_v16 }
 0x183   :  { %v954_v17 = vrot.slane %v953_v45, 1  ;;  %v822_v33 = vadd.f32 %v821_v47, %v820_v43 }
 0x185   :  { %v955_v4 = vadd.f32 %v954_v17, %v953_v45 }
 0x187   :  { %v957_v57 = vsel %vm956_vm0, %v822_v33, %v955_v4 }
 0x188   :  { %958 = vst [vmem:[%s2139_s5] sm:$0x3] %v957_v57 }

// kernel: bottleneck_pallas.5
= control target key start
LH: loop header
LB: loop body
LE: loop exit
PB: predicated region body
PF: predicated region fallthrough
CT: control target
= control target key end

     0   :  { %s5989_s18 = smov 0   ;;  %s5991_s19 = smov 0   ;;  %s7678_s0 = inlined_call_operand.vmem [shape: f32[2,18,18,128], index: 0, kind: input, shape index: {}]   ;;  %s7679_s1 = inlined_call_operand.vmem [shape: f32[9,128,128], index: 1, kind: input, shape index: {}]   ;;  %s7680_s2 = inlined_call_operand.vmem [shape: f32[1,128], index: 2, kind: input, shape index: {}]   ;;  %s7681_s3 = inlined_call_operand.vmem [shape: f32[1,128], index: 3, kind: input, shape index: {}]   ;;  %s7682_s4 = inlined_call_operand.vmem [shape: f32[2,256,128], index: 4, kind: output, shape index: {0}]   ;;  %s7683_s5 = inlined_call_operand.vmem [shape: f32[2,1,2,128], index: 5, kind: output, shape index: {1}]  }
   0x1   :  { %s5993_s20 = smov 0  }
   0x2 LB: > { %s28_s21 = sadd.s32 1, %s5952_s19  ;;  %p3991_p0 = scmp.ge.s32.totalorder %s5956_s20, 1  ;;  %s5956_s20 = sphi %s5993_s20, %s16_s20   ;;  %s5952_s19 = sphi %s5991_s19, %s7927_s19   ;;  %s5948_s18 = sphi %s5989_s18, %s7926_s18  }
   0x3   : > { %p30_p1 = scmp.ge.s32.totalorder %s28_s21, 2  ;;  %p172_p2 = scmp.lt.s32.totalorder %s5956_s20, 3 }
   0x5   : > { %s7929_s21 = smov (%p30_p1, %s28_s21), 0  ;;  %p173_p3 = pnand %p3991_p0, %p172_p2 }
   0x7   : > { %176 = sbr.rel (%p173_p3) target bundleno = 607 (0x25f), region = 32 }
   0xe   : > { %p205_p4 = scmp.lt.s32.totalorder %s5948_s18, 1  ;;  %s223_s22 = smul.u32 432, %s5948_s18 }
  0x10   : > { %s7931_s18 = smov (!%p205_p4, %s5948_s18), 1  ;;  %s6010_s25 = scalar_lea.vmem %s7678_s0, %s223_s22 }
  0x11   : > { %s4192_s26 = sshll.u32 %s7931_s18, 8  ;;  %s3994_s27 = sshll.u32 %s7931_s18, 1  ;;  %v301_v0 = vld [vmem:[%s6010_s25 + $0x18] sm:$0xff]  ;;  %v303_v1 = vld [vmem:[%s6010_s25 + $0x20] sm:$0xff]  ;;  %v305_v2 = vld [vmem:[%s6010_s25 + $0x30] sm:$0xff] }
  0x12   : > { %s6016_s30 = scalar_lea.vmem %s7682_s4, %s4192_s26  ;;  %s6021_s8 = scalar_lea.vmem %s7683_s5, %s3994_s27  ;;  %302 = vst [vmem:[#allocation2 + $0x18] sm:$0xff] %v301_v0  ;;  %v307_v3 = vld [vmem:[%s6010_s25 + $0x38] sm:$0xff]  ;;  %304 = vst [vmem:[#allocation2 + $0x20] sm:$0xff] %v303_v1  ;;  %v309_v4 = vld [vmem:[%s6010_s25 + $0x48] sm:$0xff] }
  0x13   : > { %306 = vst [vmem:[#allocation2 + $0x30] sm:$0xff] %v305_v2  ;;  %308 = vst [vmem:[#allocation2 + $0x38] sm:$0xff] %v307_v3  ;;  %v311_v5 = vld [vmem:[%s6010_s25 + $0x50] sm:$0xff]  ;;  %v313_v6 = vld [vmem:[%s6010_s25 + $0x60] sm:$0xff] }
  0x14   : > { %310 = vst [vmem:[#allocation2 + $0x48] sm:$0xff] %v309_v4  ;;  %312 = vst [vmem:[#allocation2 + $0x50] sm:$0xff] %v311_v5  ;;  %v315_v7 = vld [vmem:[%s6010_s25 + $0x68] sm:$0xff]  ;;  %v317_v8 = vld [vmem:[%s6010_s25 + $0x78] sm:$0xff] }
  0x15   : > { %314 = vst [vmem:[#allocation2 + $0x60] sm:$0xff] %v313_v6  ;;  %v319_v9 = vld [vmem:[%s6010_s25 + $0x80] sm:$0xff]  ;;  %316 = vst [vmem:[#allocation2 + $0x68] sm:$0xff] %v315_v7  ;;  %v321_v10 = vld [vmem:[%s6010_s25 + $0x90] sm:$0xff] }
  0x16   : > { %318 = vst [vmem:[#allocation2 + $0x78] sm:$0xff] %v317_v8  ;;  %320 = vst [vmem:[#allocation2 + $0x80] sm:$0xff] %v319_v9  ;;  %v323_v11 = vld [vmem:[%s6010_s25 + $0x98] sm:$0xff]  ;;  %v325_v12 = vld [vmem:[%s6010_s25 + $0xa8] sm:$0xff] }
  0x17   : > { %322 = vst [vmem:[#allocation2 + $0x90] sm:$0xff] %v321_v10  ;;  %324 = vst [vmem:[#allocation2 + $0x98] sm:$0xff] %v323_v11  ;;  %v327_v13 = vld [vmem:[%s6010_s25 + $0xb0] sm:$0xff]  ;;  %v329_v14 = vld [vmem:[%s6010_s25 + $0xc0] sm:$0xff] }
  0x18   : > { %326 = vst [vmem:[#allocation2 + $0xa8] sm:$0xff] %v325_v12  ;;  %v331_v15 = vld [vmem:[%s6010_s25 + $0xc8] sm:$0xff]  ;;  %328 = vst [vmem:[#allocation2 + $0xb0] sm:$0xff] %v327_v13  ;;  %v333_v16 = vld [vmem:[%s6010_s25 + $0xd8] sm:$0xff] }
  0x19   : > { %330 = vst [vmem:[#allocation2 + $0xc0] sm:$0xff] %v329_v14  ;;  %332 = vst [vmem:[#allocation2 + $0xc8] sm:$0xff] %v331_v15  ;;  %v335_v17 = vld [vmem:[%s6010_s25 + $0xe0] sm:$0xff]  ;;  %v337_v18 = vld [vmem:[%s6010_s25 + $0xf0] sm:$0xff] }
  0x1a   : > { %334 = vst [vmem:[#allocation2 + $0xd8] sm:$0xff] %v333_v16  ;;  %336 = vst [vmem:[#allocation2 + $0xe0] sm:$0xff] %v335_v17  ;;  %v339_v19 = vld [vmem:[%s6010_s25 + $0xf8] sm:$0xff]  ;;  %v341_v20 = vld [vmem:[%s6010_s25 + $0x108] sm:$0xff] }
  0x1b   : > { %338 = vst [vmem:[#allocation2 + $0xf0] sm:$0xff] %v337_v18  ;;  %v343_v21 = vld [vmem:[%s6010_s25 + $0x110] sm:$0xff]  ;;  %340 = vst [vmem:[#allocation2 + $0xf8] sm:$0xff] %v339_v19  ;;  %v345_v22 = vld [vmem:[%s6010_s25 + $0x120] sm:$0xff] }
  0x1c   : > { %342 = vst [vmem:[#allocation2 + $0x108] sm:$0xff] %v341_v20  ;;  %344 = vst [vmem:[#allocation2 + $0x110] sm:$0xff] %v343_v21  ;;  %v347_v23 = vld [vmem:[%s6010_s25 + $0x128] sm:$0xff]  ;;  %v349_v24 = vld [vmem:[%s6010_s25 + $0x138] sm:$0xff] }
  0x1d   : > { %346 = vst [vmem:[#allocation2 + $0x120] sm:$0xff] %v345_v22  ;;  %348 = vst [vmem:[#allocation2 + $0x128] sm:$0xff] %v347_v23  ;;  %v351_v25 = vld [vmem:[%s6010_s25 + $0x140] sm:$0xff]  ;;  %v353_v26 = vld [vmem:[%s6010_s25 + $0x150] sm:$0xff] }
  0x1e   : > { %350 = vst [vmem:[#allocation2 + $0x138] sm:$0xff] %v349_v24  ;;  %v355_v27 = vld [vmem:[%s6010_s25 + $0x158] sm:$0xff]  ;;  %352 = vst [vmem:[#allocation2 + $0x140] sm:$0xff] %v351_v25  ;;  %v357_v28 = vld [vmem:[%s6010_s25 + $0x168] sm:$0xff] }
  0x1f   : > { %354 = vst [vmem:[#allocation2 + $0x150] sm:$0xff] %v353_v26  ;;  %356 = vst [vmem:[#allocation2 + $0x158] sm:$0xff] %v355_v27  ;;  %v359_v29 = vld [vmem:[%s6010_s25 + $0x170] sm:$0xff]  ;;  %v361_v30 = vld [vmem:[%s6010_s25 + $0x180] sm:$0xff] }
  0x20   : > { %358 = vst [vmem:[#allocation2 + $0x168] sm:$0xff] %v357_v28  ;;  %360 = vst [vmem:[#allocation2 + $0x170] sm:$0xff] %v359_v29  ;;  %v363_v31 = vld [vmem:[%s6010_s25 + $0x188] sm:$0xff]  ;;  %v3997_v33 = vld [vmem:[%s6010_s25 + $0x40] sm:$0x3] }
  0x21   : > { %362 = vst [vmem:[#allocation2 + $0x180] sm:$0xff] %v361_v30  ;;  %364 = vst [vmem:[#allocation2 + $0x188] sm:$0xff] %v363_v31  ;;  %v3996_v32 = vld [vmem:[%s6010_s25 + $0x28] sm:$0x3]  ;;  %v3998_v34 = vld [vmem:[%s6010_s25 + $0x58] sm:$0x3] }
  0x22   : > { %381 = vst [vmem:[#allocation2 + $0x28] sm:$0x3] %v3996_v32  ;;  %383 = vst [vmem:[#allocation2 + $0x40] sm:$0x3] %v3997_v33  ;;  %v3999_v35 = vld [vmem:[%s6010_s25 + $0x70] sm:$0x3] }
  0x23   : > { %v4000_v36 = vld [vmem:[%s6010_s25 + $0x88] sm:$0x3]  ;;  %385 = vst [vmem:[#allocation2 + $0x58] sm:$0x3] %v3998_v34  ;;  %387 = vst [vmem:[#allocation2 + $0x70] sm:$0x3] %v3999_v35 }
  0x24   : > { %389 = vst [vmem:[#allocation2 + $0x88] sm:$0x3] %v4000_v36  ;;  %v4001_v37 = vld [vmem:[%s6010_s25 + $0xa0] sm:$0x3]  ;;  %v4002_v38 = vld [vmem:[%s6010_s25 + $0xb8] sm:$0x3] }
  0x25   : > { %v4003_v39 = vld [vmem:[%s6010_s25 + $0xd0] sm:$0x3]  ;;  %391 = vst [vmem:[#allocation2 + $0xa0] sm:$0x3] %v4001_v37  ;;  %393 = vst [vmem:[#allocation2 + $0xb8] sm:$0x3] %v4002_v38 }
  0x26   : > { %395 = vst [vmem:[#allocation2 + $0xd0] sm:$0x3] %v4003_v39  ;;  %v4004_v40 = vld [vmem:[%s6010_s25 + $0xe8] sm:$0x3]  ;;  %v4005_v41 = vld [vmem:[%s6010_s25 + $0x100] sm:$0x3] }
  0x27   : > { %v4006_v42 = vld [vmem:[%s6010_s25 + $0x118] sm:$0x3]  ;;  %397 = vst [vmem:[#allocation2 + $0xe8] sm:$0x3] %v4004_v40  ;;  %399 = vst [vmem:[#allocation2 + $0x100] sm:$0x3] %v4005_v41 }
  0x28   : > { %401 = vst [vmem:[#allocation2 + $0x118] sm:$0x3] %v4006_v42  ;;  %v4007_v43 = vld [vmem:[%s6010_s25 + $0x130] sm:$0x3]  ;;  %v4008_v44 = vld [vmem:[%s6010_s25 + $0x148] sm:$0x3] }
  0x29   : > { %v4009_v45 = vld [vmem:[%s6010_s25 + $0x160] sm:$0x3]  ;;  %403 = vst [vmem:[#allocation2 + $0x130] sm:$0x3] %v4007_v43  ;;  %405 = vst [vmem:[#allocation2 + $0x148] sm:$0x3] %v4008_v44 }
  0x2a   : > { %407 = vst [vmem:[#allocation2 + $0x160] sm:$0x3] %v4009_v45  ;;  %v4010_v46 = vld [vmem:[%s6010_s25 + $0x178] sm:$0x3]  ;;  %v4011_v47 = vld [vmem:[%s6010_s25 + $0x190] sm:$0x3] }
  0x2b   : > { %409 = vst [vmem:[#allocation2 + $0x178] sm:$0x3] %v4010_v46  ;;  %411 = vst [vmem:[#allocation2 + $0x190] sm:$0x3] %v4011_v47 }
  0x2c   : > { %417 = vsyncadd [#allocation3], 5184  ;;  %v436_v48 = vlaneseq }
  0x2e   : > { %v6070_v49 = vshrl.u32 %v436_v48, 7 }
  0x30   : > { %v6073_v50 = vadd.s32 16, %v6070_v49  ;;  %vm494_vm0 = vcmp.ge.s32.totalorder %v6070_v49, 1 }
  0x32   : > { %vm553_vm1 = vcmp.le.s32.totalorder %v6073_v50, 16 }
  0x33   : > { %5944 = dma.done.wait [#allocation3], 5184 }
  0x34   : > { %5945 = vsyncadd [#allocation3], 4294962112  ;;  %v7684_v51 = vmov 0.0   ;;  %v4015_v53 = vld [vmem:[%s7679_s1 + $0x80] sm:$0xff]  ;;  %v4016_v54 = vld [vmem:[%s7679_s1 + $0x88] sm:$0xff]  ;;  %vm1068_vm2 = vcmask 1046528  }
  0x35   : > { %v6078_v52 = vrot.slane %v7684_v51, 1  ;;  %v4094_v55 = vld [vmem:[%s7679_s1 + $0x200] sm:$0xff]  ;;  %v5345_v56 = vpack.c.bf16 %v4016_v54, %v4015_v53  ;;  %v4095_v57 = vld [vmem:[%s7679_s1 + $0x208] sm:$0xff]  ;;  %v4017_v58 = vld [vmem:[%s7679_s1 + $0x90] sm:$0xff]  ;;  %vm1648_vm3 = vcmask 1045504   ;;  %vm3851_vm4 = vcmask 1040384  }
  0x36   : > { %v4018_v59 = vld [vmem:[%s7679_s1 + $0x98] sm:$0xff]  ;;  %v6099_v60 = vpack.c.bf16 %v4095_v57, %v4094_v55  ;;  %v4096_v62 = vld [vmem:[%s7679_s1 + $0x210] sm:$0xff]  ;;  %v4019_v0 = vld [vmem:[%s7679_s1 + $0xa0] sm:$0xff] }
  0x37   : > { %7792 = vst [vmem:[#allocation6_spill] sm:$0xff] %v6078_v52  ;;  %4657 = vmatprep.mubr.f32.mxu1 %v6078_v52  ;;  %v5349_v61 = vpack.c.bf16 %v4018_v59, %v4017_v58  ;;  %v4097_v63 = vld [vmem:[%s7679_s1 + $0x218] sm:$0xff]  ;;  %5346 = vmatprep.subr.bf16.mxu1 %v5345_v56  ;;  %v4020_v2 = vld [vmem:[%s7679_s1 + $0xa8] sm:$0xff]  ;;  %v4098_v3 = vld [vmem:[%s7679_s1 + $0x220] sm:$0xff] }
  0x38   : > { %7793 = vst [vmem:[#allocation7_spill] sm:$0xff] %v6099_v60  ;;  %v6110_v1 = vpack.c.bf16 %v4097_v63, %v4096_v62  ;;  %v4099_v4 = vld [vmem:[%s7679_s1 + $0x228] sm:$0xff]  ;;  %5474 = vmatprep.subr.bf16.mxu0 %v6099_v60  ;;  %5348 = vmatpush3.bf16.msra.mxu1 %v5345_v56  ;;  %v5353_v5 = vpack.c.bf16 %v4020_v2, %v4019_v0  ;;  %v4021_v7 = vld [vmem:[%s7679_s1 + $0xb0] sm:$0xff]  ;;  %v4022_v8 = vld [vmem:[%s7679_s1 + $0xb8] sm:$0xff] }
  0x39   : > { %5476 = vmatpush3.bf16.msra.mxu0 %v6099_v60  ;;  %5350 = vmatprep.subr.bf16.mxu1 %v5349_v61  ;;  %v6124_v6 = vpack.c.bf16 %v4099_v4, %v4098_v3  ;;  %v4100_v9 = vld [vmem:[%s7679_s1 + $0x230] sm:$0xff]  ;;  %v4101_v10 = vld [vmem:[%s7679_s1 + $0x238] sm:$0xff]  ;;  %v4023_v11 = vld [vmem:[%s7679_s1 + $0xc0] sm:$0xff]  ;;  %v5357_v16 = vpack.c.bf16 %v4022_v8, %v4021_v7 }
  0x3a   : > { %7794 = vst [vmem:[#allocation8_spill] sm:$0xff] %v6110_v1  ;;  %5478 = vmatprep.subr.bf16.mxu0 %v6110_v1  ;;  %v4024_v12 = vld [vmem:[%s7679_s1 + $0xc8] sm:$0xff]  ;;  %v4102_v13 = vld [vmem:[%s7679_s1 + $0x240] sm:$0xff]  ;;  %v4025_v15 = vld [vmem:[%s7679_s1 + $0xd0] sm:$0xff]  ;;  %v6164_v20 = vpack.c.bf16 %v4101_v10, %v4100_v9 }
  0x3b   : > { %7795 = vst [vmem:[#allocation9_spill] sm:$0xff] %v6124_v6  ;;  %v4103_v14 = vld [vmem:[%s7679_s1 + $0x248] sm:$0xff]  ;;  %v4026_v17 = vld [vmem:[%s7679_s1 + $0xd8] sm:$0xff]  ;;  %v4104_v18 = vld [vmem:[%s7679_s1 + $0x250] sm:$0xff]  ;;  %v5361_v27 = vpack.c.bf16 %v4024_v12, %v4023_v11 }
  0x3c   : > { %5352 = vmatpush3.bf16.msra.mxu1 %v5349_v61  ;;  %v4105_v19 = vld [vmem:[%s7679_s1 + $0x258] sm:$0xff]  ;;  %7796 = vst [vmem:[#allocation10_spill] sm:$0xff] %v6164_v20  ;;  %v4027_v21 = vld [vmem:[%s7679_s1 + $0xe0] sm:$0xff]  ;;  %v4028_v22 = vld [vmem:[%s7679_s1 + $0xe8] sm:$0xff]  ;;  %v6182_v28 = vpack.c.bf16 %v4103_v14, %v4102_v13  ;;  %v6193_v34 = vpack.c.bf16 %v4026_v17, %v4025_v15 }
  0x3d   : > { %5480 = vmatpush3.bf16.msra.mxu0 %v6110_v1  ;;  %5354 = vmatprep.subr.bf16.mxu1 %v5353_v5  ;;  %v615_v23 = vld [vmem:[#allocation2 + $0x18] sm:$0xff]  ;;  %v616_v24 = vld [vmem:[#allocation2 + $0x20] sm:$0xff]  ;;  %v4107_v30 = vld [vmem:[%s7679_s1 + $0x268] sm:$0xff]  ;;  %v6195_v35 = vpack.c.bf16 %v4105_v19, %v4104_v18  ;;  %v6205_v40 = vpack.c.bf16 %v4028_v22, %v4027_v21 }
  0x3e   : > { %5482 = vmatprep.subr.bf16.mxu0 %v6124_v6  ;;  %v6175_v25 = vld [vmem:[%s7680_s2] ss:$0 sm:$0xff]  ;;  %7797 = vst [vmem:[#allocation11_spill] sm:$0xff] %v6182_v28  ;;  %v617_v33 = vld [vmem:[#allocation2 + $0x28] sm:$0x3]  ;;  %v4029_v36 = vld [vmem:[%s7679_s1 + $0xf0] sm:$0xff] }
  0x3f   : > { %v6180_v26 = vld [vmem:[%s7681_s3] ss:$0 sm:$0xff]  ;;  %v676_v31 = vmul.f32 %v6175_v25, %v615_v23  ;;  %v677_v32 = vmul.f32 %v6175_v25, %v616_v24  ;;  %7798 = vst [vmem:[#allocation12_spill] sm:$0xff] %v6195_v35  ;;  %v4030_v37 = vld [vmem:[%s7679_s1 + $0xf8] sm:$0xff]  ;;  %v678_v38 = vmul.f32 %v6175_v25, %v617_v33  ;;  %v618_v39 = vld [vmem:[#allocation2 + $0x30] sm:$0xff] }
  0x40   : > { %5356 = vmatpush3.bf16.msra.mxu1 %v5353_v5  ;;  %v4106_v29 = vld [vmem:[%s7679_s1 + $0x260] sm:$0xff]  ;;  %v619_v43 = vld [vmem:[#allocation2 + $0x38] sm:$0xff]  ;;  %v679_v44 = vmul.f32 %v6175_v25, %v618_v39  ;;  %v621_v54 = vld [vmem:[#allocation2 + $0x48] sm:$0xff]  ;;  %v6215_v56 = vpack.c.bf16 %v4030_v37, %v4029_v36 }
  0x41   : > { %5484 = vmatpush3.bf16.msra.mxu0 %v6124_v6  ;;  %5358 = vmatprep.subr.bf16.mxu1 %v5357_v16  ;;  %v737_v41 = vadd.f32 %v6180_v26, %v676_v31  ;;  %v738_v42 = vadd.f32 %v6180_v26, %v677_v32  ;;  %v620_v45 = vld [vmem:[#allocation2 + $0x40] sm:$0x3]  ;;  %v6210_v46 = vpack.c.bf16 %v4107_v30, %v4106_v29  ;;  %v622_v55 = vld [vmem:[#allocation2 + $0x50] sm:$0xff]  ;;  %v4109_v62 = vld [vmem:[%s7679_s1 + $0x278] sm:$0xff] }
  0x42   : > { %5486 = vmatprep.subr.bf16.mxu0 %v6164_v20  ;;  %v739_v47 = vadd.f32 %v6180_v26, %v678_v38  ;;  %v680_v48 = vmul.f32 %v6175_v25, %v619_v43  ;;  %v681_v53 = vmul.f32 %v6175_v25, %v620_v45  ;;  %v740_v59 = vadd.f32 %v6180_v26, %v679_v44  ;;  %v4108_v61 = vld [vmem:[%s7679_s1 + $0x270] sm:$0xff]  ;;  %v1004_v7 = vld [vmem:[%s7679_s1] sm:$0xff]  ;;  %v1005_v8 = vld [vmem:[%s7679_s1 + $0x8] sm:$0xff] }
  0x43   : > { %7799 = vst [vmem:[#allocation13_spill] sm:$0xff] %v6210_v46  ;;  %v6217_v57 = vmax.f32 %v737_v41, 0.0  ;;  %v6219_v58 = vmax.f32 %v738_v42, 0.0  ;;  %v682_v3 = vmul.f32 %v6175_v25, %v621_v54  ;;  %v683_v10 = vmul.f32 %v6175_v25, %v622_v55  ;;  %v4110_v13 = vld [vmem:[%s7679_s1 + $0x280] sm:$0xff]  ;;  %v4111_v14 = vld [vmem:[%s7679_s1 + $0x288] sm:$0xff]  ;;  %v4112_v21 = vld [vmem:[%s7679_s1 + $0x290] sm:$0xff] }
  0x44   : > { %5360 = vmatpush3.bf16.msra.mxu1 %v5357_v16  ;;  %v793_v63 = vmax.f32 %v739_v47, 0.0  ;;  %v741_v0 = vadd.f32 %v6180_v26, %v680_v48  ;;  %v742_v2 = vadd.f32 %v6180_v26, %v681_v53  ;;  %v6245_v9 = vmax.f32 %v740_v59, 0.0  ;;  %v4113_v22 = vld [vmem:[%s7679_s1 + $0x298] sm:$0xff]  ;;  %v1006_v32 = vld [vmem:[%s7679_s1 + $0x10] sm:$0xff]  ;;  %v624_v36 = vld [vmem:[#allocation2 + $0x60] sm:$0xff] }
  0x45   : > { %7800 = vst [vmem:[#allocation14_spill] sm:$0xff] %v6217_v57  ;;  %7801 = vst [vmem:[#allocation15_spill] sm:$0xff] %v6219_v58  ;;  %5488 = vmatpush3.bf16.msra.mxu0 %v6164_v20  ;;  %5362 = vmatprep.subr.bf16.mxu1 %v5361_v27  ;;  %v6236_v4 = vsel %vm494_vm0, %v6217_v57, 0.0  ;;  %v1075_v5 = vrot.slane %v6219_v58, 1  ;;  %v6261_v17 = vpack.c.bf16 %v4109_v62, %v4108_v61  ;;  %v623_v24 = vld [vmem:[#allocation2 + $0x58] sm:$0x3] }
  0x46   : > { %5490 = vmatprep.subr.bf16.mxu0 %v6182_v28  ;;  %v1074_v11 = vrot.slane %v6236_v4, 1  ;;  %v6251_v12 = vsel %vm553_vm1, %v793_v63, 0.0  ;;  %v6259_v15 = vmax.f32 %v741_v0, 0.0  ;;  %v796_v16 = vmax.f32 %v742_v2, 0.0  ;;  %v1007_v33 = vld [vmem:[%s7679_s1 + $0x18] sm:$0xff]  ;;  %v625_v42 = vld [vmem:[#allocation2 + $0x68] sm:$0xff] }
  0x47   : > { %7802 = vst [vmem:[#allocation16_spill] sm:$0xff] %v6261_v17  ;;  %v1077_v18 = vrot.slane %v6251_v12, 1  ;;  %v6267_v19 = vsel %vm494_vm0, %v6245_v9, 0.0  ;;  %v743_v23 = vadd.f32 %v6180_v26, %v682_v3  ;;  %v6295_v37 = vpack.c.bf16 %v1005_v8, %v1004_v7  ;;  %v626_v43 = vld [vmem:[#allocation2 + $0x70] sm:$0x3]  ;;  %v4114_v53 = vld [vmem:[%s7679_s1 + $0x2a0] sm:$0xff] }
  0x48   : > { %5364 = vmatpush3.bf16.msra.mxu1 %v5361_v27  ;;  %v6279_v27 = vsel %vm1068_vm2, %v1074_v11, %v1075_v5  ;;  %v1079_v29 = vrot.slane %v6267_v19, 1  ;;  %v1080_v30 = vrot.slane %v6259_v15, 1  ;;  %v6285_v31 = vsel %vm553_vm1, %v796_v16, 0.0  ;;  %v4115_v54 = vld [vmem:[%s7679_s1 + $0x2a8] sm:$0xff]  ;;  %v627_v55 = vld [vmem:[#allocation2 + $0x78] sm:$0xff]  ;;  %v628_v0 = vld [vmem:[#allocation2 + $0x80] sm:$0xff] }
  0x49   : > { %5492 = vmatpush3.bf16.msra.mxu0 %v6182_v28  ;;  %5366 = vmatprep.subr.bf16.mxu1 %v6193_v34  ;;  %v1082_v38 = vrot.slane %v6285_v31, 1  ;;  %v744_v39 = vadd.f32 %v6180_v26, %v683_v10  ;;  %v6299_v41 = vmax.f32 %v743_v23, 0.0  ;;  %v6302_v44 = vsel %vm1068_vm2, %v1075_v5, %v1077_v18 }
  0x4a   : > { %5494 = vmatprep.subr.bf16.mxu0 %v6195_v35  ;;  %4977 = vmatprep.mubr.f32.mxu0 %v6279_v27  ;;  %v6304_v45 = vpack.c.bf16 %v4111_v14, %v4110_v13  ;;  %v6306_v47 = vpack.c.bf16 %v4113_v22, %v4112_v21  ;;  %v684_v48 = vmul.f32 %v6175_v25, %v623_v24  ;;  %v629_v21 = vld [vmem:[#allocation2 + $0x88] sm:$0x3]  ;;  %v1657_v6 = vrot.slane %v6251_v12, 2 }
  0x4b   : > { %v6317_v59 = vsel %vm1068_vm2, %v1079_v29, %v1080_v30  ;;  %v6319_v61 = vmax.f32 %v744_v39, 0.0  ;;  %v6321_v62 = vpack.c.bf16 %v1007_v33, %v1006_v32  ;;  %v685_v63 = vmul.f32 %v6175_v25, %v624_v36  ;;  %v4117_v36 = vld [vmem:[%s7679_s1 + $0x2b8] sm:$0xff] }
  0x4c   : > { %5368 = vmatpush3.bf16.msra.mxu1 %v6193_v34  ;;  %7803 = vst [vmem:[#allocation17_spill] sm:$0xff] %v6317_v59  ;;  %v6329_v2 = vsel %vm494_vm0, %v6299_v41, 0.0  ;;  %v745_v34 = vadd.f32 %v6180_v26, %v684_v48  ;;  %v686_v3 = vmul.f32 %v6175_v25, %v625_v42  ;;  %v687_v5 = vmul.f32 %v6175_v25, %v626_v43  ;;  %v1008_v48 = vld [vmem:[%s7679_s1 + $0x20] sm:$0xff] }
  0x4d   : > { %5496 = vmatpush3.bf16.msra.mxu0 %v6195_v35  ;;  %5370 = vmatprep.subr.bf16.mxu1 %v6205_v40  ;;  %v6336_v7 = vsel %vm1068_vm2, %v1080_v30, %v1082_v38  ;;  %v6338_v8 = vpack.c.bf16 %v4115_v54, %v4114_v53  ;;  %v746_v10 = vadd.f32 %v6180_v26, %v685_v63  ;;  %v1084_v22 = vrot.slane %v6329_v2, 1  ;;  %v1009_v53 = vld [vmem:[%s7679_s1 + $0x28] sm:$0xff]  ;;  %v638_v35 = vld [vmem:[#allocation2 + $0xd0] sm:$0x3] }
  0x4e   : > { %5498 = vmatprep.subr.bf16.mxu0 %v6210_v46  ;;  %7804 = vst [vmem:[#allocation18_spill] sm:$0xff] %v6336_v7  ;;  %v688_v11 = vmul.f32 %v6175_v25, %v627_v55  ;;  %v799_v13 = vmax.f32 %v745_v34, 0.0  ;;  %v747_v14 = vadd.f32 %v6180_v26, %v686_v3  ;;  %v748_v16 = vadd.f32 %v6180_v26, %v687_v5  ;;  %v4118_v55 = vld [vmem:[%s7679_s1 + $0x2c0] sm:$0xff]  ;;  %v630_v5 = vld [vmem:[#allocation2 + $0x90] sm:$0xff] }
  0x4f   : > { %v689_v18 = vmul.f32 %v6175_v25, %v628_v0  ;;  %v1085_v23 = vrot.slane %v6319_v61, 1  ;;  %v6348_v24 = vmax.f32 %v746_v10, 0.0  ;;  %v690_v54 = vmul.f32 %v6175_v25, %v629_v21  ;;  %v631_v10 = vld [vmem:[#allocation2 + $0x98] sm:$0xff]  ;;  %v632_v21 = vld [vmem:[#allocation2 + $0xa0] sm:$0x3] }
  0x50   : > { %5372 = vmatpush3.bf16.msra.mxu1 %v6205_v40  ;;  %v749_v29 = vadd.f32 %v6180_v26, %v688_v11  ;;  %v6355_v30 = vsel %vm553_vm1, %v799_v13, 0.0  ;;  %v6357_v32 = vmax.f32 %v747_v14, 0.0  ;;  %v802_v33 = vmax.f32 %v748_v16, 0.0  ;;  %v4116_v40 = vld [vmem:[%s7679_s1 + $0x2b0] sm:$0xff] }
  0x51   : > { %7805 = vst [vmem:[#allocation19_spill] sm:$0xff] %v6348_v24  ;;  %5500 = vmatpush3.bf16.msra.mxu0 %v6210_v46  ;;  %5374 = vmatprep.subr.bf16.mxu1 %v6215_v56  ;;  %v750_v38 = vadd.f32 %v6180_v26, %v689_v18  ;;  %v1087_v39 = vrot.slane %v6355_v30, 1  ;;  %v6371_v42 = vsel %vm494_vm0, %v6348_v24, 0.0  ;;  %v6395_v11 = vsel %vm1068_vm2, %v1084_v22, %v1085_v23  ;;  %v4119_v18 = vld [vmem:[%s7679_s1 + $0x2c8] sm:$0xff]  ;;  %v650_v24 = vld [vmem:[#allocation2 + $0x130] sm:$0x3] }
  0x52   : > { %5502 = vmatprep.subr.bf16.mxu0 %v6261_v17  ;;  %v6373_v43 = vmax.f32 %v749_v29, 0.0  ;;  %v1089_v63 = vrot.slane %v6371_v42, 1  ;;  %v1090_v0 = vrot.slane %v6357_v32, 1  ;;  %v6389_v34 = vsel %vm553_vm1, %v802_v33, 0.0  ;;  %7807 = vst [vmem:[#allocation21_spill] sm:$0xff] %v6395_v11  ;;  %v633_v29 = vld [vmem:[#allocation2 + $0xa8] sm:$0xff] }
  0x53   : > { %v6391_v3 = vmax.f32 %v750_v38, 0.0  ;;  %v6397_v13 = vpack.c.bf16 %v4117_v36, %v4116_v40  ;;  %v751_v16 = vadd.f32 %v6180_v26, %v690_v54  ;;  %v1092_v33 = vrot.slane %v6389_v34, 1  ;;  %v634_v36 = vld [vmem:[#allocation2 + $0xb0] sm:$0xff] }
  0x54   : > { %7806 = vst [vmem:[#allocation20_spill] sm:$0xff] %v6373_v43  ;;  %5376 = vmatpush3.bf16.msra.mxu1 %v6215_v56  ;;  %v6402_v14 = vsel %vm494_vm0, %v6373_v43, 0.0  ;;  %v6411_v56 = vsel %vm1068_vm2, %v1085_v23, %v1087_v39  ;;  %v6414_v22 = vsel %vm1068_vm2, %v1089_v63, %v1090_v0  ;;  %v6417_v40 = vpack.c.bf16 %v1009_v53, %v1008_v48  ;;  %v635_v53 = vld [vmem:[#allocation2 + $0xb8] sm:$0x3] }
  0x55   : > { %5504 = vmatpush3.bf16.msra.mxu0 %v6261_v17  ;;  %5378 = vmatprep.subr.bf16.mxu1 %v6295_v37  ;;  %7808 = vst [vmem:[#allocation22_spill] sm:$0xff] %v6411_v56  ;;  %7809 = vst [vmem:[#allocation23_spill] sm:$0xff] %v6414_v22  ;;  %v1094_v38 = vrot.slane %v6402_v14, 1  ;;  %v805_v54 = vmax.f32 %v751_v16, 0.0  ;;  %v691_v51 = vmul.f32 %v6175_v25, %v630_v5  ;;  %v1095_v23 = vrot.slane %v6391_v3, 1 }
  0x56   : > { %5506 = vmatprep.subr.bf16.mxu0 %v6304_v45  ;;  %v692_v17 = vmul.f32 %v6175_v25, %v631_v10  ;;  %v6425_v39 = vpack.c.bf16 %v4119_v18, %v4118_v55  ;;  %v693_v63 = vmul.f32 %v6175_v25, %v632_v21  ;;  %v694_v48 = vmul.f32 %v6175_v25, %v633_v29  ;;  %v4120_v55 = vld [vmem:[%s7679_s1 + $0x2d0] sm:$0xff]  ;;  %v4121_v18 = vld [vmem:[%s7679_s1 + $0x2d8] sm:$0xff] }
  0x57   : > { %4658 = vmatmul.mubr.f32.vlgmr.msra.gmra.mrb[0].mxu1 %v6078_v52  ;;  %v6433_v5 = vsel %vm553_vm1, %v805_v54, 0.0  ;;  %v752_v10 = vadd.f32 %v6180_v26, %v691_v51  ;;  %v695_v21 = vmul.f32 %v6175_v25, %v634_v36 }
  0x58   : > { %4978 = vmatmul.mubr.f32.vlgmr.msra.gmra.mrb[0].mxu0 %v6302_v44  ;;  %5380 = vmatpush3.bf16.msra.mxu1 %v6295_v37  ;;  %v753_v16 = vadd.f32 %v6180_v26, %v692_v17  ;;  %v6447_v37 = vsel %vm1068_vm2, %v1090_v0, %v1092_v33  ;;  %v1097_v51 = vrot.slane %v6433_v5, 1  ;;  %v754_v17 = vadd.f32 %v6180_v26, %v693_v63  ;;  %v636_v0 = vld [vmem:[#allocation2 + $0xc0] sm:$0xff] }
  0x59   : > { %5508 = vmatpush3.bf16.msra.mxu0 %v6304_v45  ;;  %4660 = vmatprep.mubr.f32.mxu1 %v6279_v27  ;;  %7810 = vst [vmem:[#allocation24_spill] sm:$0xff] %v6447_v37  ;;  %v755_v29 = vadd.f32 %v6180_v26, %v694_v48  ;;  %v6454_v54 = vmax.f32 %v752_v10, 0.0  ;;  %v756_v45 = vadd.f32 %v6180_v26, %v695_v21  ;;  %v1010_v10 = vld [vmem:[%s7679_s1 + $0x30] sm:$0xff]  ;;  %v4123_v21 = vld [vmem:[%s7679_s1 + $0x2e8] sm:$0xff] }
  0x5a   : > { %4980 = vmatprep.mubr.f32.mxu0 %v6317_v59  ;;  %5510 = vmatprep.subr.bf16.mxu0 %v6306_v47  ;;  %v6456_v36 = vmax.f32 %v753_v16, 0.0  ;;  %v696_v27 = vmul.f32 %v6175_v25, %v635_v53  ;;  %v6463_v33 = vsel %vm1068_vm2, %v1094_v38, %v1095_v23  ;;  %v808_v63 = vmax.f32 %v754_v17, 0.0  ;;  %v1011_v53 = vld [vmem:[%s7679_s1 + $0x38] sm:$0xff]  ;;  %v637_v17 = vld [vmem:[#allocation2 + $0xc8] sm:$0xff] }
  0x5b   : > { %7811 = vst [vmem:[#allocation25_spill] sm:$0xff] %v6454_v54  ;;  %4661 = vmatmul.mubr.f32.gmra.mrb[2].mxu1 %v6302_v44  ;;  %5382 = vmatprep.subr.bf16.mxu1 %v6321_v62  ;;  %7812 = vst [vmem:[#allocation26_spill] sm:$0xff] %v6463_v33  ;;  %v6465_v48 = vpack.c.bf16 %v4121_v18, %v4120_v55  ;;  %v6467_v52 = vmax.f32 %v755_v29, 0.0  ;;  %v6480_v44 = vsel %vm494_vm0, %v6454_v54, 0.0  ;;  %v6483_v16 = vmax.f32 %v756_v45, 0.0  ;;  %v4122_v18 = vld [vmem:[%s7679_s1 + $0x2e0] sm:$0xff] }
  0x5c   : > { %4981 = vmatmul.mubr.f32.gmra.mrb[2].mxu0 %v6336_v7  ;;  %4663 = vmatprep.mubr.f32.mxu1 %v6317_v59  ;;  %v1100_v38 = vrot.slane %v6456_v36, 1  ;;  %v757_v55 = vadd.f32 %v6180_v26, %v696_v27  ;;  %v1099_v29 = vrot.slane %v6480_v44, 1  ;;  %v6497_v45 = vsel %vm553_vm1, %v808_v63, 0.0 }
  0x5d   : > { %7813 = vst [vmem:[#allocation27_spill] sm:$0xff] %v6467_v52  ;;  %5512 = vmatpush3.bf16.msra.mxu0 %v6306_v47  ;;  %4983 = vmatprep.mubr.f32.mxu0 %v6395_v11  ;;  %v6502_v27 = vsel %vm494_vm0, %v6467_v52, 0.0  ;;  %v697_v46 = vmul.f32 %v6175_v25, %v636_v0  ;;  %v6508_v47 = vsel %vm1068_vm2, %v1095_v23, %v1097_v51  ;;  %v1102_v28 = vrot.slane %v6497_v45, 1 }
  0x5e   : > { %5514 = vmatprep.subr.bf16.mxu0 %v6338_v8  ;;  %5384 = vmatpush3.bf16.msra.mxu1 %v6321_v62  ;;  %7814 = vst [vmem:[#allocation28_spill] sm:$0xff] %v6508_v47  ;;  %v5389_v20 = vpack.c.bf16 %v1011_v53, %v1010_v10  ;;  %v811_v63 = vmax.f32 %v757_v55, 0.0  ;;  %v6514_v1 = vpack.c.bf16 %v4123_v21, %v4122_v18  ;;  %v4124_v62 = vld [vmem:[%s7679_s1 + $0x2f0] sm:$0xff]  ;;  %v1104_v12 = vrot.slane %v6502_v27, 1  ;;  %v1013_v53 = vld [vmem:[%s7679_s1 + $0x48] sm:$0xff]  ;;  %v639_v55 = vld [vmem:[#allocation2 + $0xd8] sm:$0xff] }
  0x5f   : > { %4664 = vmatmul.mubr.f32.gmra.mrb[4].mxu1 %v6336_v7  ;;  %5386 = vmatprep.subr.bf16.mxu1 %v6417_v40  ;;  %v698_v0 = vmul.f32 %v6175_v25, %v637_v17  ;;  %v758_v60 = vadd.f32 %v6180_v26, %v697_v46  ;;  %v1105_v23 = vrot.slane %v6483_v16, 1  ;;  %v699_v10 = vmul.f32 %v6175_v25, %v638_v35  ;;  %v1012_v46 = vld [vmem:[%s7679_s1 + $0x40] sm:$0xff]  ;;  %v4125_v35 = vld [vmem:[%s7679_s1 + $0x2f8] sm:$0xff] }
  0x60   : > { %4984 = vmatmul.mubr.f32.gmra.mrb[4].mxu0 %v6411_v56  ;;  %4666 = vmatprep.mubr.f32.mxu1 %v6395_v11  ;;  %v6527_v51 = vsel %vm553_vm1, %v811_v63, 0.0  ;;  %v6539_v18 = vsel %vm1068_vm2, %v1099_v29, %v1100_v38  ;;  %v1654_v63 = vrot.slane %v6236_v4, 2  ;;  %v4126_v11 = vld [vmem:[%s7679_s1 + $0x300] sm:$0xff]  ;;  %v1655_v4 = vrot.slane %v6219_v58, 2 }
  0x61   : > { %5516 = vmatpush3.bf16.msra.mxu0 %v6338_v8  ;;  %4986 = vmatprep.mubr.f32.mxu0 %v6414_v22  ;;  %7815 = vst [vmem:[#allocation29_spill] sm:$0xff] %v6539_v18  ;;  %v759_v21 = vadd.f32 %v6180_v26, %v698_v0  ;;  %v6542_v17 = vmax.f32 %v758_v60, 0.0  ;;  %v4127_v8 = vld [vmem:[%s7679_s1 + $0x308] sm:$0xff]  ;;  %v6557_v60 = vsel %vm1068_vm2, %v1100_v38, %v1102_v28  ;;  %v1107_v29 = vrot.slane %v6527_v51, 1  ;;  %v640_v7 = vld [vmem:[#allocation2 + $0xe0] sm:$0xff] }
  0x62   : > { %5518 = vmatprep.subr.bf16.mxu0 %v6397_v13  ;;  %5388 = vmatpush3.bf16.msra.mxu1 %v6417_v40  ;;  %7817 = vst [vmem:[#allocation31_spill] sm:$0xff] %v6557_v60  ;;  %v760_v0 = vadd.f32 %v6180_v26, %v699_v10  ;;  %v5393_v40 = vpack.c.bf16 %v1013_v53, %v1012_v46  ;;  %v641_v38 = vld [vmem:[#allocation2 + $0xe8] sm:$0x3] }
  0x63   : > { %7816 = vst [vmem:[#allocation30_spill] sm:$0xff] %v6542_v17  ;;  %4667 = vmatmul.mubr.f32.gmra.mrb[6].mxu1 %v6411_v56  ;;  %5390 = vmatprep.subr.bf16.mxu1 %v5389_v20  ;;  %v6563_v59 = vmax.f32 %v759_v21, 0.0  ;;  %v6568_v52 = vsel %vm494_vm0, %v6542_v17, 0.0  ;;  %v700_v28 = vmul.f32 %v6175_v25, %v639_v55  ;;  %v6574_v10 = vsel %vm1068_vm2, %v1104_v12, %v1105_v23 }
  0x64   : > { %4987 = vmatmul.mubr.f32.gmra.mrb[6].mxu0 %v6447_v37  ;;  %4669 = vmatprep.mubr.f32.mxu1 %v6414_v22  ;;  %7818 = vst [vmem:[#allocation32_spill] sm:$0xff] %v6574_v10  ;;  %v814_v56 = vmax.f32 %v760_v0, 0.0  ;;  %v6576_v54 = vpack.c.bf16 %v4125_v35, %v4124_v62  ;;  %v6578_v21 = vpack.c.bf16 %v4127_v8, %v4126_v11  ;;  %v1109_v46 = vrot.slane %v6568_v52, 1  ;;  %v642_v62 = vld [vmem:[#allocation2 + $0xf0] sm:$0xff] }
  0x65   : > { %5520 = vmatpush3.bf16.msra.mxu0 %v6397_v13  ;;  %4989 = vmatprep.mubr.f32.mxu0 %v6463_v33  ;;  %v1110_v53 = vrot.slane %v6563_v59, 1  ;;  %v701_v55 = vmul.f32 %v6175_v25, %v640_v7  ;;  %v761_v22 = vadd.f32 %v6180_v26, %v700_v28  ;;  %v6588_v12 = vsel %vm1068_vm2, %v1105_v23, %v1107_v29 }
  0x66   : > { %5522 = vmatprep.subr.bf16.mxu0 %v6425_v39  ;;  %7819 = vst [vmem:[#allocation33_spill] sm:$0xff] %v6588_v12  ;;  %5392 = vmatpush3.bf16.msra.mxu1 %v5389_v20  ;;  %v6591_v11 = vsel %vm1648_vm3, %v1654_v63, %v1655_v4  ;;  %v702_v13 = vmul.f32 %v6175_v25, %v641_v38  ;;  %v6597_v35 = vsel %vm553_vm1, %v814_v56, 0.0  ;;  %v643_v20 = vld [vmem:[#allocation2 + $0xf8] sm:$0xff]  ;;  %v644_v63 = vld [vmem:[#allocation2 + $0x100] sm:$0x3]  ;;  %v1659_v29 = vrot.slane %v6267_v19, 2 }
  0x67   : > { %7820 = vst [vmem:[#allocation34_spill] sm:$0xff] %v6591_v11  ;;  %4670 = vmatmul.mubr.f32.gmra.mrb[8].mxu1 %v6447_v37  ;;  %5394 = vmatprep.subr.bf16.mxu1 %v5393_v40  ;;  %v6600_v7 = vsel %vm1648_vm3, %v1655_v4, %v1657_v6  ;;  %v762_v23 = vadd.f32 %v6180_v26, %v701_v55  ;;  %v6603_v8 = vmax.f32 %v761_v22, 0.0  ;;  %v1660_v0 = vrot.slane %v6259_v15, 2  ;;  %v1014_v6 = vld [vmem:[%s7679_s1 + $0x50] sm:$0xff]  ;;  %v1015_v22 = vld [vmem:[%s7679_s1 + $0x58] sm:$0xff] }
  0x68   : > { %7821 = vst [vmem:[#allocation35_spill] sm:$0xff] %v6600_v7  ;;  %4990 = vmatmul.mubr.f32.gmra.mrb[8].mxu0 %v6508_v47  ;;  %4672 = vmatprep.mubr.f32.mxu1 %v6463_v33  ;;  %v763_v56 = vadd.f32 %v6180_v26, %v702_v13  ;;  %v1662_v28 = vrot.slane %v6285_v31, 2  ;;  %v6620_v19 = vsel %vm1068_vm2, %v1109_v46, %v1110_v53  ;;  %v1112_v55 = vrot.slane %v6597_v35, 1 }
  0x69   : > { %7822 = vst [vmem:[#allocation36_spill] sm:$0xff] %v6603_v8  ;;  %5524 = vmatpush3.bf16.msra.mxu0 %v6425_v39  ;;  %4992 = vmatprep.mubr.f32.mxu0 %v6539_v18  ;;  %7823 = vst [vmem:[#allocation37_spill] sm:$0xff] %v6620_v19  ;;  %v6622_v4 = vmax.f32 %v762_v23, 0.0  ;;  %v6627_v31 = vsel %vm494_vm0, %v6603_v8, 0.0  ;;  %v703_v38 = vmul.f32 %v6175_v25, %v642_v62  ;;  %v1664_v46 = vrot.slane %v6329_v2, 2  ;;  %v645_v62 = vld [vmem:[#allocation2 + $0x108] sm:$0xff] }
  0x6a   : > { %5526 = vmatprep.subr.bf16.mxu0 %v6465_v48  ;;  %5396 = vmatpush3.bf16.msra.mxu1 %v5393_v40  ;;  %v817_v39 = vmax.f32 %v763_v56, 0.0  ;;  %v704_v13 = vmul.f32 %v6175_v25, %v643_v20  ;;  %v1114_v23 = vrot.slane %v6627_v31, 1  ;;  %v705_v37 = vmul.f32 %v6175_v25, %v644_v63 }
  0x6b   : > { %7824 = vst [vmem:[#allocation38_spill] sm:$0xff] %v6622_v4  ;;  %4673 = vmatmul.mubr.f32.gmra.mrb[10].mxu1 %v6508_v47  ;;  %v764_v33 = vadd.f32 %v6180_v26, %v703_v38  ;;  %v5397_v8 = vpack.c.bf16 %v1015_v22, %v1014_v6  ;;  %v1115_v40 = vrot.slane %v6622_v4, 1  ;;  %v1665_v56 = vrot.slane %v6319_v61, 2  ;;  %v646_v47 = vld [vmem:[#allocation2 + $0x110] sm:$0xff] }
  0x6c   : > { %4993 = vmatmul.mubr.f32.gmra.mrb[10].mxu0 %v6557_v60  ;;  %4675 = vmatprep.mubr.f32.mxu1 %v6539_v18  ;;  %v6643_v20 = vsel %vm553_vm1, %v817_v39, 0.0  ;;  %v765_v2 = vadd.f32 %v6180_v26, %v704_v13  ;;  %v6650_v63 = vsel %vm1648_vm3, %v1659_v29, %v1660_v0  ;;  %v6653_v6 = vsel %vm1648_vm3, %v1660_v0, %v1662_v28  ;;  %v647_v18 = vld [vmem:[#allocation2 + $0x118] sm:$0x3] }
  0x6d   : > { %5528 = vmatpush3.bf16.msra.mxu0 %v6465_v48  ;;  %4995 = vmatprep.mubr.f32.mxu0 %v6574_v10  ;;  %7825 = vst [vmem:[#allocation39_spill] sm:$0xff] %v6650_v63  ;;  %v6655_v22 = vmax.f32 %v764_v33, 0.0  ;;  %v766_v38 = vadd.f32 %v6180_v26, %v705_v37  ;;  %v6660_v39 = vsel %vm1068_vm2, %v1110_v53, %v1112_v55  ;;  %v1667_v48 = vrot.slane %v6355_v30, 2  ;;  %v4128_v53 = vld [vmem:[%s7679_s1 + $0x310] sm:$0xff]  ;;  %v4129_v30 = vld [vmem:[%s7679_s1 + $0x318] sm:$0xff] }
  0x6e   : > { %5530 = vmatprep.subr.bf16.mxu0 %v6514_v1  ;;  %7827 = vst [vmem:[#allocation41_spill] sm:$0xff] %v6660_v39  ;;  %v6662_v13 = vmax.f32 %v765_v2, 0.0  ;;  %5398 = vmatprep.subr.bf16.mxu1 %v5397_v8  ;;  %v706_v29 = vmul.f32 %v6175_v25, %v645_v62  ;;  %v1117_v33 = vrot.slane %v6643_v20, 1  ;;  %v707_v28 = vmul.f32 %v6175_v25, %v646_v47 }
  0x6f   : > { %7826 = vst [vmem:[#allocation40_spill] sm:$0xff] %v6655_v22  ;;  %4676 = vmatmul.mubr.f32.gmra.mrb[12].mxu1 %v6557_v60  ;;  %v6671_v37 = vsel %vm494_vm0, %v6655_v22, 0.0  ;;  %v820_v0 = vmax.f32 %v766_v38, 0.0  ;;  %v6683_v55 = vsel %vm1068_vm2, %v1114_v23, %v1115_v40  ;;  %v6686_v62 = vsel %vm1648_vm3, %v1664_v46, %v1665_v56  ;;  %v648_v38 = vld [vmem:[#allocation2 + $0x120] sm:$0xff]  ;;  %v649_v23 = vld [vmem:[#allocation2 + $0x128] sm:$0xff] }
  0x70   : > { %4996 = vmatmul.mubr.f32.gmra.mrb[12].mxu0 %v6588_v12  ;;  %4678 = vmatprep.mubr.f32.mxu1 %v6574_v10  ;;  %7828 = vst [vmem:[#allocation42_spill] sm:$0xff] %v6683_v55  ;;  %7829 = vst [vmem:[#allocation43_spill] sm:$0xff] %v6686_v62  ;;  %v767_v2 = vadd.f32 %v6180_v26, %v706_v29  ;;  %v1119_v60 = vrot.slane %v6671_v37, 1  ;;  %v1120_v47 = vrot.slane %v6662_v13, 1 }
  0x71   : > { %5532 = vmatpush3.bf16.msra.mxu0 %v6514_v1  ;;  %4998 = vmatprep.mubr.f32.mxu0 %v6620_v19  ;;  %v768_v22 = vadd.f32 %v6180_v26, %v707_v28  ;;  %v708_v10 = vmul.f32 %v6175_v25, %v647_v18  ;;  %v6698_v46 = vsel %vm553_vm1, %v820_v0, 0.0  ;;  %v6701_v29 = vsel %vm1648_vm3, %v1665_v56, %v1667_v48  ;;  %v1017_v48 = vld [vmem:[%s7679_s1 + $0x68] sm:$0xff] }
  0x72   : > { %5534 = vmatprep.subr.bf16.mxu0 %v6576_v54  ;;  %7830 = vst [vmem:[#allocation44_spill] sm:$0xff] %v6701_v29  ;;  %v6703_v1 = vpack.c.bf16 %v4129_v30, %v4128_v53  ;;  %5400 = vmatpush3.bf16.msra.mxu1 %v5397_v8  ;;  %v6705_v17 = vmax.f32 %v767_v2, 0.0  ;;  %v6709_v28 = vsel %vm1068_vm2, %v1115_v40, %v1117_v33  ;;  %v1669_v56 = vrot.slane %v6371_v42, 2 }
  0x73   : > { %4679 = vmatmul.mubr.f32.gmra.mrb[14].mxu1 %v6588_v12  ;;  %7831 = vst [vmem:[#allocation45_spill] sm:$0xff] %v6709_v28  ;;  %v6711_v18 = vmax.f32 %v768_v22, 0.0  ;;  %v769_v43 = vadd.f32 %v6180_v26, %v708_v10  ;;  %v709_v0 = vmul.f32 %v6175_v25, %v648_v38  ;;  %v1670_v40 = vrot.slane %v6357_v32, 2  ;;  %v1016_v10 = vld [vmem:[%s7679_s1 + $0x60] sm:$0xff] }
  0x74   : > { %4999 = vmatmul.mubr.f32.gmra.mrb[14].mxu0 %v6660_v39  ;;  %4681 = vmatprep.mubr.f32.mxu1 %v6620_v19  ;;  %v6720_v8 = vsel %vm494_vm0, %v6705_v17, 0.0  ;;  %v710_v22 = vmul.f32 %v6175_v25, %v649_v23  ;;  %v6734_v33 = vsel %vm1068_vm2, %v1119_v60, %v1120_v47  ;;  %v1122_v42 = vrot.slane %v6698_v46, 1  ;;  %v651_v19 = vld [vmem:[#allocation2 + $0x138] sm:$0xff] }
  0x75   : > { %5536 = vmatpush3.bf16.msra.mxu0 %v6576_v54  ;;  %5057 = vmatprep.mubr.f32.mxu0 %v6591_v11  ;;  %7832 = vst [vmem:[#allocation46_spill] sm:$0xff] %v6734_v33  ;;  %v823_v53 = vmax.f32 %v769_v43, 0.0  ;;  %v770_v30 = vadd.f32 %v6180_v26, %v709_v0  ;;  %v1124_v2 = vrot.slane %v6720_v8, 1  ;;  %v1672_v38 = vrot.slane %v6389_v34, 2  ;;  %v4130_v34 = vld [vmem:[%s7679_s1 + $0x320] sm:$0xff] }
  0x76   : > { %5538 = vmatprep.subr.bf16.mxu0 %v6578_v21  ;;  %v771_v23 = vadd.f32 %v6180_v26, %v710_v22  ;;  %v711_v54 = vmul.f32 %v6175_v25, %v650_v24  ;;  %v1125_v60 = vrot.slane %v6711_v18, 1  ;;  %v5401_v12 = vpack.c.bf16 %v1017_v48, %v1016_v10  ;;  %v4131_v24 = vld [vmem:[%s7679_s1 + $0x328] sm:$0xff]  ;;  %v652_v48 = vld [vmem:[#allocation2 + $0x140] sm:$0xff] }
  0x77   : > { %4682 = vmatmul.mubr.f32.gmra.mrb[16].mxu1 %v6660_v39  ;;  %v6747_v43 = vsel %vm553_vm1, %v823_v53, 0.0  ;;  %v6749_v0 = vmax.f32 %v770_v30, 0.0  ;;  %v6760_v22 = vsel %vm1648_vm3, %v1669_v56, %v1670_v40  ;;  %v1674_v30 = vrot.slane %v6402_v14, 2 }
  0x78   : > { %5058 = vmatmul.mubr.f32.vlgmr.msra.gmra.mrb[0].mxu0 %v6600_v7  ;;  %4684 = vmatprep.mubr.f32.mxu1 %v6683_v55  ;;  %7834 = vst [vmem:[#allocation48_spill] sm:$0xff] %v6760_v22  ;;  %v6762_v53 = vmax.f32 %v771_v23, 0.0  ;;  %v772_v10 = vadd.f32 %v6180_v26, %v711_v54  ;;  %v1127_v39 = vrot.slane %v6747_v43, 1  ;;  %v1675_v56 = vrot.slane %v6391_v3, 2  ;;  %v653_v7 = vld [vmem:[#allocation2 + $0x148] sm:$0x3] }
  0x79   : > { %7833 = vst [vmem:[#allocation47_spill] sm:$0xff] %v6749_v0  ;;  %5540 = vmatpush3.bf16.msra.mxu0 %v6578_v21  ;;  %5060 = vmatprep.mubr.f32.mxu0 %v6650_v63  ;;  %v6772_v55 = vsel %vm494_vm0, %v6749_v0, 0.0  ;;  %v712_v23 = vmul.f32 %v6175_v25, %v651_v19  ;;  %v6777_v14 = vsel %vm1068_vm2, %v1120_v47, %v1122_v42  ;;  %v1677_v54 = vrot.slane %v6433_v5, 2  ;;  %v654_v42 = vld [vmem:[#allocation2 + $0x150] sm:$0xff] }
  0x7a   : > { %7835 = vst [vmem:[#allocation49_spill] sm:$0xff] %v6762_v53  ;;  %7836 = vst [vmem:[#allocation50_spill] sm:$0xff] %v6777_v14  ;;  %5542 = vmatprep.subr.bf16.mxu0 %v6703_v1  ;;  %v826_v21 = vmax.f32 %v772_v10, 0.0  ;;  %5402 = vmatprep.subr.bf16.mxu1 %v5401_v12  ;;  %v5545_v63 = vpack.c.bf16 %v4131_v24, %v4130_v34  ;;  %v6783_v11 = vsel %vm1068_vm2, %v1124_v2, %v1125_v60 }
  0x7b   : > { %4685 = vmatmul.mubr.f32.gmra.mrb[18].mxu1 %v6709_v28  ;;  %7837 = vst [vmem:[#allocation51_spill] sm:$0xff] %v6783_v11  ;;  %v6786_v0 = vsel %vm1648_vm3, %v1670_v40, %v1672_v38  ;;  %v713_v19 = vmul.f32 %v6175_v25, %v652_v48  ;;  %v773_v47 = vadd.f32 %v6180_v26, %v712_v23  ;;  %v1129_v5 = vrot.slane %v6772_v55, 1  ;;  %v655_v23 = vld [vmem:[#allocation2 + $0x158] sm:$0xff] }
  0x7c   : > { %7838 = vst [vmem:[#allocation52_spill] sm:$0xff] %v6786_v0  ;;  %5061 = vmatmul.mubr.f32.gmra.mrb[2].mxu0 %v6653_v6  ;;  %4687 = vmatprep.mubr.f32.mxu1 %v6734_v33  ;;  %v1130_v34 = vrot.slane %v6762_v53, 1  ;;  %v6796_v2 = vsel %vm553_vm1, %v826_v21, 0.0  ;;  %v714_v40 = vmul.f32 %v6175_v25, %v653_v7  ;;  %v6802_v38 = vsel %vm1068_vm2, %v1125_v60, %v1127_v39  ;;  %v656_v60 = vld [vmem:[#allocation2 + $0x160] sm:$0x3] }
  0x7d   : > { %5063 = vmatprep.mubr.f32.mxu0 %v6686_v62  ;;  %5544 = vmatpush3.bf16.msra.mxu0 %v6703_v1  ;;  %7839 = vst [vmem:[#allocation53_spill] sm:$0xff] %v6802_v38  ;;  %v6805_v24 = vsel %vm1648_vm3, %v1674_v30, %v1675_v56  ;;  %v774_v10 = vadd.f32 %v6180_v26, %v713_v19  ;;  %v6808_v48 = vmax.f32 %v773_v47, 0.0  ;;  %v1679_v7 = vrot.slane %v6480_v44, 2  ;;  %v1018_v30 = vld [vmem:[%s7679_s1 + $0x70] sm:$0xff]  ;;  %v1019_v19 = vld [vmem:[%s7679_s1 + $0x78] sm:$0xff] }
  0x7e   : > { %v6811_v21 = vsel %vm1648_vm3, %v1675_v56, %v1677_v54  ;;  %5546 = vmatprep.subr.bf16.mxu0 %v5545_v63  ;;  %5404 = vmatpush3.bf16.msra.mxu1 %v5401_v12  ;;  %v775_v1 = vadd.f32 %v6180_v26, %v714_v40  ;;  %v715_v39 = vmul.f32 %v6175_v25, %v654_v42  ;;  %v1132_v56 = vrot.slane %v6796_v2, 1  ;;  %v658_v62 = vld [vmem:[#allocation2 + $0x170] sm:$0xff] }
  0x7f   : > { %7840 = vst [vmem:[#allocation54_spill] sm:$0xff] %v6808_v48  ;;  %4688 = vmatmul.mubr.f32.gmra.mrb[20].mxu1 %v6777_v14  ;;  %v6824_v12 = vmax.f32 %v774_v10, 0.0  ;;  %v6829_v44 = vsel %vm494_vm0, %v6808_v48, 0.0  ;;  %v1680_v54 = vrot.slane %v6456_v36, 2  ;;  %v6835_v47 = vsel %vm1068_vm2, %v1129_v5, %v1130_v34  ;;  %v4132_v5 = vld [vmem:[%s7679_s1 + $0x330] sm:$0xff] }
  0x80   : > { %5064 = vmatmul.mubr.f32.gmra.mrb[4].mxu0 %v6701_v29  ;;  %4690 = vmatprep.mubr.f32.mxu1 %v6783_v11  ;;  %7841 = vst [vmem:[#allocation55_spill] sm:$0xff] %v6835_v47  ;;  %v829_v42 = vmax.f32 %v775_v1, 0.0  ;;  %v716_v40 = vmul.f32 %v6175_v25, %v655_v23  ;;  %v776_v10 = vadd.f32 %v6180_v26, %v715_v39  ;;  %v1134_v14 = vrot.slane %v6829_v44, 1  ;;  %v4133_v23 = vld [vmem:[%s7679_s1 + $0x338] sm:$0xff] }
  0x81   : > { %5066 = vmatprep.mubr.f32.mxu0 %v6760_v22  ;;  %5548 = vmatpush3.bf16.msra.mxu0 %v5545_v63  ;;  %v1135_v33 = vrot.slane %v6824_v12, 1  ;;  %v717_v28 = vmul.f32 %v6175_v25, %v656_v60  ;;  %v5405_v29 = vpack.c.bf16 %v1019_v19, %v1018_v30  ;;  %v1682_v63 = vrot.slane %v6497_v45, 2  ;;  %v657_v60 = vld [vmem:[#allocation2 + $0x168] sm:$0xff] }
  0x82   : > { %v6851_v1 = vsel %vm553_vm1, %v829_v42, 0.0  ;;  %v777_v39 = vadd.f32 %v6180_v26, %v716_v40  ;;  %v6855_v11 = vmax.f32 %v776_v10, 0.0  ;;  %v6859_v30 = vsel %vm1068_vm2, %v1130_v34, %v1132_v56  ;;  %v659_v56 = vld [vmem:[#allocation2 + $0x178] sm:$0x3] }
  0x83   : > { %4691 = vmatmul.mubr.f32.gmra.mrb[22].mxu1 %v6802_v38  ;;  %7842 = vst [vmem:[#allocation56_spill] sm:$0xff] %v6859_v30  ;;  %v6862_v19 = vsel %vm1648_vm3, %v1679_v7, %v1680_v54  ;;  %v1684_v22 = vrot.slane %v6502_v27, 2  ;;  %v778_v42 = vadd.f32 %v6180_v26, %v717_v28  ;;  %5406 = vmatprep.subr.bf16.mxu1 %v5405_v29  ;;  %v1137_v45 = vrot.slane %v6851_v1, 1 }
  0x84   : > { %5067 = vmatmul.mubr.f32.gmra.mrb[6].mxu0 %v6786_v0  ;;  %4693 = vmatprep.mubr.f32.mxu1 %v6835_v47  ;;  %v6869_v40 = vmax.f32 %v777_v39, 0.0  ;;  %v6874_v34 = vsel %vm494_vm0, %v6855_v11, 0.0  ;;  %v5549_v7 = vpack.c.bf16 %v4133_v23, %v4132_v5  ;;  %v6878_v27 = vsel %vm1068_vm2, %v1134_v14, %v1135_v33 }
  0x85   : > { %5069 = vmatprep.mubr.f32.mxu0 %v6805_v24  ;;  %7843 = vst [vmem:[#allocation57_spill] sm:$0xff] %v6878_v27  ;;  %v1139_v28 = vrot.slane %v6874_v34, 1  ;;  %v832_v10 = vmax.f32 %v778_v42, 0.0  ;;  %5408 = vmatpush3.bf16.msra.mxu1 %v5405_v29  ;;  %v718_v47 = vmul.f32 %v6175_v25, %v657_v60  ;;  %v6883_v39 = vsel %vm1648_vm3, %v1680_v54, %v1682_v63  ;;  %v4046_v63 = vld [vmem:[%s7679_s1 + $0x100] sm:$0xff] }
  0x86   : > { %v1140_v38 = vrot.slane %v6869_v40, 1  ;;  %v1685_v0 = vrot.slane %v6483_v16, 2  ;;  %5550 = vmatprep.subr.bf16.mxu0 %v5549_v7  ;;  %v719_v5 = vmul.f32 %v6175_v25, %v658_v62  ;;  %v1687_v29 = vrot.slane %v6527_v51, 2  ;;  %v4047_v62 = vld [vmem:[%s7679_s1 + $0x108] sm:$0xff]  ;;  %v4134_v42 = vld [vmem:[%s7679_s1 + $0x340] sm:$0xff] }
  0x87   : > { %4694 = vmatmul.mubr.f32.gmra.mrb[24].mxu1 %v6859_v30  ;;  %v6891_v14 = vsel %vm553_vm1, %v832_v10, 0.0  ;;  %5552 = vmatpush3.bf16.msra.mxu0 %v5549_v7  ;;  %v779_v23 = vadd.f32 %v6180_v26, %v718_v47  ;;  %v720_v54 = vmul.f32 %v6175_v25, %v659_v56  ;;  %v6905_v60 = vsel %vm1068_vm2, %v1135_v33, %v1137_v45  ;;  %v4135_v7 = vld [vmem:[%s7679_s1 + $0x348] sm:$0xff] }
  0x88   : > { %5070 = vmatmul.mubr.f32.gmra.mrb[8].mxu0 %v6811_v21  ;;  %4696 = vmatprep.mubr.f32.mxu1 %v6878_v27  ;;  %7844 = vst [vmem:[#allocation58_spill] sm:$0xff] %v6905_v60  ;;  %v1142_v51 = vrot.slane %v6891_v14, 1  ;;  %v780_v47 = vadd.f32 %v6180_v26, %v719_v5  ;;  %v1689_v25 = vrot.slane %v6568_v52, 2  ;;  %v6918_v56 = vsel %vm1068_vm2, %v1139_v28, %v1140_v38 }
  0x89   : > { %5072 = vmatprep.mubr.f32.mxu0 %v6862_v19  ;;  %7845 = vst [vmem:[#allocation59_spill] sm:$0xff] %v6918_v56  ;;  %v6920_v33 = vmax.f32 %v779_v23, 0.0  ;;  %v1690_v45 = vrot.slane %v6563_v59, 2  ;;  %v781_v10 = vadd.f32 %v6180_v26, %v720_v54  ;;  %v6925_v52 = vsel %vm1648_vm3, %v1684_v22, %v1685_v0 }
  0x8a   : > { %v6927_v5 = vmax.f32 %v780_v47, 0.0  ;;  %v5409_v27 = vpack.c.bf16 %v4047_v62, %v4046_v63  ;;  %v5553_v23 = vpack.c.bf16 %v4135_v7, %v4134_v42  ;;  %v6938_v26 = vsel %vm1068_vm2, %v1140_v38, %v1142_v51  ;;  %v4136_v38 = vld [vmem:[%s7679_s1 + $0x350] sm:$0xff]  ;;  %v4137_v51 = vld [vmem:[%s7679_s1 + $0x358] sm:$0xff] }
  0x8b   : > { %4697 = vmatmul.mubr.f32.gmra.mrb[26].mxu1 %v6905_v60  ;;  %v6933_v30 = vsel %vm494_vm0, %v6920_v33, 0.0  ;;  %v835_v28 = vmax.f32 %v781_v10, 0.0  ;;  %7847 = vst [vmem:[#allocation61_spill] sm:$0xff] %v6938_v26  ;;  %v6944_v63 = vsel %vm1648_vm3, %v1685_v0, %v1687_v29  ;;  %v6947_v62 = vsel %vm1648_vm3, %v1689_v25, %v1690_v45  ;;  %v4139_v10 = vld [vmem:[%s7679_s1 + $0x368] sm:$0xff] }
  0x8c   : > { %7846 = vst [vmem:[#allocation60_spill] sm:$0xff] %v6927_v5  ;;  %5073 = vmatmul.mubr.f32.gmra.mrb[10].mxu0 %v6883_v39  ;;  %4699 = vmatprep.mubr.f32.mxu1 %v6918_v56  ;;  %v1144_v22 = vrot.slane %v6933_v30, 1  ;;  %v1145_v54 = vrot.slane %v6927_v5, 1  ;;  %v1692_v42 = vrot.slane %v6597_v35, 2  ;;  %v1694_v25 = vrot.slane %v6627_v31, 2  ;;  %v4138_v35 = vld [vmem:[%s7679_s1 + $0x360] sm:$0xff] }
  0x8d   : > { %5075 = vmatprep.mubr.f32.mxu0 %v6925_v52  ;;  %v6951_v47 = vsel %vm553_vm1, %v835_v28, 0.0  ;;  %5410 = vmatprep.subr.bf16.mxu1 %v5409_v27  ;;  %v1695_v7 = vrot.slane %v6622_v4, 2  ;;  %v5557_v28 = vpack.c.bf16 %v4137_v51, %v4136_v38  ;;  %v1699_v56 = vrot.slane %v6671_v37, 2  ;;  %v4141_v37 = vld [vmem:[%s7679_s1 + $0x378] sm:$0xff] }
  0x8e   : > { %v6961_v0 = vsel %vm1068_vm2, %v1144_v22, %v1145_v54  ;;  %v1147_v29 = vrot.slane %v6951_v47, 1  ;;  %5554 = vmatprep.subr.bf16.mxu0 %v5553_v23  ;;  %v1697_v22 = vrot.slane %v6643_v20, 2  ;;  %v1700_v60 = vrot.slane %v6662_v13, 2  ;;  %v4140_v20 = vld [vmem:[%s7679_s1 + $0x370] sm:$0xff] }
  0x8f   : > { %7848 = vst [vmem:[#allocation62_spill] sm:$0xff] %v6961_v0  ;;  %4700 = vmatmul.mubr.f32.gmra.mrb[28].mxu1 %v6938_v26  ;;  %5556 = vmatpush3.bf16.msra.mxu0 %v5553_v23  ;;  %v6980_v23 = vsel %vm1648_vm3, %v1690_v45, %v1692_v42  ;;  %v6984_v26 = vsel %vm1648_vm3, %v1694_v25, %v1695_v7  ;;  %v4049_v45 = vld [vmem:[%s7679_s1 + $0x118] sm:$0xff]  ;;  %v7850_v42 = vmov 0.0   ;;  %v1704_v25 = vrot.slane %v6720_v8, 2  ;;  %v4157_v8 = vld [vmem:[%s7679_s1 + $0x380] sm:$0xff] }
  0x90   : > { %5076 = vmatmul.mubr.f32.gmra.mrb[12].mxu0 %v6944_v63  ;;  %4702 = vmatprep.mubr.f32.mxu1 %v6961_v0  ;;  %v6976_v31 = vsel %vm1068_vm2, %v1145_v54, %v1147_v29  ;;  %v4048_v54 = vld [vmem:[%s7679_s1 + $0x110] sm:$0xff]  ;;  %v5561_v38 = vpack.c.bf16 %v4139_v10, %v4138_v35  ;;  %v7005_v51 = vsel %vm1648_vm3, %v1695_v7, %v1697_v22  ;;  %v1702_v29 = vrot.slane %v6698_v46, 2  ;;  %v4051_v46 = vld [vmem:[%s7679_s1 + $0x128] sm:$0xff]  ;;  %v660_v7 = vld [vmem:[#allocation2 + $0x180] sm:$0xff] }
  0x91   : > { %7849 = vst [vmem:[#allocation63_spill] sm:$0xff] %v6976_v31  ;;  %5078 = vmatprep.mubr.f32.mxu0 %v6947_v62  ;;  %5558 = vmatprep.subr.bf16.mxu0 %v5557_v28  ;;  %7851 = vst [vmem:[#allocation64_spill] sm:$0xff] %v7005_v51  ;;  %v7010_v35 = vsel %vm1648_vm3, %v1699_v56, %v1700_v60  ;;  %v1705_v10 = vrot.slane %v6711_v18, 2  ;;  %v5565_v0 = vpack.c.bf16 %v4141_v37, %v4140_v20  ;;  %v4158_v56 = vld [vmem:[%s7679_s1 + $0x388] sm:$0xff]  ;;  %v4052_v37 = vld [vmem:[%s7679_s1 + $0x130] sm:$0xff] }
  0x92   : > { %v7032_v22 = vsel %vm1648_vm3, %v1700_v60, %v1702_v29  ;;  %v5930_v60 = vld [vmem:[%s7680_s2] ss:$0 sm:$0xff]  ;;  %v662_v29 = vld [vmem:[#allocation2 + $0x190] sm:$0x3] }
  0x93   : > { %4703 = vmatmul.mubr.f32.gmra.mrb[30].mxu1 %v6976_v31  ;;  %5560 = vmatpush3.bf16.msra.mxu0 %v5557_v28  ;;  %v5413_v28 = vpack.c.bf16 %v4049_v45, %v4048_v54  ;;  %v4050_v31 = vld [vmem:[%s7679_s1 + $0x120] sm:$0xff]  ;;  %7852 = vst [vmem:[#allocation65_spill] sm:$0xff] %v7032_v22  ;;  %v1707_v54 = vrot.slane %v6747_v43, 2  ;;  %v1710_v45 = vrot.slane %v6762_v53, 2  ;;  %v7038_v20 = vsel %vm1648_vm3, %v1704_v25, %v1705_v10  ;;  %v661_v43 = vld [vmem:[#allocation2 + $0x188] sm:$0xff] }
  0x94   : > { %5079 = vmatmul.mubr.f32.gmra.mrb[14].mxu0 %v6980_v23  ;;  %4737 = vmatprep.mubr.f32.mxu1 %v7850_v42  ;;  %7853 = vst [vmem:[#allocation66_spill] sm:$0xff] %v7038_v20 }
  0x95   : > { %5081 = vmatprep.mubr.f32.mxu0 %v6984_v26  ;;  %5562 = vmatprep.subr.bf16.mxu0 %v5561_v38  ;;  %v7058_v25 = vsel %vm1648_vm3, %v1705_v10, %v1707_v54  ;;  %v5931_v10 = vld [vmem:[%s7681_s3] ss:$0 sm:$0xff] }
  0x97   : > { %4738 = vmatmul.mubr.f32.vlgmr.msra.gmra.mrb[0].mxu1 %v7850_v42  ;;  %5564 = vmatpush3.bf16.msra.mxu0 %v5561_v38  ;;  %v1709_v38 = vrot.slane %v6772_v55, 2  ;;  %v4053_v55 = vld [vmem:[%s7679_s1 + $0x138] sm:$0xff] }
  0x98   : > { %5082 = vmatmul.mubr.f32.gmra.mrb[16].mxu0 %v7005_v51  ;;  %5412 = vmatpush3.bf16.msra.mxu1 %v5409_v27  ;;  %v5417_v27 = vpack.c.bf16 %v4051_v46, %v4050_v31  ;;  %v721_v31 = vmul.f32 %v5930_v60, %v660_v7  ;;  %v1712_v46 = vrot.slane %v6796_v2, 2  ;;  %v5421_v7 = vpack.c.bf16 %v4053_v55, %v4052_v37  ;;  %v4054_v2 = vld [vmem:[%s7679_s1 + $0x140] sm:$0xff] }
  0x99   : > { %4740 = vmatprep.mubr.msk.f32.mxu1 %vm494_vm0, %v6217_v57  ;;  %5084 = vmatprep.mubr.f32.mxu0 %v7010_v35  ;;  %v7043_v57 = vpack.c.bf16 %v4158_v56, %v4157_v8  ;;  %v1714_v8 = vrot.slane %v6829_v44, 2  ;;  %v1715_v56 = vrot.slane %v6824_v12, 2  ;;  %v4055_v44 = vld [vmem:[%s7679_s1 + $0x148] sm:$0xff]  ;;  %v1719_v37 = vrot.slane %v6874_v34, 2  ;;  %v4057_v34 = vld [vmem:[%s7679_s1 + $0x158] sm:$0xff] }
  0x9a   : > { %5414 = vmatprep.subr.bf16.mxu1 %v5413_v28  ;;  %5566 = vmatprep.subr.bf16.mxu0 %v5565_v0  ;;  %v7083_v54 = vsel %vm1648_vm3, %v1710_v45, %v1712_v46  ;;  %v1720_v55 = vrot.slane %v6869_v40, 2  ;;  %v1725_v46 = vrot.slane %v6927_v5, 2 }
  0x9b   : > { %4741 = vmatmul.mubr.f32.gmra.mrb[2].mxu1 %v6219_v58  ;;  %5568 = vmatpush3.bf16.msra.mxu0 %v5565_v0  ;;  %v7061_v0 = vsel %vm1648_vm3, %v1709_v38, %v1710_v45  ;;  %v722_v58 = vmul.f32 %v5930_v60, %v661_v43  ;;  %v1717_v38 = vrot.slane %v6851_v1, 2  ;;  %v7089_v43 = vsel %vm1648_vm3, %v1714_v8, %v1715_v56  ;;  %v4056_v1 = vld [vmem:[%s7679_s1 + $0x150] sm:$0xff]  ;;  %v7856_v45 = vld [vmem:[#allocation19_spill] sm:$0xff] }
  0x9c   : > { %5085 = vmatmul.mubr.f32.gmra.mrb[18].mxu0 %v7032_v22  ;;  %4743 = vmatprep.mubr.msk.f32.mxu1 %vm494_vm0, %v6245_v9  ;;  %7854 = vst [vmem:[#allocation67_spill] sm:$0xff] %v7061_v0  ;;  %v723_v22 = vmul.f32 %v5930_v60, %v662_v29  ;;  %v5425_v29 = vpack.c.bf16 %v4055_v44, %v4054_v2 }
  0x9d   : > { %5087 = vmatprep.mubr.f32.mxu0 %v7038_v20  ;;  %5416 = vmatpush3.bf16.msra.mxu1 %v5413_v28  ;;  %v782_v28 = vadd.f32 %v5931_v10, %v721_v31  ;;  %v783_v60 = vadd.f32 %v5931_v10, %v722_v58  ;;  %v7106_v58 = vsel %vm1648_vm3, %v1715_v56, %v1717_v38 }
  0x9e   : > { %5418 = vmatprep.subr.bf16.mxu1 %v5417_v27  ;;  %5570 = vmatprep.subr.bf16.mxu0 %v7043_v57  ;;  %v784_v31 = vadd.f32 %v5931_v10, %v723_v22  ;;  %v1722_v22 = vrot.slane %v6891_v14, 2  ;;  %v7112_v8 = vsel %vm1648_vm3, %v1719_v37, %v1720_v55  ;;  %v5429_v2 = vpack.c.bf16 %v4057_v34, %v4056_v1  ;;  %v4059_v14 = vld [vmem:[%s7679_s1 + $0x168] sm:$0xff] }
  0x9f   : > { %4744 = vmatmul.mubr.f32.gmra.mrb[4].mxu1 %v6259_v15  ;;  %v7114_v10 = vmax.f32 %v783_v60, 0.0  ;;  %v1727_v37 = vrot.slane %v6951_v47, 2  ;;  %v4061_v47 = vld [vmem:[%s7679_s1 + $0x178] sm:$0xff] }
  0xa0   : > { %5088 = vmatmul.mubr.f32.gmra.mrb[20].mxu0 %v7058_v25  ;;  %4746 = vmatprep.mubr.msk.f32.mxu1 %vm494_vm0, %v6299_v41  ;;  %v7134_v44 = vsel %vm1648_vm3, %v1720_v55, %v1722_v22  ;;  %v4060_v55 = vld [vmem:[%s7679_s1 + $0x170] sm:$0xff] }
  0xa1   : > { %5090 = vmatprep.mubr.f32.mxu0 %v7061_v0  ;;  %5420 = vmatpush3.bf16.msra.mxu1 %v5417_v27  ;;  %v7092_v0 = vmax.f32 %v782_v28, 0.0  ;;  %v1724_v27 = vrot.slane %v6933_v30, 2  ;;  %v838_v28 = vmax.f32 %v784_v31, 0.0  ;;  %v4058_v30 = vld [vmem:[%s7679_s1 + $0x160] sm:$0xff]  ;;  %v2594_v31 = vrot.slane %v7114_v10, 2 }
  0xa2   : > { %5422 = vmatprep.subr.bf16.mxu1 %v5421_v7  ;;  %v5433_v34 = vpack.c.bf16 %v4059_v14, %v4058_v30  ;;  %v7159_v50 = vsel %vm1648_vm3, %v1725_v46, %v1727_v37  ;;  %v4062_v30 = vld [vmem:[%s7679_s1 + $0x180] sm:$0xff]  ;;  %v4063_v14 = vld [vmem:[%s7679_s1 + $0x188] sm:$0xff] }
  0xa3   : > { %4747 = vmatmul.mubr.f32.gmra.mrb[6].mxu1 %v6319_v61  ;;  %7855 = vst [vmem:[#allocation68_spill] sm:$0xff] %v7092_v0  ;;  %v7120_v56 = vsel %vm494_vm0, %v7092_v0, 0.0  ;;  %v7137_v38 = vsel %vm1648_vm3, %v1724_v27, %v1725_v46  ;;  %v7144_v1 = vsel %vm553_vm1, %v838_v28, 0.0  ;;  %v5437_v28 = vpack.c.bf16 %v4061_v47, %v4060_v55  ;;  %v7860_v46 = vld [vmem:[#allocation27_spill] sm:$0xff]  ;;  %v7862_v47 = vld [vmem:[#allocation30_spill] sm:$0xff] }
  0xa4   : > { %5091 = vmatmul.mubr.f32.gmra.mrb[22].mxu0 %v7083_v54  ;;  %4749 = vmatprep.mubr.msk.f32.mxu1 %vm494_vm0, %v7856_v45  ;;  %v2593_v60 = vrot.slane %v7120_v56, 2  ;;  %v2596_v22 = vrot.slane %v7144_v1, 2  ;;  %v7180_v37 = vpack.c.bf16 %v4063_v14, %v4062_v30  ;;  %v4160_v55 = vld [vmem:[%s7679_s1 + $0x398] sm:$0xff]  ;;  %v7863_v30 = vld [vmem:[#allocation36_spill] sm:$0xff]  ;;  %v4163_v14 = vld [vmem:[%s7679_s1 + $0x3b0] sm:$0xff] }
  0xa5   : > { %5093 = vmatprep.mubr.f32.mxu0 %v7089_v43  ;;  %5424 = vmatpush3.bf16.msra.mxu1 %v5421_v7  ;;  %v7857_v7 = vld [vmem:[#allocation20_spill] sm:$0xff] }
  0xa6   : > { %5426 = vmatprep.subr.bf16.mxu1 %v5425_v29  ;;  %v7163_v27 = vsel %vm1648_vm3, %v2593_v60, %v2594_v31  ;;  %v4159_v60 = vld [vmem:[%s7679_s1 + $0x390] sm:$0xff] }
  0xa7   : > { %4750 = vmatmul.mubr.f32.gmra.mrb[8].mxu1 %v6357_v32  ;;  %7859 = vst [vmem:[#allocation19_spill] sm:$0xff] %v7163_v27 }
  0xa8   : > { %5094 = vmatmul.mubr.f32.gmra.mrb[24].mxu0 %v7106_v58  ;;  %4752 = vmatprep.mubr.msk.f32.mxu1 %vm494_vm0, %v7857_v7 }
  0xa9   : > { %5096 = vmatprep.mubr.f32.mxu0 %v7112_v8  ;;  %5428 = vmatpush3.bf16.msra.mxu1 %v5425_v29  ;;  %v7858_v29 = vld [vmem:[#allocation25_spill] sm:$0xff] }
  0xaa   : > { %5430 = vmatprep.subr.bf16.mxu1 %v5429_v2 }
  0xab   : > { %4753 = vmatmul.mubr.f32.gmra.mrb[10].mxu1 %v6391_v3 }
  0xac   : > { %5097 = vmatmul.mubr.f32.gmra.mrb[26].mxu0 %v7134_v44  ;;  %4755 = vmatprep.mubr.msk.f32.mxu1 %vm494_vm0, %v7858_v29 }
  0xad   : > { %5099 = vmatprep.mubr.f32.mxu0 %v7137_v38  ;;  %5432 = vmatpush3.bf16.msra.mxu1 %v5429_v2  ;;  %v7178_v2 = vsel %vm1648_vm3, %v2594_v31, %v2596_v22  ;;  %v5573_v31 = vpack.c.bf16 %v4160_v55, %v4159_v60  ;;  %v4162_v22 = vld [vmem:[%s7679_s1 + $0x3a8] sm:$0xff]  ;;  %v4164_v60 = vld [vmem:[%s7679_s1 + $0x3b8] sm:$0xff]  ;;  %v7864_v55 = vld [vmem:[#allocation40_spill] sm:$0xff] }
  0xae   : > { %5434 = vmatprep.subr.bf16.mxu1 %v5433_v34  ;;  %7861 = vst [vmem:[#allocation20_spill] sm:$0xff] %v7178_v2  ;;  %v7923_v49 = vld [vmem:[#allocation19_spill] sm:$0xff] }
  0xaf   : > { %4756 = vmatmul.mubr.f32.gmra.mrb[12].mxu1 %v6456_v36 }
  0xb0   : > { %5100 = vmatmul.mubr.f32.gmra.mrb[28].mxu0 %v7159_v50  ;;  %4758 = vmatprep.mubr.msk.f32.mxu1 %vm494_vm0, %v7860_v46 }
  0xb1   : > { %5102 = vmatprep.mubr.f32.mxu0 %v7163_v27  ;;  %5436 = vmatpush3.bf16.msra.mxu1 %v5433_v34  ;;  %v4161_v34 = vld [vmem:[%s7679_s1 + $0x3a0] sm:$0xff]  ;;  %v4065_v27 = vld [vmem:[%s7679_s1 + $0x198] sm:$0xff] }
  0xb2   : > { %5438 = vmatprep.subr.bf16.mxu1 %v5437_v28 }
  0xb3   : > { %4759 = vmatmul.mubr.f32.gmra.mrb[14].mxu1 %v6483_v16 }
  0xb4   : > { %5103 = vmatmul.mubr.f32.gmra.mrb[30].mxu0 %v7178_v2  ;;  %4761 = vmatprep.mubr.msk.f32.mxu1 %vm494_vm0, %v7862_v47  ;;  %v7865_v2 = vld [vmem:[#allocation47_spill] sm:$0xff] }
  0xb5   : > { %5137 = vmatprep.mubr.msk.f32.mxu0 %vm494_vm0, %v6245_v9  ;;  %5440 = vmatpush3.bf16.msra.mxu1 %v5437_v28  ;;  %v5577_v28 = vpack.c.bf16 %v4162_v22, %v4161_v34  ;;  %v4165_v34 = vld [vmem:[%s7679_s1 + $0x3c0] sm:$0xff]  ;;  %v4166_v22 = vld [vmem:[%s7679_s1 + $0x3c8] sm:$0xff] }
  0xb6   : > { %5442 = vmatprep.subr.bf16.mxu1 %v7180_v37 }
  0xb7   : > { %4762 = vmatmul.mubr.f32.gmra.mrb[16].mxu1 %v6563_v59 }
  0xb8   : > { %5138 = vmatmul.mubr.f32.vlgmr.msra.gmra.mrb[0].mxu0 %v6259_v15  ;;  %4764 = vmatprep.mubr.msk.f32.mxu1 %vm494_vm0, %v7863_v30 }
  0xb9   : > { %5572 = vmatpush3.bf16.msra.mxu0 %v7043_v57  ;;  %5140 = vmatprep.mubr.msk.f32.mxu0 %vm494_vm0, %v6299_v41  ;;  %v5581_v57 = vpack.c.bf16 %v4164_v60, %v4163_v14  ;;  %v4167_v14 = vld [vmem:[%s7679_s1 + $0x3d0] sm:$0xff]  ;;  %v4168_v60 = vld [vmem:[%s7679_s1 + $0x3d8] sm:$0xff] }
  0xba   : > { %5574 = vmatprep.subr.bf16.mxu0 %v5573_v31 }
  0xbb   : > { %4765 = vmatmul.mubr.f32.gmra.mrb[18].mxu1 %v6622_v4 }
  0xbc   : > { %5141 = vmatmul.mubr.f32.gmra.mrb[2].mxu0 %v6319_v61  ;;  %4767 = vmatprep.mubr.msk.f32.mxu1 %vm494_vm0, %v7864_v55 }
  0xbd   : > { %5143 = vmatprep.mubr.msk.f32.mxu0 %vm494_vm0, %v7856_v45  ;;  %5576 = vmatpush3.bf16.msra.mxu0 %v5573_v31  ;;  %v5585_v31 = vpack.c.bf16 %v4166_v22, %v4165_v34  ;;  %v4169_v34 = vld [vmem:[%s7679_s1 + $0x3e0] sm:$0xff]  ;;  %v4170_v22 = vld [vmem:[%s7679_s1 + $0x3e8] sm:$0xff] }
  0xbe   : > { %5578 = vmatprep.subr.bf16.mxu0 %v5577_v28 }
  0xbf   : > { %4768 = vmatmul.mubr.f32.gmra.mrb[20].mxu1 %v6662_v13 }
  0xc0   : > { %5144 = vmatmul.mubr.f32.gmra.mrb[4].mxu0 %v6357_v32  ;;  %4770 = vmatprep.mubr.msk.f32.mxu1 %vm494_vm0, %v6705_v17 }
  0xc1   : > { %5146 = vmatprep.mubr.msk.f32.mxu0 %vm494_vm0, %v7857_v7  ;;  %5580 = vmatpush3.bf16.msra.mxu0 %v5577_v28  ;;  %v5589_v28 = vpack.c.bf16 %v4168_v60, %v4167_v14  ;;  %v4171_v14 = vld [vmem:[%s7679_s1 + $0x3f0] sm:$0xff]  ;;  %v4172_v60 = vld [vmem:[%s7679_s1 + $0x3f8] sm:$0xff] }
  0xc2   : > { %5582 = vmatprep.subr.bf16.mxu0 %v5581_v57 }
  0xc3   : > { %4771 = vmatmul.mubr.f32.gmra.mrb[22].mxu1 %v6711_v18 }
  0xc4   : > { %5147 = vmatmul.mubr.f32.gmra.mrb[6].mxu0 %v6391_v3  ;;  %4773 = vmatprep.mubr.msk.f32.mxu1 %vm494_vm0, %v7865_v2 }
  0xc5   : > { %5149 = vmatprep.mubr.msk.f32.mxu0 %vm494_vm0, %v7858_v29  ;;  %5584 = vmatpush3.bf16.msra.mxu0 %v5581_v57  ;;  %v5593_v57 = vpack.c.bf16 %v4170_v22, %v4169_v34  ;;  %v4173_v34 = vld [vmem:[%s7679_s1 + $0x400] sm:$0xff]  ;;  %v4174_v22 = vld [vmem:[%s7679_s1 + $0x408] sm:$0xff] }
  0xc6   : > { %5586 = vmatprep.subr.bf16.mxu0 %v5585_v31 }
  0xc7   : > { %4774 = vmatmul.mubr.f32.gmra.mrb[24].mxu1 %v6762_v53 }
  0xc8   : > { %5150 = vmatmul.mubr.f32.gmra.mrb[8].mxu0 %v6456_v36  ;;  %4776 = vmatprep.mubr.msk.f32.mxu1 %vm494_vm0, %v6808_v48 }
  0xc9   : > { %5152 = vmatprep.mubr.msk.f32.mxu0 %vm494_vm0, %v7860_v46  ;;  %5588 = vmatpush3.bf16.msra.mxu0 %v5585_v31  ;;  %v5597_v31 = vpack.c.bf16 %v4172_v60, %v4171_v14  ;;  %v7299_v14 = vpack.c.bf16 %v4174_v22, %v4173_v34  ;;  %v4064_v60 = vld [vmem:[%s7679_s1 + $0x190] sm:$0xff]  ;;  %v4066_v34 = vld [vmem:[%s7679_s1 + $0x1a0] sm:$0xff]  ;;  %v4067_v22 = vld [vmem:[%s7679_s1 + $0x1a8] sm:$0xff] }
  0xca   : > { %5590 = vmatprep.subr.bf16.mxu0 %v5589_v28 }
  0xcb   : > { %4777 = vmatmul.mubr.f32.gmra.mrb[26].mxu1 %v6824_v12 }
  0xcc   : > { %5153 = vmatmul.mubr.f32.gmra.mrb[10].mxu0 %v6483_v16  ;;  %4779 = vmatprep.mubr.msk.f32.mxu1 %vm494_vm0, %v6855_v11 }
  0xcd   : > { %5155 = vmatprep.mubr.msk.f32.mxu0 %vm494_vm0, %v7862_v47  ;;  %5592 = vmatpush3.bf16.msra.mxu0 %v5589_v28  ;;  %v7294_v28 = vrot.slane %v7850_v42, 2 }
  0xce   : > { %5594 = vmatprep.subr.bf16.mxu0 %v5593_v57 }
  0xcf   : > { %4780 = vmatmul.mubr.f32.gmra.mrb[28].mxu1 %v6869_v40  ;;  %7866 = vst [vmem:[#allocation25_spill] sm:$0xff] %v7294_v28 }
  0xd0   : > { %5156 = vmatmul.mubr.f32.gmra.mrb[12].mxu0 %v6563_v59  ;;  %4782 = vmatprep.mubr.msk.f32.mxu1 %vm494_vm0, %v6920_v33 }
  0xd1   : > { %5158 = vmatprep.mubr.msk.f32.mxu0 %vm494_vm0, %v7863_v30  ;;  %5596 = vmatpush3.bf16.msra.mxu0 %v5593_v57  ;;  %v5445_v57 = vpack.c.bf16 %v4065_v27, %v4064_v60  ;;  %v5449_v27 = vpack.c.bf16 %v4067_v22, %v4066_v34  ;;  %v4068_v60 = vld [vmem:[%s7679_s1 + $0x1b0] sm:$0xff]  ;;  %v4070_v34 = vld [vmem:[%s7679_s1 + $0x1c0] sm:$0xff]  ;;  %v4071_v22 = vld [vmem:[%s7679_s1 + $0x1c8] sm:$0xff] }
  0xd2   : > { %5598 = vmatprep.subr.bf16.mxu0 %v5597_v31 }
  0xd3   : > { %4783 = vmatmul.mubr.f32.gmra.mrb[30].mxu1 %v6927_v5 }
  0xd4   : > { %5159 = vmatmul.mubr.f32.gmra.mrb[14].mxu0 %v6622_v4  ;;  %4817 = vmatprep.mubr.f32.mxu1 %v7294_v28  ;;  %v7867_v4 = vld [vmem:[#allocation34_spill] sm:$0xff] }
  0xd5   : > { %5161 = vmatprep.mubr.msk.f32.mxu0 %vm494_vm0, %v7864_v55  ;;  %5600 = vmatpush3.bf16.msra.mxu0 %v5597_v31  ;;  %v7868_v31 = vld [vmem:[#allocation35_spill] sm:$0xff] }
  0xd6   : > { %5602 = vmatprep.subr.bf16.mxu0 %v7299_v14 }
  0xd7   : > { %4818 = vmatmul.mubr.f32.vlgmr.msra.gmra.mrb[0].mxu1 %v7294_v28  ;;  %v4069_v28 = vld [vmem:[%s7679_s1 + $0x1b8] sm:$0xff] }
  0xd8   : > { %5162 = vmatmul.mubr.f32.gmra.mrb[16].mxu0 %v6662_v13  ;;  %5444 = vmatpush3.bf16.msra.mxu1 %v7180_v37  ;;  %v7869_v37 = vld [vmem:[#allocation39_spill] sm:$0xff] }
  0xd9   : > { %4820 = vmatprep.mubr.f32.mxu1 %v7867_v4  ;;  %5164 = vmatprep.mubr.msk.f32.mxu0 %vm494_vm0, %v6705_v17  ;;  %v5453_v4 = vpack.c.bf16 %v4069_v28, %v4068_v60  ;;  %v5457_v28 = vpack.c.bf16 %v4071_v22, %v4070_v34  ;;  %v4072_v60 = vld [vmem:[%s7679_s1 + $0x1d0] sm:$0xff]  ;;  %v7873_v34 = vld [vmem:[#allocation52_spill] sm:$0xff] }
  0xda   : > { %5446 = vmatprep.subr.bf16.mxu1 %v5445_v57  ;;  %v4074_v22 = vld [vmem:[%s7679_s1 + $0x1e0] sm:$0xff] }
  0xdb   : > { %4821 = vmatmul.mubr.f32.gmra.mrb[2].mxu1 %v7868_v31  ;;  %v7870_v31 = vld [vmem:[#allocation43_spill] sm:$0xff] }
  0xdc   : > { %5165 = vmatmul.mubr.f32.gmra.mrb[18].mxu0 %v6711_v18  ;;  %4823 = vmatprep.mubr.f32.mxu1 %v7869_v37 }
  0xdd   : > { %5167 = vmatprep.mubr.msk.f32.mxu0 %vm494_vm0, %v7865_v2  ;;  %5448 = vmatpush3.bf16.msra.mxu1 %v5445_v57  ;;  %v7871_v57 = vld [vmem:[#allocation44_spill] sm:$0xff]  ;;  %v4073_v2 = vld [vmem:[%s7679_s1 + $0x1d8] sm:$0xff] }
  0xde   : > { %5450 = vmatprep.subr.bf16.mxu1 %v5449_v27 }
  0xdf   : > { %4824 = vmatmul.mubr.f32.gmra.mrb[4].mxu1 %v6653_v6 }
  0xe0   : > { %5168 = vmatmul.mubr.f32.gmra.mrb[20].mxu0 %v6762_v53  ;;  %4826 = vmatprep.mubr.f32.mxu1 %v7870_v31  ;;  %v7872_v53 = vld [vmem:[#allocation48_spill] sm:$0xff] }
  0xe1   : > { %5170 = vmatprep.mubr.msk.f32.mxu0 %vm494_vm0, %v6808_v48  ;;  %5452 = vmatpush3.bf16.msra.mxu1 %v5449_v27  ;;  %v5461_v27 = vpack.c.bf16 %v4073_v2, %v4072_v60  ;;  %v4075_v48 = vld [vmem:[%s7679_s1 + $0x1e8] sm:$0xff]  ;;  %v4077_v60 = vld [vmem:[%s7679_s1 + $0x1f8] sm:$0xff] }
  0xe2   : > { %5454 = vmatprep.subr.bf16.mxu1 %v5453_v4  ;;  %v5465_v2 = vpack.c.bf16 %v4075_v48, %v4074_v22  ;;  %v7874_v22 = vld [vmem:[#allocation17_spill] sm:$0xff] }
  0xe3   : > { %4827 = vmatmul.mubr.f32.gmra.mrb[6].mxu1 %v7871_v57 }
  0xe4   : > { %5171 = vmatmul.mubr.f32.gmra.mrb[22].mxu0 %v6824_v12  ;;  %4829 = vmatprep.mubr.f32.mxu1 %v7872_v53 }
  0xe5   : > { %5173 = vmatprep.mubr.msk.f32.mxu0 %vm494_vm0, %v6855_v11  ;;  %5456 = vmatpush3.bf16.msra.mxu1 %v5453_v4  ;;  %v4076_v4 = vld [vmem:[%s7679_s1 + $0x1f0] sm:$0xff] }
  0xe6   : > { %5458 = vmatprep.subr.bf16.mxu1 %v5457_v28  ;;  %v5469_v48 = vpack.c.bf16 %v4077_v60, %v4076_v4  ;;  %v4177_v60 = vld [vmem:[%s7679_s1 + $0x420] sm:$0xff] }
  0xe7   : > { %4830 = vmatmul.mubr.f32.gmra.mrb[8].mxu1 %v7873_v34 }
  0xe8   : > { %5174 = vmatmul.mubr.f32.gmra.mrb[24].mxu0 %v6869_v40  ;;  %4832 = vmatprep.mubr.f32.mxu1 %v6805_v24 }
  0xe9   : > { %5176 = vmatprep.mubr.msk.f32.mxu0 %vm494_vm0, %v6920_v33  ;;  %5460 = vmatpush3.bf16.msra.mxu1 %v5457_v28  ;;  %v4175_v28 = vld [vmem:[%s7679_s1 + $0x410] sm:$0xff] }
  0xea   : > { %5462 = vmatprep.subr.bf16.mxu1 %v5461_v27 }
  0xeb   : > { %4833 = vmatmul.mubr.f32.gmra.mrb[10].mxu1 %v6811_v21 }
  0xec   : > { %5177 = vmatmul.mubr.f32.gmra.mrb[26].mxu0 %v6927_v5  ;;  %4835 = vmatprep.mubr.f32.mxu1 %v6862_v19  ;;  %v7876_v5 = vld [vmem:[#allocation18_spill] sm:$0xff] }
  0xed   : > { %5179 = vmatprep.mubr.msk.f32.mxu0 %vm494_vm0, %v7092_v0  ;;  %5464 = vmatpush3.bf16.msra.mxu1 %v5461_v27  ;;  %v4176_v27 = vld [vmem:[%s7679_s1 + $0x418] sm:$0xff]  ;;  %v4178_v0 = vld [vmem:[%s7679_s1 + $0x428] sm:$0xff] }
  0xee   : > { %5466 = vmatprep.subr.bf16.mxu1 %v5465_v2  ;;  %v5605_v4 = vpack.c.bf16 %v4176_v27, %v4175_v28  ;;  %v4179_v28 = vld [vmem:[%s7679_s1 + $0x430] sm:$0xff]  ;;  %v4180_v27 = vld [vmem:[%s7679_s1 + $0x438] sm:$0xff] }
  0xef   : > { %4836 = vmatmul.mubr.f32.gmra.mrb[12].mxu1 %v6883_v39 }
  0xf0   : > { %5180 = vmatmul.mubr.f32.gmra.mrb[28].mxu0 %v7114_v10  ;;  %4838 = vmatprep.mubr.f32.mxu1 %v6925_v52 }
  0xf1   : > { %5182 = vmatprep.mubr.f32.mxu0 %v7850_v42  ;;  %5468 = vmatpush3.bf16.msra.mxu1 %v5465_v2  ;;  %v7875_v2 = vld [vmem:[#allocation7_spill] sm:$0xff] }
  0xf2   : > { %5470 = vmatprep.subr.bf16.mxu1 %v5469_v48 }
  0xf3   : > { %4839 = vmatmul.mubr.f32.gmra.mrb[14].mxu1 %v6944_v63 }
  0xf4   : > { %5183 = vmatmul.mubr.f32.gmra.mrb[30].mxu0 %v7850_v42  ;;  %4841 = vmatprep.mubr.f32.mxu1 %v6947_v62  ;;  %v7877_v42 = vld [vmem:[#allocation21_spill] sm:$0xff] }
  0xf5   : > { %5217 = vmatprep.mubr.f32.mxu0 %v7874_v22  ;;  %5472 = vmatpush3.bf16.msra.mxu1 %v5469_v48  ;;  %v5609_v48 = vpack.c.bf16 %v4178_v0, %v4177_v60  ;;  %v7878_v22 = vld [vmem:[#allocation22_spill] sm:$0xff]  ;;  %v7880_v0 = vld [vmem:[#allocation65_spill] sm:$0xff]  ;;  %v4181_v60 = vld [vmem:[%s7679_s1 + $0x440] sm:$0xff] }
  0xf6   : > { %5633 = vmatprep.subr.bf16.mxu1 %v7875_v2 }
  0xf7   : > { %4842 = vmatmul.mubr.f32.gmra.mrb[16].mxu1 %v6980_v23 }
  0xf8   : > { %5218 = vmatmul.mubr.f32.vlgmr.msra.gmra.mrb[0].mxu0 %v7876_v5  ;;  %4844 = vmatprep.mubr.f32.mxu1 %v6984_v26  ;;  %v7879_v5 = vld [vmem:[#allocation23_spill] sm:$0xff] }
  0xf9   : > { %5604 = vmatpush3.bf16.msra.mxu0 %v7299_v14  ;;  %5220 = vmatprep.mubr.f32.mxu0 %v7877_v42  ;;  %v5613_v14 = vpack.c.bf16 %v4180_v27, %v4179_v28  ;;  %v4182_v42 = vld [vmem:[%s7679_s1 + $0x448] sm:$0xff]  ;;  %v4183_v28 = vld [vmem:[%s7679_s1 + $0x450] sm:$0xff]  ;;  %v4184_v27 = vld [vmem:[%s7679_s1 + $0x458] sm:$0xff] }
  0xfa   : > { %5606 = vmatprep.subr.bf16.mxu0 %v5605_v4 }
  0xfb   : > { %4845 = vmatmul.mubr.f32.gmra.mrb[18].mxu1 %v7005_v51  ;;  %v7881_v51 = vld [vmem:[#allocation24_spill] sm:$0xff] }
  0xfc   : > { %5221 = vmatmul.mubr.f32.gmra.mrb[2].mxu0 %v7878_v22  ;;  %4847 = vmatprep.mubr.f32.mxu1 %v7010_v35  ;;  %v7882_v22 = vld [vmem:[#allocation26_spill] sm:$0xff] }
  0xfd   : > { %5223 = vmatprep.mubr.f32.mxu0 %v7879_v5  ;;  %5608 = vmatpush3.bf16.msra.mxu0 %v5605_v4  ;;  %v5617_v4 = vpack.c.bf16 %v4182_v42, %v4181_v60  ;;  %v7883_v5 = vld [vmem:[#allocation28_spill] sm:$0xff]  ;;  %v4186_v42 = vld [vmem:[%s7679_s1 + $0x468] sm:$0xff] }
  0xfe   : > { %5610 = vmatprep.subr.bf16.mxu0 %v5609_v48  ;;  %v4185_v60 = vld [vmem:[%s7679_s1 + $0x460] sm:$0xff] }
  0xff   : > { %4848 = vmatmul.mubr.f32.gmra.mrb[20].mxu1 %v7880_v0 }
 0x100   : > { %5224 = vmatmul.mubr.f32.gmra.mrb[4].mxu0 %v7881_v51  ;;  %4850 = vmatprep.mubr.f32.mxu1 %v7038_v20  ;;  %v7884_v51 = vld [vmem:[#allocation67_spill] sm:$0xff]  ;;  %v7885_v20 = vld [vmem:[#allocation29_spill] sm:$0xff] }
 0x101   : > { %5226 = vmatprep.mubr.f32.mxu0 %v7882_v22  ;;  %5612 = vmatpush3.bf16.msra.mxu0 %v5609_v48  ;;  %v5621_v48 = vpack.c.bf16 %v4184_v27, %v4183_v28  ;;  %v7886_v22 = vld [vmem:[#allocation31_spill] sm:$0xff]  ;;  %v7888_v27 = vld [vmem:[#allocation33_spill] sm:$0xff] }
 0x102   : > { %5614 = vmatprep.subr.bf16.mxu0 %v5613_v14  ;;  %v4188_v28 = vld [vmem:[%s7679_s1 + $0x478] sm:$0xff] }
 0x103   : > { %4851 = vmatmul.mubr.f32.gmra.mrb[22].mxu1 %v7058_v25 }
 0x104   : > { %5227 = vmatmul.mubr.f32.gmra.mrb[6].mxu0 %v7883_v5  ;;  %4853 = vmatprep.mubr.f32.mxu1 %v7884_v51  ;;  %v7887_v5 = vld [vmem:[#allocation32_spill] sm:$0xff] }
 0x105   : > { %5229 = vmatprep.mubr.f32.mxu0 %v7885_v20  ;;  %5616 = vmatpush3.bf16.msra.mxu0 %v5613_v14  ;;  %v5625_v20 = vpack.c.bf16 %v4186_v42, %v4185_v60  ;;  %v4187_v14 = vld [vmem:[%s7679_s1 + $0x470] sm:$0xff]  ;;  %v7890_v60 = vld [vmem:[#allocation41_spill] sm:$0xff] }
 0x106   : > { %5618 = vmatprep.subr.bf16.mxu0 %v5617_v4  ;;  %v7891_v42 = vld [vmem:[#allocation42_spill] sm:$0xff] }
 0x107   : > { %4854 = vmatmul.mubr.f32.gmra.mrb[24].mxu1 %v7083_v54 }
 0x108   : > { %5230 = vmatmul.mubr.f32.gmra.mrb[8].mxu0 %v7886_v22  ;;  %4856 = vmatprep.mubr.f32.mxu1 %v7089_v43  ;;  %v7889_v22 = vld [vmem:[#allocation37_spill] sm:$0xff] }
 0x109   : > { %5232 = vmatprep.mubr.f32.mxu0 %v7887_v5  ;;  %5620 = vmatpush3.bf16.msra.mxu0 %v5617_v4  ;;  %v5629_v4 = vpack.c.bf16 %v4188_v28, %v4187_v14  ;;  %v7892_v5 = vld [vmem:[#allocation45_spill] sm:$0xff]  ;;  %v7895_v14 = vld [vmem:[#allocation15_spill] sm:$0xff]  ;;  %v7896_v28 = vld [vmem:[#allocation50_spill] sm:$0xff] }
 0x10a   : > { %5622 = vmatprep.subr.bf16.mxu0 %v5621_v48 }
 0x10b   : > { %4857 = vmatmul.mubr.f32.gmra.mrb[26].mxu1 %v7106_v58 }
 0x10c   : > { %5233 = vmatmul.mubr.f32.gmra.mrb[10].mxu0 %v7888_v27  ;;  %4859 = vmatprep.mubr.f32.mxu1 %v7112_v8  ;;  %v7893_v27 = vld [vmem:[#allocation14_spill] sm:$0xff] }
 0x10d   : > { %5235 = vmatprep.mubr.f32.mxu0 %v7889_v22  ;;  %5624 = vmatpush3.bf16.msra.mxu0 %v5621_v48  ;;  %v7894_v48 = vld [vmem:[#allocation46_spill] sm:$0xff]  ;;  %v7898_v22 = vld [vmem:[#allocation8_spill] sm:$0xff] }
 0x10e   : > { %5626 = vmatprep.subr.bf16.mxu0 %v5625_v20 }
 0x10f   : > { %4860 = vmatmul.mubr.f32.gmra.mrb[28].mxu1 %v7134_v44 }
 0x110   : > { %5236 = vmatmul.mubr.f32.gmra.mrb[12].mxu0 %v7890_v60  ;;  %4862 = vmatprep.mubr.f32.mxu1 %v7137_v38  ;;  %v7899_v60 = vld [vmem:[#allocation53_spill] sm:$0xff] }
 0x111   : > { %5238 = vmatprep.mubr.f32.mxu0 %v7891_v42  ;;  %5628 = vmatpush3.bf16.msra.mxu0 %v5625_v20  ;;  %v7897_v20 = vld [vmem:[#allocation51_spill] sm:$0xff] }
 0x112   : > { %5630 = vmatprep.subr.bf16.mxu0 %v5629_v4 }
 0x113   : > { %4863 = vmatmul.mubr.f32.gmra.mrb[30].mxu1 %v7159_v50 }
 0x114   : > { %5239 = vmatmul.mubr.f32.gmra.mrb[14].mxu0 %v7892_v5  ;;  %4897 = vmatprep.mubr.msk.f32.mxu1 %vm494_vm0, %v7893_v27  ;;  %v7904_v27 = vld [vmem:[#allocation10_spill] sm:$0xff] }
 0x115   : > { %5241 = vmatprep.mubr.f32.mxu0 %v7894_v48  ;;  %5632 = vmatpush3.bf16.msra.mxu0 %v5629_v4  ;;  %v7900_v4 = vld [vmem:[#allocation55_spill] sm:$0xff] }
 0x117   : > { %4898 = vmatmul.mubr.f32.vlgmr.msra.gmra.mrb[0].mxu1 %v7895_v14  ;;  %v2313_v14 = vrot.slane %v7114_v10, 1 }
 0x118   : > { %5242 = vmatmul.mubr.f32.gmra.mrb[16].mxu0 %v7896_v28  ;;  %5641 = vmatpush3.bf16.msra.mxu1 %v7875_v2  ;;  %v7901_v2 = vld [vmem:[#allocation9_spill] sm:$0xff] }
 0x119   : > { %4900 = vmatprep.mubr.msk.f32.mxu1 %vm494_vm0, %v6245_v9  ;;  %5244 = vmatprep.mubr.f32.mxu0 %v7897_v20  ;;  %v7902_v9 = vld [vmem:[#allocation56_spill] sm:$0xff] }
 0x11a   : > { %5634 = vmatprep.subr.bf16.mxu1 %v7898_v22 }
 0x11b   : > { %4901 = vmatmul.mubr.f32.gmra.mrb[2].mxu1 %v6259_v15  ;;  %v7903_v15 = vld [vmem:[#allocation57_spill] sm:$0xff] }
 0x11c   : > { %5245 = vmatmul.mubr.f32.gmra.mrb[18].mxu0 %v7899_v60  ;;  %4903 = vmatprep.mubr.msk.f32.mxu1 %vm494_vm0, %v6299_v41  ;;  %v7905_v41 = vld [vmem:[#allocation58_spill] sm:$0xff] }
 0x11d   : > { %5247 = vmatprep.mubr.f32.mxu0 %v7900_v4  ;;  %5642 = vmatpush3.bf16.msra.mxu1 %v7898_v22  ;;  %v7907_v22 = vld [vmem:[#allocation11_spill] sm:$0xff] }
 0x11e   : > { %5635 = vmatprep.subr.bf16.mxu1 %v7901_v2 }
 0x11f   : > { %4904 = vmatmul.mubr.f32.gmra.mrb[4].mxu1 %v6319_v61  ;;  %v7906_v61 = vld [vmem:[#allocation59_spill] sm:$0xff] }
 0x120   : > { %5248 = vmatmul.mubr.f32.gmra.mrb[20].mxu0 %v7902_v9  ;;  %4906 = vmatprep.mubr.msk.f32.mxu1 %vm494_vm0, %v7856_v45  ;;  %v2312_v45 = vrot.slane %v7120_v56, 1 }
 0x121   : > { %5250 = vmatprep.mubr.f32.mxu0 %v7903_v15  ;;  %5643 = vmatpush3.bf16.msra.mxu1 %v7901_v2  ;;  %v7908_v2 = vld [vmem:[#allocation61_spill] sm:$0xff] }
 0x122   : > { %5636 = vmatprep.subr.bf16.mxu1 %v7904_v27  ;;  %v7516_v56 = vsel %vm1068_vm2, %v2312_v45, %v2313_v14 }
 0x123   : > { %4907 = vmatmul.mubr.f32.gmra.mrb[6].mxu1 %v6357_v32  ;;  %v7909_v32 = vld [vmem:[#allocation62_spill] sm:$0xff] }
 0x124   : > { %5251 = vmatmul.mubr.f32.gmra.mrb[22].mxu0 %v7905_v41  ;;  %4909 = vmatprep.mubr.msk.f32.mxu1 %vm494_vm0, %v7857_v7  ;;  %v2315_v7 = vrot.slane %v7144_v1, 1  ;;  %v7912_v1 = vld [vmem:[#allocation13_spill] sm:$0xff] }
 0x125   : > { %5253 = vmatprep.mubr.f32.mxu0 %v7906_v61  ;;  %5644 = vmatpush3.bf16.msra.mxu1 %v7904_v27  ;;  %v7910_v27 = vld [vmem:[#allocation12_spill] sm:$0xff] }
 0x126   : > { %5637 = vmatprep.subr.bf16.mxu1 %v7907_v22 }
 0x127   : > { %4910 = vmatmul.mubr.f32.gmra.mrb[8].mxu1 %v6391_v3  ;;  %v7911_v3 = vld [vmem:[#allocation63_spill] sm:$0xff] }
 0x128   : > { %5254 = vmatmul.mubr.f32.gmra.mrb[24].mxu0 %v7908_v2  ;;  %4912 = vmatprep.mubr.msk.f32.mxu1 %vm494_vm0, %v7858_v29  ;;  %v7526_v29 = vsel %vm1068_vm2, %v2313_v14, %v2315_v7 }
 0x129   : > { %5256 = vmatprep.mubr.f32.mxu0 %v7909_v32  ;;  %5645 = vmatpush3.bf16.msra.mxu1 %v7907_v22 }
 0x12a   : > { %5638 = vmatprep.subr.bf16.mxu1 %v7910_v27 }
 0x12b   : > { %4913 = vmatmul.mubr.f32.gmra.mrb[10].mxu1 %v6456_v36  ;;  %v7913_v36 = vld [vmem:[#allocation6_spill] sm:$0xff] }
 0x12c   : > { %5257 = vmatmul.mubr.f32.gmra.mrb[26].mxu0 %v7911_v3  ;;  %4915 = vmatprep.mubr.msk.f32.mxu1 %vm494_vm0, %v7860_v46  ;;  %v7914_v46 = vld [vmem:[#allocation16_spill] sm:$0xff] }
 0x12d   : > { %5259 = vmatprep.mubr.f32.mxu0 %v7516_v56  ;;  %5646 = vmatpush3.bf16.msra.mxu1 %v7910_v27 }
 0x12e   : > { %5639 = vmatprep.subr.bf16.mxu1 %v7912_v1 }
 0x12f   : > { %4916 = vmatmul.mubr.f32.gmra.mrb[12].mxu1 %v6483_v16  ;;  %v7915_v16 = vld [vmem:[#allocation38_spill] sm:$0xff] }
 0x130   : > { %5260 = vmatmul.mubr.f32.gmra.mrb[28].mxu0 %v7526_v29  ;;  %4918 = vmatprep.mubr.msk.f32.mxu1 %vm494_vm0, %v7862_v47 }
 0x131   : > { %5262 = vmatprep.mubr.f32.mxu0 %v7913_v36  ;;  %5647 = vmatpush3.bf16.msra.mxu1 %v7912_v1 }
 0x132   : > { %5640 = vmatprep.subr.bf16.mxu1 %v7914_v46 }
 0x133   : > { %4919 = vmatmul.mubr.f32.gmra.mrb[14].mxu1 %v6563_v59  ;;  %v7916_v59 = vld [vmem:[#allocation47_spill] sm:$0xff] }
 0x134   : > { %5263 = vmatmul.mubr.f32.gmra.mrb[30].mxu0 %v7913_v36  ;;  %4921 = vmatprep.mubr.msk.f32.mxu1 %vm494_vm0, %v7863_v30 }
 0x135   : > { %5297 = vmatprep.mubr.f32.mxu0 %v7869_v37  ;;  %5648 = vmatpush3.bf16.msra.mxu1 %v7914_v46 }
 0x137   : > { %4922 = vmatmul.mubr.f32.gmra.mrb[16].mxu1 %v7915_v16 }
 0x138   : > { %5298 = vmatmul.mubr.f32.vlgmr.msra.gmra.mrb[0].mxu0 %v6653_v6  ;;  %4924 = vmatprep.mubr.msk.f32.mxu1 %vm494_vm0, %v7864_v55  ;;  %v7917_v6 = vld [vmem:[#allocation49_spill] sm:$0xff] }
 0x139   : > { %5300 = vmatprep.mubr.f32.mxu0 %v7870_v31 }
 0x13b   : > { %4925 = vmatmul.mubr.f32.gmra.mrb[18].mxu1 %v6662_v13  ;;  %v7918_v13 = vld [vmem:[#allocation54_spill] sm:$0xff] }
 0x13c   : > { %5301 = vmatmul.mubr.f32.gmra.mrb[2].mxu0 %v7871_v57  ;;  %4927 = vmatprep.mubr.msk.f32.mxu1 %vm494_vm0, %v6705_v17  ;;  %v7919_v17 = vld [vmem:[#allocation60_spill] sm:$0xff] }
 0x13d   : > { %5303 = vmatprep.mubr.f32.mxu0 %v7872_v53  ;;  %v7922_v53 = vld [vmem:[#allocation66_spill] sm:$0xff] }
 0x13f   : > { %4928 = vmatmul.mubr.f32.gmra.mrb[20].mxu1 %v6711_v18  ;;  %v7920_v18 = vld [vmem:[#allocation68_spill] sm:$0xff] }
 0x140   : > { %5304 = vmatmul.mubr.f32.gmra.mrb[4].mxu0 %v7873_v34  ;;  %4930 = vmatprep.mubr.msk.f32.mxu1 %vm494_vm0, %v7916_v59 }
 0x141   : > { %5306 = vmatprep.mubr.f32.mxu0 %v6805_v24  ;;  %v7924_v24 = vld [vmem:[#allocation20_spill] sm:$0xff] }
 0x143   : > { %4931 = vmatmul.mubr.f32.gmra.mrb[22].mxu1 %v7917_v6 }
 0x144   : > { %5307 = vmatmul.mubr.f32.gmra.mrb[6].mxu0 %v6811_v21  ;;  %4933 = vmatprep.mubr.msk.f32.mxu1 %vm494_vm0, %v7918_v13  ;;  %v7925_v21 = vld [vmem:[#allocation25_spill] sm:$0xff] }
 0x145   : > { %5309 = vmatprep.mubr.f32.mxu0 %v6862_v19 }
 0x147   : > { %4934 = vmatmul.mubr.f32.gmra.mrb[24].mxu1 %v6824_v12 }
 0x148   : > { %5310 = vmatmul.mubr.f32.gmra.mrb[8].mxu0 %v6883_v39  ;;  %4936 = vmatprep.mubr.msk.f32.mxu1 %vm494_vm0, %v6855_v11  ;;  %v7921_v11 = vld [vmem:[#allocation64_spill] sm:$0xff] }
 0x149   : > { %5312 = vmatprep.mubr.f32.mxu0 %v6925_v52 }
 0x14b   : > { %4937 = vmatmul.mubr.f32.gmra.mrb[26].mxu1 %v6869_v40 }
 0x14c   : > { %5313 = vmatmul.mubr.f32.gmra.mrb[10].mxu0 %v6944_v63  ;;  %4939 = vmatprep.mubr.msk.f32.mxu1 %vm494_vm0, %v6920_v33 }
 0x14d   : > { %5315 = vmatprep.mubr.f32.mxu0 %v6947_v62 }
 0x14f   : > { %4940 = vmatmul.mubr.f32.gmra.mrb[28].mxu1 %v7919_v17 }
 0x150   : > { %5316 = vmatmul.mubr.f32.gmra.mrb[12].mxu0 %v6980_v23  ;;  %4942 = vmatprep.mubr.msk.f32.mxu1 %vm494_vm0, %v7920_v18 }
 0x151   : > { %5318 = vmatprep.mubr.f32.mxu0 %v6984_v26 }
 0x153   : > { %4943 = vmatmul.mubr.f32.gmra.mrb[30].mxu1 %v7114_v10 }
 0x154   : > { %5319 = vmatmul.mubr.f32.gmra.mrb[14].mxu0 %v7921_v11  ;;  %5001 = vmatprep.mubr.f32.mxu1 %v7891_v42 }
 0x155   : > { %5321 = vmatprep.mubr.f32.mxu0 %v7010_v35 }
 0x157   : > { %5002 = vmatmul.mubr.f32.vlgmr.msra.gmra.mrb[16].mxu1 %v7892_v5 }
 0x158   : > { %5322 = vmatmul.mubr.f32.gmra.mrb[16].mxu0 %v7880_v0  ;;  %5004 = vmatprep.mubr.f32.mxu1 %v7894_v48 }
 0x159   : > { %5324 = vmatprep.mubr.f32.mxu0 %v7922_v53 }
 0x15b   : > { %5005 = vmatmul.mubr.f32.gmra.mrb[18].mxu1 %v7896_v28 }
 0x15c   : > { %5325 = vmatmul.mubr.f32.gmra.mrb[18].mxu0 %v7058_v25  ;;  %5007 = vmatprep.mubr.f32.mxu1 %v7897_v20 }
 0x15d   : > { %5327 = vmatprep.mubr.f32.mxu0 %v7884_v51 }
 0x15f   : > { %5008 = vmatmul.mubr.f32.gmra.mrb[20].mxu1 %v7899_v60 }
 0x160   : > { %5328 = vmatmul.mubr.f32.gmra.mrb[20].mxu0 %v7083_v54  ;;  %5010 = vmatprep.mubr.f32.mxu1 %v7900_v4 }
 0x161   : > { %5330 = vmatprep.mubr.f32.mxu0 %v7089_v43 }
 0x163   : > { %5011 = vmatmul.mubr.f32.gmra.mrb[22].mxu1 %v7902_v9 }
 0x164   : > { %5331 = vmatmul.mubr.f32.gmra.mrb[22].mxu0 %v7106_v58  ;;  %5013 = vmatprep.mubr.f32.mxu1 %v7903_v15 }
 0x165   : > { %5333 = vmatprep.mubr.f32.mxu0 %v7112_v8 }
 0x167   : > { %5014 = vmatmul.mubr.f32.gmra.mrb[24].mxu1 %v7905_v41 }
 0x168   : > { %5334 = vmatmul.mubr.f32.gmra.mrb[24].mxu0 %v7134_v44  ;;  %5016 = vmatprep.mubr.f32.mxu1 %v7906_v61 }
 0x169   : > { %5336 = vmatprep.mubr.f32.mxu0 %v7137_v38 }
 0x16b   : > { %5017 = vmatmul.mubr.f32.gmra.mrb[26].mxu1 %v7908_v2 }
 0x16c   : > { %5337 = vmatmul.mubr.f32.gmra.mrb[26].mxu0 %v7159_v50  ;;  %5019 = vmatprep.mubr.f32.mxu1 %v7909_v32 }
 0x16d   : > { %5339 = vmatprep.mubr.f32.mxu0 %v7923_v49 }
 0x16f   : > { %5020 = vmatmul.mubr.f32.gmra.mrb[28].mxu1 %v7911_v3 }
 0x170   : > { %5340 = vmatmul.mubr.f32.gmra.mrb[28].mxu0 %v7924_v24  ;;  %5022 = vmatprep.mubr.f32.mxu1 %v7516_v56 }
 0x171   : > { %5342 = vmatprep.mubr.f32.mxu0 %v7925_v21 }
 0x173   : > { %5023 = vmatmul.mubr.f32.gmra.mrb[30].mxu1 %v7526_v29 }
 0x174   : > { %5343 = vmatmul.mubr.f32.gmra.mrb[30].mxu0 %v7925_v21 }
 0x1ea   : > { %v4899_v12 = vpop.f32.mrb[0].mxu1 }
 0x1eb   : > { %v2118_v19 = vpop.f32.mrb[1].mxu1 }
 0x1ee   : > { %v4902_v40 = vpop.f32.mrb[2].mxu1 }
 0x1ef   : > { %v2128_v39 = vpop.f32.mrb[3].mxu1 }
 0x1f2   : > { %v4905_v33 = vpop.f32.mrb[4].mxu1 }
 0x1f3   : > { %v2138_v52 = vpop.f32.mrb[5].mxu1 }
 0x1f6   : > { %v4908_v26 = vpop.f32.mrb[6].mxu1 }
 0x1f7   : > { %v2148_v63 = vpop.f32.mrb[7].mxu1 }
 0x1fa   : > { %v4911_v62 = vpop.f32.mrb[8].mxu1 }
 0x1fb   : > { %v2158_v23 = vpop.f32.mrb[9].mxu1 }
 0x1fe   : > { %v4914_v35 = vpop.f32.mrb[10].mxu1 }
 0x1ff   : > { %v7621_v25 = vpop.f32.mrb[11].mxu1 }
 0x202   : > { %v7623_v54 = vpop.f32.mrb[12].mxu1 }
 0x203   : > { %v7625_v43 = vpop.f32.mrb[13].mxu1 }
 0x206   : > { %v7627_v58 = vpop.f32.mrb[14].mxu1 }
 0x207   : > { %v7629_v8 = vpop.f32.mrb[15].mxu1 }
 0x20b   : > { %v5299_v10 = vpop.f32.mrb[0].mxu0 }
 0x20c   : > { %v5649_v44 = vadd.f32 %v5299_v10, %v4899_v12  ;;  %v3522_v38 = vpop.f32.mrb[1].mxu0 }
 0x20d   : > { %v5650_v50 = vadd.f32 %v3522_v38, %v2118_v19 }
 0x20e   : > { %3714 = vst [vmem:[%s6016_s30 + $0x8] sm:$0xff] %v5649_v44  ;;  %v3783_v47 = vmul.f32 %v5649_v44, %v5649_v44 }
 0x20f   : > { %3713 = vst [vmem:[%s6016_s30] sm:$0xff] %v5650_v50  ;;  %v3745_v30 = vadd.f32 %v5650_v50, %v5649_v44  ;;  %v3782_v55 = vmul.f32 %v5650_v50, %v5650_v50  ;;  %v5302_v37 = vpop.f32.mrb[2].mxu0 }
 0x210   : > { %v5651_v31 = vadd.f32 %v5302_v37, %v4902_v40  ;;  %v3532_v57 = vpop.f32.mrb[3].mxu0 }
 0x211   : > { %v3814_v34 = vadd.f32 %v3783_v47, %v3782_v55  ;;  %v5652_v0 = vadd.f32 %v3532_v57, %v2128_v39 }
 0x212   : > { %3716 = vst [vmem:[%s6016_s30 + $0x18] sm:$0xff] %v5651_v31  ;;  %v3785_v20 = vmul.f32 %v5651_v31, %v5651_v31 }
 0x213   : > { %3715 = vst [vmem:[%s6016_s30 + $0x10] sm:$0xff] %v5652_v0  ;;  %v3746_v51 = vadd.f32 %v5652_v0, %v3745_v30  ;;  %v3784_v42 = vmul.f32 %v5652_v0, %v5652_v0  ;;  %v5305_v5 = vpop.f32.mrb[4].mxu0 }
 0x214   : > { %v5653_v48 = vadd.f32 %v5305_v5, %v4905_v33  ;;  %v3542_v28 = vpop.f32.mrb[5].mxu0 }
 0x215   : > { %v3815_v60 = vadd.f32 %v3814_v34, %v3784_v42  ;;  %v5654_v4 = vadd.f32 %v3542_v28, %v2138_v52  ;;  %v3747_v9 = vadd.f32 %v5651_v31, %v3746_v51 }
 0x216   : > { %3718 = vst [vmem:[%s6016_s30 + $0x28] sm:$0xff] %v5653_v48  ;;  %v3787_v2 = vmul.f32 %v5653_v48, %v5653_v48 }
 0x217   : > { %3717 = vst [vmem:[%s6016_s30 + $0x20] sm:$0xff] %v5654_v4  ;;  %v3748_v15 = vadd.f32 %v5654_v4, %v3747_v9  ;;  %v3786_v41 = vmul.f32 %v5654_v4, %v5654_v4  ;;  %v3816_v61 = vadd.f32 %v3815_v60, %v3785_v20  ;;  %v5308_v45 = vpop.f32.mrb[6].mxu0 }
 0x218   : > { %v5655_v14 = vadd.f32 %v5308_v45, %v4908_v26  ;;  %v3552_v22 = vpop.f32.mrb[7].mxu0 }
 0x219   : > { %v3817_v32 = vadd.f32 %v3816_v61, %v3786_v41  ;;  %v5656_v7 = vadd.f32 %v3552_v22, %v2148_v63  ;;  %v3749_v56 = vadd.f32 %v5653_v48, %v3748_v15 }
 0x21a   : > { %3720 = vst [vmem:[%s6016_s30 + $0x38] sm:$0xff] %v5655_v14  ;;  %v3789_v16 = vmul.f32 %v5655_v14, %v5655_v14 }
 0x21b   : > { %3719 = vst [vmem:[%s6016_s30 + $0x30] sm:$0xff] %v5656_v7  ;;  %v3750_v27 = vadd.f32 %v5656_v7, %v3749_v56  ;;  %v3788_v3 = vmul.f32 %v5656_v7, %v5656_v7  ;;  %v3818_v29 = vadd.f32 %v3817_v32, %v3787_v2  ;;  %v5311_v1 = vpop.f32.mrb[8].mxu0 }
 0x21c   : > { %v5657_v36 = vadd.f32 %v5311_v1, %v4911_v62  ;;  %v3562_v46 = vpop.f32.mrb[9].mxu0 }
 0x21d   : > { %v3819_v59 = vadd.f32 %v3818_v29, %v3788_v3  ;;  %v5658_v6 = vadd.f32 %v3562_v46, %v2158_v23  ;;  %v3751_v13 = vadd.f32 %v5655_v14, %v3750_v27 }
 0x21e   : > { %3722 = vst [vmem:[%s6016_s30 + $0x48] sm:$0xff] %v5657_v36  ;;  %v3791_v21 = vmul.f32 %v5657_v36, %v5657_v36 }
 0x21f   : > { %3721 = vst [vmem:[%s6016_s30 + $0x40] sm:$0xff] %v5658_v6  ;;  %v3752_v17 = vadd.f32 %v5658_v6, %v3751_v13  ;;  %v3790_v18 = vmul.f32 %v5658_v6, %v5658_v6  ;;  %v3820_v11 = vadd.f32 %v3819_v59, %v3789_v16  ;;  %v5314_v53 = vpop.f32.mrb[10].mxu0 }
 0x220   : > { %v5659_v49 = vadd.f32 %v5314_v53, %v4914_v35  ;;  %v3572_v24 = vpop.f32.mrb[11].mxu0 }
 0x221   : > { %v3821_v12 = vadd.f32 %v3820_v11, %v3790_v18  ;;  %v5660_v19 = vadd.f32 %v3572_v24, %v7621_v25  ;;  %v3753_v40 = vadd.f32 %v5657_v36, %v3752_v17 }
 0x222   : > { %3724 = vst [vmem:[%s6016_s30 + $0x58] sm:$0xff] %v5659_v49  ;;  %v3793_v23 = vmul.f32 %v5659_v49, %v5659_v49 }
 0x223   : > { %3723 = vst [vmem:[%s6016_s30 + $0x50] sm:$0xff] %v5660_v19  ;;  %v3754_v39 = vadd.f32 %v5660_v19, %v3753_v40  ;;  %v3792_v33 = vmul.f32 %v5660_v19, %v5660_v19  ;;  %v3822_v52 = vadd.f32 %v3821_v12, %v3791_v21  ;;  %v5317_v26 = vpop.f32.mrb[12].mxu0 }
 0x224   : > { %v5661_v63 = vadd.f32 %v5317_v26, %v7623_v54  ;;  %v3582_v62 = vpop.f32.mrb[13].mxu0 }
 0x225   : > { %v3823_v35 = vadd.f32 %v3822_v52, %v3792_v33  ;;  %v5662_v10 = vadd.f32 %v3582_v62, %v7625_v43  ;;  %v3755_v44 = vadd.f32 %v5659_v49, %v3754_v39 }
 0x226   : > { %3726 = vst [vmem:[%s6016_s30 + $0x68] sm:$0xff] %v5661_v63  ;;  %v3795_v37 = vmul.f32 %v5661_v63, %v5661_v63 }
 0x227   : > { %3725 = vst [vmem:[%s6016_s30 + $0x60] sm:$0xff] %v5662_v10  ;;  %v3756_v25 = vadd.f32 %v5662_v10, %v3755_v44  ;;  %v3794_v38 = vmul.f32 %v5662_v10, %v5662_v10  ;;  %v3824_v50 = vadd.f32 %v3823_v35, %v3793_v23  ;;  %v5320_v47 = vpop.f32.mrb[14].mxu0 }
 0x228   : > { %v5663_v30 = vadd.f32 %v5320_v47, %v7627_v58  ;;  %v3592_v55 = vpop.f32.mrb[15].mxu0 }
 0x229   : > { %v3825_v31 = vadd.f32 %v3824_v50, %v3794_v38  ;;  %v5664_v54 = vadd.f32 %v3592_v55, %v7629_v8  ;;  %v3757_v57 = vadd.f32 %v5661_v63, %v3756_v25 }
 0x22a   : > { %3728 = vst [vmem:[%s6016_s30 + $0x78] sm:$0xff] %v5663_v30  ;;  %v5003_v43 = vpop.f32.mrb[16].mxu1  ;;  %v3797_v20 = vmul.f32 %v5663_v30, %v5663_v30 }
 0x22b   : > { %3727 = vst [vmem:[%s6016_s30 + $0x70] sm:$0xff] %v5664_v54  ;;  %v3758_v34 = vadd.f32 %v5664_v54, %v3757_v57  ;;  %v3796_v0 = vmul.f32 %v5664_v54, %v5664_v54  ;;  %v3826_v51 = vadd.f32 %v3825_v31, %v3795_v37  ;;  %v5323_v42 = vpop.f32.mrb[16].mxu0  ;;  %v2482_v5 = vpop.f32.mrb[17].mxu1 }
 0x22c   : > { %v5665_v48 = vadd.f32 %v5323_v42, %v5003_v43  ;;  %v3602_v28 = vpop.f32.mrb[17].mxu0 }
 0x22d   : > { %v3827_v58 = vadd.f32 %v3826_v51, %v3796_v0  ;;  %v5666_v60 = vadd.f32 %v3602_v28, %v2482_v5  ;;  %v3759_v4 = vadd.f32 %v5663_v30, %v3758_v34 }
 0x22e   : > { %3730 = vst [vmem:[%s6016_s30 + $0x88] sm:$0xff] %v5665_v48  ;;  %v5006_v8 = vpop.f32.mrb[18].mxu1  ;;  %v3799_v2 = vmul.f32 %v5665_v48, %v5665_v48 }
 0x22f   : > { %3729 = vst [vmem:[%s6016_s30 + $0x80] sm:$0xff] %v5666_v60  ;;  %v3760_v9 = vadd.f32 %v5666_v60, %v3759_v4  ;;  %v3798_v15 = vmul.f32 %v5666_v60, %v5666_v60  ;;  %v3828_v41 = vadd.f32 %v3827_v58, %v3797_v20  ;;  %v5326_v61 = vpop.f32.mrb[18].mxu0  ;;  %v2492_v45 = vpop.f32.mrb[19].mxu1 }
 0x230   : > { %v5667_v14 = vadd.f32 %v5326_v61, %v5006_v8  ;;  %v3612_v22 = vpop.f32.mrb[19].mxu0 }
 0x231   : > { %v3829_v32 = vadd.f32 %v3828_v41, %v3798_v15  ;;  %v5668_v7 = vadd.f32 %v3612_v22, %v2492_v45  ;;  %v3761_v56 = vadd.f32 %v5665_v48, %v3760_v9 }
 0x232   : > { %3732 = vst [vmem:[%s6016_s30 + $0x98] sm:$0xff] %v5667_v14  ;;  %v5009_v27 = vpop.f32.mrb[20].mxu1  ;;  %v3801_v6 = vmul.f32 %v5667_v14, %v5667_v14 }
 0x233   : > { %3731 = vst [vmem:[%s6016_s30 + $0x90] sm:$0xff] %v5668_v7  ;;  %v3762_v3 = vadd.f32 %v5668_v7, %v3761_v56  ;;  %v3800_v29 = vmul.f32 %v5668_v7, %v5668_v7  ;;  %v3830_v1 = vadd.f32 %v3829_v32, %v3799_v2  ;;  %v5329_v36 = vpop.f32.mrb[20].mxu0  ;;  %v2502_v46 = vpop.f32.mrb[21].mxu1 }
 0x234   : > { %v5669_v16 = vadd.f32 %v5329_v36, %v5009_v27  ;;  %v3622_v59 = vpop.f32.mrb[21].mxu0 }
 0x235   : > { %v3831_v13 = vadd.f32 %v3830_v1, %v3800_v29  ;;  %v5670_v17 = vadd.f32 %v3622_v59, %v2502_v46  ;;  %v3763_v18 = vadd.f32 %v5667_v14, %v3762_v3 }
 0x236   : > { %3734 = vst [vmem:[%s6016_s30 + $0xa8] sm:$0xff] %v5669_v16  ;;  %v5012_v11 = vpop.f32.mrb[22].mxu1  ;;  %v3803_v39 = vmul.f32 %v5669_v16, %v5669_v16 }
 0x237   : > { %3733 = vst [vmem:[%s6016_s30 + $0xa0] sm:$0xff] %v5670_v17  ;;  %v3764_v53 = vadd.f32 %v5670_v17, %v3763_v18  ;;  %v3802_v49 = vmul.f32 %v5670_v17, %v5670_v17  ;;  %v3832_v24 = vadd.f32 %v3831_v13, %v3801_v6  ;;  %v5332_v21 = vpop.f32.mrb[22].mxu0  ;;  %v2512_v12 = vpop.f32.mrb[23].mxu1 }
 0x238   : > { %v5671_v19 = vadd.f32 %v5332_v21, %v5012_v11  ;;  %v3632_v40 = vpop.f32.mrb[23].mxu0 }
 0x239   : > { %v3833_v33 = vadd.f32 %v3832_v24, %v3802_v49  ;;  %v5672_v52 = vadd.f32 %v3632_v40, %v2512_v12  ;;  %v3765_v26 = vadd.f32 %v5669_v16, %v3764_v53 }
 0x23a   : > { %3736 = vst [vmem:[%s6016_s30 + $0xb8] sm:$0xff] %v5671_v19  ;;  %v5015_v63 = vpop.f32.mrb[24].mxu1  ;;  %v3805_v50 = vmul.f32 %v5671_v19, %v5671_v19 }
 0x23b   : > { %3735 = vst [vmem:[%s6016_s30 + $0xb0] sm:$0xff] %v5672_v52  ;;  %v3766_v62 = vadd.f32 %v5672_v52, %v3765_v26  ;;  %v3804_v23 = vmul.f32 %v5672_v52, %v5672_v52  ;;  %v3834_v35 = vadd.f32 %v3833_v33, %v3803_v39  ;;  %v5335_v10 = vpop.f32.mrb[24].mxu0  ;;  %v2522_v44 = vpop.f32.mrb[25].mxu1 }
 0x23c   : > { %v5673_v25 = vadd.f32 %v5335_v10, %v5015_v63  ;;  %v3642_v38 = vpop.f32.mrb[25].mxu0 }
 0x23d   : > { %v3835_v47 = vadd.f32 %v3834_v35, %v3804_v23  ;;  %v5674_v30 = vadd.f32 %v3642_v38, %v2522_v44  ;;  %v3767_v55 = vadd.f32 %v5671_v19, %v3766_v62 }
 0x23e   : > { %3738 = vst [vmem:[%s6016_s30 + $0xc8] sm:$0xff] %v5673_v25  ;;  %v5018_v37 = vpop.f32.mrb[26].mxu1  ;;  %v3807_v42 = vmul.f32 %v5673_v25, %v5673_v25 }
 0x23f   : > { %3737 = vst [vmem:[%s6016_s30 + $0xc0] sm:$0xff] %v5674_v30  ;;  %v3768_v31 = vadd.f32 %v5674_v30, %v3767_v55  ;;  %v3806_v54 = vmul.f32 %v5674_v30, %v5674_v30  ;;  %v3836_v57 = vadd.f32 %v3835_v47, %v3805_v50  ;;  %v5338_v43 = vpop.f32.mrb[26].mxu0  ;;  %v2532_v34 = vpop.f32.mrb[27].mxu1 }
 0x240   : > { %v5675_v0 = vadd.f32 %v5338_v43, %v5018_v37  ;;  %v3652_v51 = vpop.f32.mrb[27].mxu0 }
 0x241   : > { %v3837_v5 = vadd.f32 %v3836_v57, %v3806_v54  ;;  %v5676_v48 = vadd.f32 %v3652_v51, %v2532_v34  ;;  %v3769_v28 = vadd.f32 %v5673_v25, %v3768_v31 }
 0x242   : > { %3740 = vst [vmem:[%s6016_s30 + $0xd8] sm:$0xff] %v5675_v0  ;;  %v5021_v20 = vpop.f32.mrb[28].mxu1  ;;  %v3809_v61 = vmul.f32 %v5675_v0, %v5675_v0 }
 0x243   : > { %3739 = vst [vmem:[%s6016_s30 + $0xd0] sm:$0xff] %v5676_v48  ;;  %v3770_v58 = vadd.f32 %v5676_v48, %v3769_v28  ;;  %v3808_v60 = vmul.f32 %v5676_v48, %v5676_v48  ;;  %v3838_v4 = vadd.f32 %v3837_v5, %v3807_v42  ;;  %v5341_v8 = vpop.f32.mrb[28].mxu0  ;;  %v2542_v9 = vpop.f32.mrb[29].mxu1 }
 0x244   : > { %v5677_v15 = vadd.f32 %v5341_v8, %v5021_v20  ;;  %v3662_v41 = vpop.f32.mrb[29].mxu0 }
 0x245   : > { %v3839_v45 = vadd.f32 %v3838_v4, %v3808_v60  ;;  %v5678_v14 = vadd.f32 %v3662_v41, %v2542_v9  ;;  %v3771_v22 = vadd.f32 %v5675_v0, %v3770_v58 }
 0x246   : > { %3742 = vst [vmem:[%s6016_s30 + $0xe8] sm:$0xff] %v5677_v15  ;;  %v5024_v2 = vpop.f32.mrb[30].mxu1  ;;  %v3811_v36 = vmul.f32 %v5677_v15, %v5677_v15 }
 0x247   : > { %3741 = vst [vmem:[%s6016_s30 + $0xe0] sm:$0xff] %v5678_v14  ;;  %v3772_v32 = vadd.f32 %v5678_v14, %v3771_v22  ;;  %v3810_v7 = vmul.f32 %v5678_v14, %v5678_v14  ;;  %v3840_v56 = vadd.f32 %v3839_v45, %v3809_v61  ;;  %v5344_v27 = vpop.f32.mrb[30].mxu0  ;;  %v2552_v3 = vpop.f32.mrb[31].mxu1 }
 0x248   : > { %v5679_v29 = vadd.f32 %v5344_v27, %v5024_v2  ;;  %v3672_v1 = vpop.f32.mrb[31].mxu0 }
 0x249   : > { %v3841_v46 = vadd.f32 %v3840_v56, %v3810_v7  ;;  %v5680_v16 = vadd.f32 %v3672_v1, %v2552_v3  ;;  %v3773_v59 = vadd.f32 %v5677_v15, %v3772_v32 }
 0x24a   : > { %3744 = vst [vmem:[%s6016_s30 + $0xf8] sm:$0xff] %v5679_v29  ;;  %v3813_v18 = vmul.f32 %v5679_v29, %v5679_v29 }
 0x24b   : > { %3743 = vst [vmem:[%s6016_s30 + $0xf0] sm:$0xff] %v5680_v16  ;;  %v3774_v6 = vadd.f32 %v5680_v16, %v3773_v59  ;;  %v3812_v13 = vmul.f32 %v5680_v16, %v5680_v16  ;;  %v3842_v17 = vadd.f32 %v3841_v46, %v3811_v36 }
 0x24d   : > { %v3775_v11 = vadd.f32 %v5679_v29, %v3774_v6  ;;  %v3843_v53 = vadd.f32 %v3842_v17, %v3812_v13 }
 0x24f   : > { %v3776_v49 = vrot.slane %v3775_v11, 4  ;;  %v3844_v24 = vadd.f32 %v3843_v53, %v3813_v18 }
 0x251   : > { %v3777_v21 = vadd.f32 %v3776_v49, %v3775_v11  ;;  %v3845_v12 = vrot.slane %v3844_v24, 4 }
 0x253   : > { %v3778_v19 = vrot.slane %v3777_v21, 2  ;;  %v3846_v40 = vadd.f32 %v3845_v12, %v3844_v24 }
 0x255   : > { %v3779_v39 = vadd.f32 %v3778_v19, %v3777_v21  ;;  %v3847_v33 = vrot.slane %v3846_v40, 2 }
 0x257   : > { %v3780_v52 = vrot.slane %v3779_v39, 1  ;;  %v3848_v26 = vadd.f32 %v3847_v33, %v3846_v40 }
 0x259   : > { %v3849_v63 = vrot.slane %v3848_v26, 1  ;;  %v3781_v62 = vadd.f32 %v3780_v52, %v3779_v39 }
 0x25b   : > { %v3850_v23 = vadd.f32 %v3849_v63, %v3848_v26 }
 0x25d   : > { %v3852_v35 = vsel %vm3851_vm4, %v3781_v62, %v3850_v23 }
 0x25e   : > { %3853 = vst [vmem:[%s6021_s8] sm:$0x3] %v3852_v35 }
 0x25f PF: > { %s16_s20 = sadd.s32 1, %s5956_s20   ;;  %s7926_s18 = smov %s5952_s19 }
 0x260   : > { %p13_p5 = scmp.ge.s32.totalorder %s16_s20, 4   ;;  %s7927_s19 = smov %s7929_s21 }
 0x262   :  { %15 = sbr.rel (!%p13_p5) target bundleno = 2 (0x2), region = 131 }
 0x269   :  { %3904 = vsyncmov [#allocation3] }
 0x26c   :  { %s3905_s30 = vpop.sfrf %3904 }
 0x26d   :  { %p4191_p6 = scmp.ne.s32.totalorder %s3905_s30, 0 }
 0x26f   :  { %3909 = shalt.err (%p4191_p6)  }

</bundles_post_ra>
